<compile_context>
chip_gen: v7x
topology: tpu7x:2x2x1
jax: 0.10.0
libtpu: 0.0.40
codegen_flags: <defaults>
</compile_context>

<pallas_src>
import functools

import jax
import jax.numpy as jnp
from jax.experimental import pallas as pl
from jax.experimental.pallas import tpu as pltpu

IN_F = 784        # 28 * 28
IN_PAD = 896      # 7 * 128  -> full-lane K tiles for fc1
HIDDEN = 1200
H_PAD = 1280      # 10 * 128 -> lane-tileable hidden dim
NUM_CLASSES = 10
OUT_PAD = 128     # full-lane output stores; logits sliced in the wrapper


def _round_up(x, m):
    return (x + m - 1) // m * m


def teacher_mlp_kernel(x_ref, w1_ref, b1_ref, w2_ref, b2_ref, w3_ref, b3_ref,
                       o_ref):
    """Grid = (batch tiles,). All weights/biases are VMEM-resident."""
    # x arrives f32; cast to bf16 only for the MXU feed (f32 accumulate).
    x = x_ref[...].astype(jnp.bfloat16)

    # fc1 + bias + relu
    h1 = jnp.dot(x, w1_ref[...], preferred_element_type=jnp.float32)
    h1 = jnp.maximum(h1 + b1_ref[...], 0.0)

    # fc2 + bias, dropout == identity (eval mode), relu
    h2 = jnp.dot(h1.astype(jnp.bfloat16), w2_ref[...],
                 preferred_element_type=jnp.float32)
    h2 = jnp.maximum(h2 + b2_ref[...], 0.0)

    # fc3 (logits)
    o_ref[...] = (jnp.dot(h2.astype(jnp.bfloat16), w3_ref[...],
                          preferred_element_type=jnp.float32)
                  + b3_ref[...]).astype(o_ref.dtype)


@functools.partial(jax.jit, static_argnames=("tile_b",))
def _teacher_forward_padded(x_pad, w1, b1, w2, b2, w3, b3, *, tile_b):
    b_pad = x_pad.shape[0]
    grid = (b_pad // tile_b,)
    return pl.pallas_call(
        teacher_mlp_kernel,
        out_shape=jax.ShapeDtypeStruct((b_pad, OUT_PAD), jnp.float32),
        grid_spec=pltpu.PrefetchScalarGridSpec(
            num_scalar_prefetch=0,
            grid=grid,
            in_specs=[
                pl.BlockSpec((tile_b, IN_PAD), lambda i: (i, 0)),     # x tile
                pl.BlockSpec((IN_PAD, H_PAD), lambda i: (0, 0)),      # W1 (resident)
                pl.BlockSpec((1, H_PAD), lambda i: (0, 0)),           # b1 (resident)
                pl.BlockSpec((H_PAD, H_PAD), lambda i: (0, 0)),       # W2 (resident)
                pl.BlockSpec((1, H_PAD), lambda i: (0, 0)),           # b2 (resident)
                pl.BlockSpec((H_PAD, OUT_PAD), lambda i: (0, 0)),     # W3 (resident)
                pl.BlockSpec((1, OUT_PAD), lambda i: (0, 0)),         # b3 (resident)
            ],
            out_specs=pl.BlockSpec((tile_b, OUT_PAD), lambda i: (i, 0)),
        ),
        compiler_params=pltpu.CompilerParams(
            dimension_semantics=("parallel",),
            vmem_limit_bytes=32 << 20,
        ),
    )(x_pad, w1, b1, w2, b2, w3, b3)


def _pick_tile_b(B):
    if B <= 128:
        # Single tile; round up to >=16 so bf16 sublane vregs are fully packed.
        return max(16, _round_up(B, 16))
    if B <= 1024:
        # >= 2 batch tiles so the "parallel" axis can split across v7x's 2 TCs.
        return _round_up((B + 1) // 2, 128)
    return 512  # caps VMEM use (x tile + resident weights ~< 22 MiB)


def teacher_forward(x_nchw, prepared_params, *, tile_b=None):
    """x_nchw: (B, 1, 28, 28) float32. Returns (B, 10) float32 logits."""
    B = x_nchw.shape[0]
    # Match torch x.view(-1, 784); keep f32 (cast to bf16 happens in-kernel).
    x = x_nchw.reshape(B, IN_F)
    if tile_b is None:
        tile_b = _pick_tile_b(B)
    b_pad = _round_up(B, tile_b)
    # Zero-pad batch rows (sliced off below) and K columns 784->896.
    x = jnp.pad(x, ((0, b_pad - B), (0, IN_PAD - IN_F)))
    out = _teacher_forward_padded(x, *prepared_params, tile_b=tile_b)
    return out[:B, :NUM_CLASSES]


def init_params(key):
    """Deterministic init mimicking nn.Linear default (uniform +/- 1/sqrt(fan_in))."""
    def linear(k, fan_in, fan_out):
        kw, kb = jax.random.split(k)
        bound = 1.0 / jnp.sqrt(fan_in)
        w = jax.random.uniform(kw, (fan_in, fan_out), jnp.float32, -bound, bound)
        b = jax.random.uniform(kb, (1, fan_out), jnp.float32, -bound, bound)
        return w, b

    k1, k2, k3 = jax.random.split(key, 3)
    w1, b1 = linear(k1, IN_F, HIDDEN)
    w2, b2 = linear(k2, HIDDEN, HIDDEN)
    w3, b3 = linear(k3, HIDDEN, NUM_CLASSES)
    return (w1, b1, w2, b2, w3, b3)


def prepare_params(params):
    """Zero-pad 784->896 / 1200->1280 / 10->128 and cast weights to bf16."""
    w1, b1, w2, b2, w3, b3 = params
    w1p = jnp.zeros((IN_PAD, H_PAD), jnp.bfloat16).at[:IN_F, :HIDDEN].set(
        w1.astype(jnp.bfloat16))
    b1p = jnp.zeros((1, H_PAD), jnp.float32).at[:, :HIDDEN].set(b1)
    w2p = jnp.zeros((H_PAD, H_PAD), jnp.bfloat16).at[:HIDDEN, :HIDDEN].set(
        w2.astype(jnp.bfloat16))
    b2p = jnp.zeros((1, H_PAD), jnp.float32).at[:, :HIDDEN].set(b2)
    w3p = jnp.zeros((H_PAD, OUT_PAD), jnp.bfloat16).at[:HIDDEN, :NUM_CLASSES].set(
        w3.astype(jnp.bfloat16))
    b3p = jnp.zeros((1, OUT_PAD), jnp.float32).at[:, :NUM_CLASSES].set(b3)
    return (w1p, b1p, w2p, b2p, w3p, b3p)
    # TODO(synk): for v7x (fp8) / v6e (int8) weight quantization, halving the
    # weight-HBM traffic on the bandwidth-bound small-batch path; gate behind a
    # tolerance check against reference_forward.


def reference_forward(x_nchw, prepared_params):
    """Pure-JAX reference with the same bf16-weight / f32-accumulate math."""
    w1, b1, w2, b2, w3, b3 = prepared_params
    B = x_nchw.shape[0]
    x = jnp.pad(x_nchw.reshape(B, IN_F), ((0, 0), (0, IN_PAD - IN_F)))
    x = x.astype(jnp.bfloat16)
    h1 = jnp.maximum(jnp.dot(x, w1, preferred_element_type=jnp.float32) + b1, 0.0)
    h2 = jnp.maximum(
        jnp.dot(h1.astype(jnp.bfloat16), w2, preferred_element_type=jnp.float32) + b2,
        0.0)  # dropout == identity in eval
    out = jnp.dot(h2.astype(jnp.bfloat16), w3,
                  preferred_element_type=jnp.float32) + b3
    return out[:, :NUM_CLASSES]


if __name__ == "__main__":
    key = jax.random.PRNGKey(0)
    kx, kp = jax.random.split(key)

    B = 8  # small batch
    x = jax.random.normal(kx, (B, 1, 28, 28), jnp.float32)
    params = init_params(kp)
    prepared = prepare_params(params)

    out = teacher_forward(x, prepared)
    out = jax.block_until_ready(out)

    ref = reference_forward(x, prepared)
    assert out.shape == (B, NUM_CLASSES)
    assert jnp.allclose(out, ref, atol=1e-2, rtol=1e-2), "mismatch vs reference"

    print("KERNEL_OK")
</pallas_src>

<mosaic_0001>
module attributes {stable_mosaic.version = 11 : i64} {
  func.func @teacher_mlp_kernel(%arg0: i32, %arg1: memref<16x896xf32, #tpu.memory_space<vmem>>, %arg2: memref<896x1280xbf16, #tpu.memory_space<vmem>>, %arg3: memref<1x1280xf32, #tpu.memory_space<vmem>>, %arg4: memref<1280x1280xbf16, #tpu.memory_space<vmem>>, %arg5: memref<1x1280xf32, #tpu.memory_space<vmem>>, %arg6: memref<1280x128xbf16, #tpu.memory_space<vmem>>, %arg7: memref<1x128xf32, #tpu.memory_space<vmem>>, %arg8: memref<16x128xf32, #tpu.memory_space<vmem>>) attributes {dimension_semantics = [#tpu.dimension_semantics<parallel>], iteration_bounds = array<i64: 1>, scalar_prefetch = 0 : i64, scratch_operands = 0 : i64, tpu.core_type = #tpu.core_type<tc>, window_params = [{transform_indices = @transform_0, window_bounds = array<i64: 16, 896>}, {pipeline_mode = #tpu.pipeline_mode<synchronous>, transform_indices = @transform_1, window_bounds = array<i64: 896, 1280>}, {pipeline_mode = #tpu.pipeline_mode<synchronous>, transform_indices = @transform_2, window_bounds = array<i64: 1, 1280>}, {pipeline_mode = #tpu.pipeline_mode<synchronous>, transform_indices = @transform_3, window_bounds = array<i64: 1280, 1280>}, {pipeline_mode = #tpu.pipeline_mode<synchronous>, transform_indices = @transform_4, window_bounds = array<i64: 1, 1280>}, {pipeline_mode = #tpu.pipeline_mode<synchronous>, transform_indices = @transform_5, window_bounds = array<i64: 1280, 128>}, {pipeline_mode = #tpu.pipeline_mode<synchronous>, transform_indices = @transform_6, window_bounds = array<i64: 1, 128>}, {transform_indices = @transform_7, window_bounds = array<i64: 16, 128>}]} {
    %c0 = arith.constant 0 : index
    %c0_0 = arith.constant 0 : index
    %0 = vector.load %arg1[%c0, %c0_0] : memref<16x896xf32, #tpu.memory_space<vmem>>, vector<16x896xf32>
    %1 = arith.truncf %0 : vector<16x896xf32> to vector<16x896xbf16>
    %c0_1 = arith.constant 0 : index
    %c0_2 = arith.constant 0 : index
    %2 = vector.load %arg2[%c0_1, %c0_2] : memref<896x1280xbf16, #tpu.memory_space<vmem>>, vector<896x1280xbf16>
    %cst = arith.constant dense<0.000000e+00> : vector<16x1280xf32>
    %3 = tpu.matmul %1, %2, %cst {dimension_numbers = #tpu.dot_dimension_numbers<[1], [0], [0], [1], [0, 0, 1, 1], [], []>} : vector<16x896xbf16>, vector<896x1280xbf16>, vector<16x1280xf32> -> vector<16x1280xf32>
    %c0_3 = arith.constant 0 : index
    %c0_4 = arith.constant 0 : index
    %4 = vector.load %arg3[%c0_3, %c0_4] : memref<1x1280xf32, #tpu.memory_space<vmem>>, vector<1x1280xf32>
    %5 = vector.broadcast %4 : vector<1x1280xf32> to vector<16x1280xf32>
    %6 = arith.addf %3, %5 : vector<16x1280xf32>
    %cst_5 = arith.constant 0.000000e+00 : f32
    %7 = vector.broadcast %cst_5 : f32 to vector<16x1280xf32>
    %8 = arith.maximumf %6, %7 : vector<16x1280xf32>
    %9 = arith.truncf %8 : vector<16x1280xf32> to vector<16x1280xbf16>
    %c0_6 = arith.constant 0 : index
    %c0_7 = arith.constant 0 : index
    %10 = vector.load %arg4[%c0_6, %c0_7] : memref<1280x1280xbf16, #tpu.memory_space<vmem>>, vector<1280x1280xbf16>
    %cst_8 = arith.constant dense<0.000000e+00> : vector<16x1280xf32>
    %11 = tpu.matmul %9, %10, %cst_8 {dimension_numbers = #tpu.dot_dimension_numbers<[1], [0], [0], [1], [0, 0, 1, 1], [], []>} : vector<16x1280xbf16>, vector<1280x1280xbf16>, vector<16x1280xf32> -> vector<16x1280xf32>
    %c0_9 = arith.constant 0 : index
    %c0_10 = arith.constant 0 : index
    %12 = vector.load %arg5[%c0_9, %c0_10] : memref<1x1280xf32, #tpu.memory_space<vmem>>, vector<1x1280xf32>
    %13 = vector.broadcast %12 : vector<1x1280xf32> to vector<16x1280xf32>
    %14 = arith.addf %11, %13 : vector<16x1280xf32>
    %cst_11 = arith.constant 0.000000e+00 : f32
    %15 = vector.broadcast %cst_11 : f32 to vector<16x1280xf32>
    %16 = arith.maximumf %14, %15 : vector<16x1280xf32>
    %17 = arith.truncf %16 : vector<16x1280xf32> to vector<16x1280xbf16>
    %c0_12 = arith.constant 0 : index
    %c0_13 = arith.constant 0 : index
    %18 = vector.load %arg6[%c0_12, %c0_13] : memref<1280x128xbf16, #tpu.memory_space<vmem>>, vector<1280x128xbf16>
    %cst_14 = arith.constant dense<0.000000e+00> : vector<16x128xf32>
    %19 = tpu.matmul %17, %18, %cst_14 {dimension_numbers = #tpu.dot_dimension_numbers<[1], [0], [0], [1], [0, 0, 1, 1], [], []>} : vector<16x1280xbf16>, vector<1280x128xbf16>, vector<16x128xf32> -> vector<16x128xf32>
    %c0_15 = arith.constant 0 : index
    %c0_16 = arith.constant 0 : index
    %20 = vector.load %arg7[%c0_15, %c0_16] : memref<1x128xf32, #tpu.memory_space<vmem>>, vector<1x128xf32>
    %21 = vector.broadcast %20 : vector<1x128xf32> to vector<16x128xf32>
    %22 = arith.addf %19, %21 : vector<16x128xf32>
    %c0_17 = arith.constant 0 : index
    %c0_18 = arith.constant 0 : index
    %23 = vector.load %arg8[%c0_17, %c0_18] : memref<16x128xf32, #tpu.memory_space<vmem>>, vector<16x128xf32>
    tpu.vector_store %arg8[%c0_17, %c0_18], %22 {strides = array<i32>} : memref<16x128xf32, #tpu.memory_space<vmem>>, vector<16x128xf32>,
    return
  }
  func.func @transform_0(%arg0: i32) -> (i32, i32) {
    %c0_i32 = arith.constant 0 : i32
    %c0_i32_0 = arith.constant 0 : i32
    return %arg0, %c0_i32 : i32, i32
  }
  func.func @transform_1(%arg0: i32) -> (i32, i32) {
    %c0_i32 = arith.constant 0 : i32
    %c0_i32_0 = arith.constant 0 : i32
    %c0_i32_1 = arith.constant 0 : i32
    return %c0_i32, %c0_i32_0 : i32, i32
  }
  func.func @transform_2(%arg0: i32) -> (i32, i32) {
    %c0_i32 = arith.constant 0 : i32
    %c0_i32_0 = arith.constant 0 : i32
    %c0_i32_1 = arith.constant 0 : i32
    return %c0_i32, %c0_i32_0 : i32, i32
  }
  func.func @transform_3(%arg0: i32) -> (i32, i32) {
    %c0_i32 = arith.constant 0 : i32
    %c0_i32_0 = arith.constant 0 : i32
    %c0_i32_1 = arith.constant 0 : i32
    return %c0_i32, %c0_i32_0 : i32, i32
  }
  func.func @transform_4(%arg0: i32) -> (i32, i32) {
    %c0_i32 = arith.constant 0 : i32
    %c0_i32_0 = arith.constant 0 : i32
    %c0_i32_1 = arith.constant 0 : i32
    return %c0_i32, %c0_i32_0 : i32, i32
  }
  func.func @transform_5(%arg0: i32) -> (i32, i32) {
    %c0_i32 = arith.constant 0 : i32
    %c0_i32_0 = arith.constant 0 : i32
    %c0_i32_1 = arith.constant 0 : i32
    return %c0_i32, %c0_i32_0 : i32, i32
  }
  func.func @transform_6(%arg0: i32) -> (i32, i32) {
    %c0_i32 = arith.constant 0 : i32
    %c0_i32_0 = arith.constant 0 : i32
    %c0_i32_1 = arith.constant 0 : i32
    return %c0_i32, %c0_i32_0 : i32, i32
  }
  func.func @transform_7(%arg0: i32) -> (i32, i32) {
    %c0_i32 = arith.constant 0 : i32
    %c0_i32_0 = arith.constant 0 : i32
    return %arg0, %c0_i32 : i32, i32
  }
}

</mosaic_0001>

<bundles_post_ra>
// kernel: _teacher_forward_padded.1
= control target key start
LH: loop header
LB: loop body
LE: loop exit
PB: predicated region body
PF: predicated region fallthrough
CT: control target
= control target key end

     0   :  { %12 = vsyncpa [#allocation3], 0  ;;  %s15678_s0 = inlined_call_operand.hbm [shape: f32[16,896], index: 0, kind: input, shape index: {}]   ;;  %s15679_s1 = inlined_call_operand.hbm [shape: bf16[896,1280], index: 1, kind: input, shape index: {}]   ;;  %s15680_s2 = inlined_call_operand.hbm [shape: f32[1,1280], index: 2, kind: input, shape index: {}]   ;;  %s15681_s3 = inlined_call_operand.hbm [shape: bf16[1280,1280], index: 3, kind: input, shape index: {}]   ;;  %s15682_s4 = inlined_call_operand.hbm [shape: f32[1,1280], index: 4, kind: input, shape index: {}]   ;;  %s15683_s5 = inlined_call_operand.hbm [shape: bf16[1280,128], index: 5, kind: input, shape index: {}]   ;;  %s15684_s6 = inlined_call_operand.hbm [shape: f32[1,128], index: 6, kind: input, shape index: {}]   ;;  %s15685_s7 = inlined_call_operand.hbm [shape: f32[16,128], index: 7, kind: output, shape index: {}]  }
   0x1   :  { %13 = vsyncpa [#allocation6], 0 }
   0x2   :  { %14 = vsyncpa [#allocation9], 0 }
   0x3   :  { %15 = vsyncpa [#allocation12], 0 }
   0x4   :  { %16 = vsyncpa [#allocation4], 0  ;;  %s15331_s24 = smov [#allocation5]   ;;  %s15145_s28 = scalar_lea.hbm %s15679_s1, 71680 }
   0x5   :  { %s34_s25 = sshll.u32 %s15331_s24, 4  ;;  %p15146_p0 = scmp.ne.s32.totalorder %s15679_s1, %s15145_s28  ;;  %s35_s25 = int_to_ptr.vmem [resolvable:$true] %s34_s25 }
   0x6   :  { %p15149_p1 = scmp.lt.u32.totalorder %s15145_s28, %s15679_s1 }
   0x8   :  { %p15151_p2 = pnand %p15149_p1, %p15146_p0 }
   0xa   :  { %15154 = shalt.err (!%p15151_p2)
}
   0xb   :  { %s15155_s10 = scalar_lea.vmem %s35_s25, 71680  ;;  %p15160_p4 = scmp.lt.s32.totalorder %s35_s25, %s35_s25 }
   0xc   :  { %p15156_p3 = scmp.ne.s32.totalorder %s35_s25, %s15155_s10  ;;  %p15161_p5 = scmp.lt.s32.totalorder %s15155_s10, %s15155_s10 }
   0xe   :  { %p15162_p6 = por %p15161_p5, %p15160_p4 }
  0x10   :  { %p15163_p7 = pnand %p15162_p6, %p15156_p3 }
  0x12   :  { %15166 = shalt.err (!%p15163_p7)
}
  0x13   :  { %s15332_s11 = smov 640   ;;  %s15333_s12 = smov 40  }
  0x14   :  { %40 = dma.hbm_to_vmem [thread:$0]  %s15679_s1, 71680, %s35_s25, [#allocation6], %s15332_s11, %s15332_s11, %s15333_s12  }
  0x15   :  { %s15334_s15 = smov [#allocation8]   ;;  %s15335_s17 = smov [#allocation11]  }
  0x16   :  { %s56_s16 = sshll.u32 %s15334_s15, 4  ;;  %s78_s18 = sshll.u32 %s15335_s17, 4  ;;  %s57_s16 = int_to_ptr.vmem [resolvable:$true] %s56_s16  ;;  %s79_s18 = int_to_ptr.vmem [resolvable:$true] %s78_s18 }
  0x17   :  { %s15167_s21 = scalar_lea.hbm %s15681_s3, 102400 }
  0x18   :  { %p15168_p8 = scmp.ne.s32.totalorder %s15681_s3, %s15167_s21  ;;  %p15171_p9 = scmp.lt.u32.totalorder %s15167_s21, %s15681_s3 }
  0x1a   :  { %p15173_p10 = pnand %p15171_p9, %p15168_p8 }
  0x1c   :  { %15176 = shalt.err (!%p15173_p10)
}
  0x1d   :  { %s15177_s1 = scalar_lea.vmem %s57_s16, 102400  ;;  %p15182_p12 = scmp.lt.s32.totalorder %s57_s16, %s57_s16 }
  0x1e   :  { %p15178_p11 = scmp.ne.s32.totalorder %s57_s16, %s15177_s1  ;;  %p15183_p13 = scmp.lt.s32.totalorder %s15177_s1, %s15177_s1 }
  0x20   :  { %p15184_p0 = por %p15183_p13, %p15182_p12 }
  0x22   :  { %p15185_p1 = pnand %p15184_p0, %p15178_p11 }
  0x24   :  { %15188 = shalt.err (!%p15185_p1)
}
  0x25   :  { %62 = dma.hbm_to_vmem [thread:$0]  %s15681_s3, 102400, %s57_s16, [#allocation9], %s15332_s11, %s15332_s11, %s15333_s12  }
  0x26   :  { %s15189_s30 = scalar_lea.hbm %s15683_s5, 10240 }
  0x27   :  { %p15190_p2 = scmp.ne.s32.totalorder %s15683_s5, %s15189_s30  ;;  %p15193_p3 = scmp.lt.u32.totalorder %s15189_s30, %s15683_s5 }
  0x29   :  { %p15195_p4 = pnand %p15193_p3, %p15190_p2 }
  0x2b   :  { %15198 = shalt.err (!%p15195_p4)
}
  0x2c   :  { %s15199_s14 = scalar_lea.vmem %s79_s18, 10240  ;;  %p15204_p6 = scmp.lt.s32.totalorder %s79_s18, %s79_s18 }
  0x2d   :  { %p15200_p5 = scmp.ne.s32.totalorder %s79_s18, %s15199_s14  ;;  %p15205_p7 = scmp.lt.s32.totalorder %s15199_s14, %s15199_s14 }
  0x2f   :  { %p15206_p8 = por %p15205_p7, %p15204_p6 }
  0x31   :  { %p15207_p9 = pnand %p15206_p8, %p15200_p5 }
  0x33   :  { %15210 = shalt.err (!%p15207_p9)
}
  0x34   :  { %s15336_s3 = smov 64   ;;  %s15337_s11 = smov 4  }
  0x35   :  { %84 = dma.hbm_to_vmem [thread:$0]  %s15683_s5, 10240, %s79_s18, [#allocation12], %s15336_s3, %s15336_s3, %s15337_s11  }
  0x36   :  { %s15338_s16 = smov [#allocation2]   ;;  %s15211_s21 = scalar_lea.hbm %s15678_s0, 1792 }
  0x37   :  { %s22_s17 = sshll.u32 %s15338_s16, 4  ;;  %p15212_p10 = scmp.ne.s32.totalorder %s15678_s0, %s15211_s21  ;;  %s23_s17 = int_to_ptr.vmem [resolvable:$true] %s22_s17 }
  0x38   :  { %p15215_p11 = scmp.lt.u32.totalorder %s15211_s21, %s15678_s0 }
  0x3a   :  { %p15217_p12 = pnand %p15215_p11, %p15212_p10 }
  0x3c   :  { %15220 = shalt.err (!%p15217_p12)
}
  0x3d   :  { %s15221_s1 = scalar_lea.vmem %s23_s17, 1792  ;;  %p15226_p0 = scmp.lt.s32.totalorder %s23_s17, %s23_s17 }
  0x3e   :  { %p15222_p13 = scmp.ne.s32.totalorder %s23_s17, %s15221_s1  ;;  %p15227_p1 = scmp.lt.s32.totalorder %s15221_s1, %s15221_s1 }
  0x40   :  { %p15228_p2 = por %p15227_p1, %p15226_p0 }
  0x42   :  { %p15229_p3 = pnand %p15228_p2, %p15222_p13 }
  0x44   :  { %15232 = shalt.err (!%p15229_p3)
}
  0x45   :  { %s15339_s5 = smov 896   ;;  %s15340_s18 = smov 56  }
  0x46   :  { %28 = dma.hbm_to_vmem [thread:$0]  %s15678_s0, 1792, %s23_s17, [#allocation3], %s15339_s5, %s15339_s5, %s15340_s18  }
  0x47   :  { %s15341_s28 = smov [#allocation7]   ;;  %s15342_s30 = smov [#allocation10]  }
  0x48   :  { %s47_s29 = sshll.u32 %s15341_s28, 4  ;;  %s69_s8 = sshll.u32 %s15342_s30, 4  ;;  %s48_s29 = int_to_ptr.vmem [resolvable:$true] %s47_s29  ;;  %s70_s8 = int_to_ptr.vmem [resolvable:$true] %s69_s8 }
  0x49   :  { %s15233_s13 = scalar_lea.hbm %s15680_s2, 160 }
  0x4a   :  { %p15234_p4 = scmp.ne.s32.totalorder %s15680_s2, %s15233_s13  ;;  %p15237_p5 = scmp.lt.u32.totalorder %s15233_s13, %s15680_s2 }
  0x4c   :  { %p15239_p6 = pnand %p15237_p5, %p15234_p4 }
  0x4e   :  { %15242 = shalt.err (!%p15239_p6)
}
  0x4f   :  { %s15243_s0 = scalar_lea.vmem %s48_s29, 160  ;;  %p15248_p8 = scmp.lt.s32.totalorder %s48_s29, %s48_s29 }
  0x50   :  { %p15244_p7 = scmp.ne.s32.totalorder %s48_s29, %s15243_s0  ;;  %p15249_p9 = scmp.lt.s32.totalorder %s15243_s0, %s15243_s0 }
  0x52   :  { %p15250_p10 = por %p15249_p9, %p15248_p8 }
  0x54   :  { %p15251_p11 = pnand %p15250_p10, %p15244_p7 }
  0x56   :  { %15254 = shalt.err (!%p15251_p11)
}
  0x57   :  { %50 = dma.hbm_to_vmem [thread:$0]  %s15680_s2, 160, %s48_s29, [#allocation6]  }
  0x58   :  { %s15255_s20 = scalar_lea.hbm %s15682_s4, 160 }
  0x59   :  { %p15256_p12 = scmp.ne.s32.totalorder %s15682_s4, %s15255_s20  ;;  %p15259_p13 = scmp.lt.u32.totalorder %s15255_s20, %s15682_s4 }
  0x5b   :  { %p15261_p0 = pnand %p15259_p13, %p15256_p12 }
  0x5d   :  { %15264 = shalt.err (!%p15261_p0)
}
  0x5e   :  { %s15265_s26 = scalar_lea.vmem %s70_s8, 160  ;;  %p15270_p2 = scmp.lt.s32.totalorder %s70_s8, %s70_s8 }
  0x5f   :  { %p15266_p1 = scmp.ne.s32.totalorder %s70_s8, %s15265_s26  ;;  %p15271_p3 = scmp.lt.s32.totalorder %s15265_s26, %s15265_s26 }
  0x61   :  { %p15272_p4 = por %p15271_p3, %p15270_p2 }
  0x63   :  { %p15273_p5 = pnand %p15272_p4, %p15266_p1 }
  0x65   :  { %15276 = shalt.err (!%p15273_p5)
}
  0x66   :  { %72 = dma.hbm_to_vmem [thread:$0]  %s15682_s4, 160, %s70_s8, [#allocation9]  }
  0x67   :  { %s15343_s5 = smov [#allocation13]   ;;  %s15277_s28 = scalar_lea.hbm %s15684_s6, 16 }
  0x68   :  { %s91_s18 = sshll.u32 %s15343_s5, 4  ;;  %p15278_p6 = scmp.ne.s32.totalorder %s15684_s6, %s15277_s28  ;;  %s92_s18 = int_to_ptr.vmem [resolvable:$true] %s91_s18 }
  0x69   :  { %p15281_p7 = scmp.lt.u32.totalorder %s15277_s28, %s15684_s6 }
  0x6b   :  { %p15283_p8 = pnand %p15281_p7, %p15278_p6 }
  0x6d   :  { %15286 = shalt.err (!%p15283_p8)
}
  0x6e   :  { %s15287_s13 = scalar_lea.vmem %s92_s18, 16  ;;  %s15291_s4 = scalar_lea.vmem %s92_s18, 32 }
  0x6f   :  { %p15288_p9 = scmp.ne.s32.totalorder %s92_s18, %s15287_s13  ;;  %p15292_p10 = scmp.lt.s32.totalorder %s92_s18, %s92_s18 }
  0x70   :  { %p15293_p11 = scmp.lt.s32.totalorder %s15291_s4, %s15287_s13 }
  0x72   :  { %p15294_p12 = por %p15293_p11, %p15292_p10 }
  0x74   :  { %p15295_p13 = pnand %p15294_p12, %p15288_p9 }
  0x76   :  { %15298 = shalt.err (!%p15295_p13)
}
  0x77   :  { %94 = dma.hbm_to_vmem [thread:$0]  %s15684_s6, 16, %s92_s18, [#allocation12]  }
  0x78   :  { %15321 = dma.done.wait [#allocation3], 1792  }
  0x79   :  { %15322 = vsyncadd [#allocation3], 4294965504 }
  0x7a   :  { %15323 = dma.done.wait [#allocation6], 71840  }
  0x7b   :  { %15324 = vsyncadd [#allocation6], 4294895456 }
  0x7c   :  { %15325 = dma.done.wait [#allocation9], 102560  }
  0x7d   :  { %15326 = vsyncadd [#allocation9], 4294864736 }
  0x7e   :  { %15327 = dma.done.wait [#allocation12], 10256  }
  0x7f   :  { %15328 = vsyncadd [#allocation12], 4294957040  ;;  %v13023_v0 = vld [vmem:[#allocation5 + $0x4] ss:$40 sps:$4 sm:$0xff]   ;;  %v13027_v2 = vld [vmem:[#allocation5] ss:$40 sps:$4 sm:$0xff]  }
  0x80   :  { %v13025_v1 = vld [vmem:[#allocation5 + $0xc] ss:$40 sps:$4 sm:$0xff]   ;;  %3552 = vmatprep.subr.bf16.mxu0 %v13023_v0  ;;  %v13028_v3 = vld [vmem:[#allocation5 + $0x8] ss:$40 sps:$4 sm:$0xff]   ;;  %v13031_v5 = vld [vmem:[#allocation5 + $0x5c] ss:$40 sps:$4 sm:$0xff]  }
  0x81   :  { %3724 = vmatprep.subr.bf16.mxu1 %v13025_v1  ;;  %v13029_v4 = vld [vmem:[#allocation5 + $0x54] ss:$40 sps:$4 sm:$0xff]   ;;  %3553 = vmatpush1.bf16.msra.mxu0 %v13027_v2  ;;  %v13033_v6 = vld [vmem:[#allocation5 + $0x50] ss:$40 sps:$4 sm:$0xff]   ;;  %v13035_v8 = vld [vmem:[#allocation5 + $0xa4] ss:$40 sps:$4 sm:$0xff]  }
  0x82   :  { %3725 = vmatpush1.bf16.msra.mxu1 %v13028_v3  ;;  %3554 = vmatprep.subr.bf16.mxu0 %v13029_v4  ;;  %v13034_v7 = vld [vmem:[#allocation5 + $0x58] ss:$40 sps:$4 sm:$0xff]   ;;  %v13037_v9 = vld [vmem:[#allocation5 + $0xac] ss:$40 sps:$4 sm:$0xff]   ;;  %v13040_v11 = vld [vmem:[#allocation5 + $0xa8] ss:$40 sps:$4 sm:$0xff]  }
  0x83   :  { %3726 = vmatprep.subr.bf16.mxu1 %v13031_v5  ;;  %v13039_v10 = vld [vmem:[#allocation5 + $0xa0] ss:$40 sps:$4 sm:$0xff]   ;;  %v13041_v12 = vld [vmem:[#allocation5 + $0xf4] ss:$40 sps:$4 sm:$0xff]   ;;  %v13045_v14 = vld [vmem:[#allocation5 + $0xf0] ss:$40 sps:$4 sm:$0xff]  }
  0x84   :  { %v13043_v13 = vld [vmem:[#allocation5 + $0xfc] ss:$40 sps:$4 sm:$0xff]   ;;  %v13046_v15 = vld [vmem:[#allocation5 + $0xf8] ss:$40 sps:$4 sm:$0xff]   ;;  %v13049_v17 = vld [vmem:[#allocation5 + $0x14c] ss:$40 sps:$4 sm:$0xff]  }
  0x85   :  { %3555 = vmatpush1.bf16.msra.mxu0 %v13033_v6  ;;  %v13047_v16 = vld [vmem:[#allocation5 + $0x144] ss:$40 sps:$4 sm:$0xff]   ;;  %v13051_v18 = vld [vmem:[#allocation5 + $0x140] ss:$40 sps:$4 sm:$0xff]   ;;  %v13053_v20 = vld [vmem:[#allocation5 + $0x194] ss:$40 sps:$4 sm:$0xff]  }
  0x86   :  { %3727 = vmatpush1.bf16.msra.mxu1 %v13034_v7  ;;  %3556 = vmatprep.subr.bf16.mxu0 %v13035_v8  ;;  %v13052_v19 = vld [vmem:[#allocation5 + $0x148] ss:$40 sps:$4 sm:$0xff]   ;;  %v13055_v21 = vld [vmem:[#allocation5 + $0x19c] ss:$40 sps:$4 sm:$0xff]   ;;  %v13058_v23 = vld [vmem:[#allocation5 + $0x198] ss:$40 sps:$4 sm:$0xff]  }
  0x87   :  { %3728 = vmatprep.subr.bf16.mxu1 %v13037_v9  ;;  %v13057_v22 = vld [vmem:[#allocation5 + $0x190] ss:$40 sps:$4 sm:$0xff]   ;;  %v13059_v24 = vld [vmem:[#allocation5 + $0x1e4] ss:$40 sps:$4 sm:$0xff]   ;;  %v13063_v26 = vld [vmem:[#allocation5 + $0x1e0] ss:$40 sps:$4 sm:$0xff]  }
  0x88   :  { %v13061_v25 = vld [vmem:[#allocation5 + $0x1ec] ss:$40 sps:$4 sm:$0xff]   ;;  %v13064_v27 = vld [vmem:[#allocation5 + $0x1e8] ss:$40 sps:$4 sm:$0xff]   ;;  %v13067_v29 = vld [vmem:[#allocation5 + $0x23c] ss:$40 sps:$4 sm:$0xff]  }
  0x89   :  { %3557 = vmatpush1.bf16.msra.mxu0 %v13039_v10  ;;  %v13065_v28 = vld [vmem:[#allocation5 + $0x234] ss:$40 sps:$4 sm:$0xff]   ;;  %v13069_v30 = vld [vmem:[#allocation5 + $0x230] ss:$40 sps:$4 sm:$0xff]   ;;  %v13071_v32 = vld [vmem:[#allocation5 + $0x284] ss:$40 sps:$4 sm:$0xff]  }
  0x8a   :  { %3729 = vmatpush1.bf16.msra.mxu1 %v13040_v11  ;;  %3558 = vmatprep.subr.bf16.mxu0 %v13041_v12  ;;  %v13070_v31 = vld [vmem:[#allocation5 + $0x238] ss:$40 sps:$4 sm:$0xff]   ;;  %v13073_v33 = vld [vmem:[#allocation5 + $0x28c] ss:$40 sps:$4 sm:$0xff]   ;;  %v13076_v35 = vld [vmem:[#allocation5 + $0x288] ss:$40 sps:$4 sm:$0xff]  }
  0x8b   :  { %3730 = vmatprep.subr.bf16.mxu1 %v13043_v13  ;;  %v13075_v34 = vld [vmem:[#allocation5 + $0x280] ss:$40 sps:$4 sm:$0xff]   ;;  %v13077_v36 = vld [vmem:[#allocation5 + $0x2d4] ss:$40 sps:$4 sm:$0xff]   ;;  %v13081_v38 = vld [vmem:[#allocation5 + $0x2d0] ss:$40 sps:$4 sm:$0xff]  }
  0x8c   :  { %v13079_v37 = vld [vmem:[#allocation5 + $0x2dc] ss:$40 sps:$4 sm:$0xff]   ;;  %v13082_v39 = vld [vmem:[#allocation5 + $0x2d8] ss:$40 sps:$4 sm:$0xff]   ;;  %v13085_v41 = vld [vmem:[#allocation5 + $0x32c] ss:$40 sps:$4 sm:$0xff]  }
  0x8d   :  { %3559 = vmatpush1.bf16.msra.mxu0 %v13045_v14  ;;  %v13083_v40 = vld [vmem:[#allocation5 + $0x324] ss:$40 sps:$4 sm:$0xff]   ;;  %v13087_v42 = vld [vmem:[#allocation5 + $0x320] ss:$40 sps:$4 sm:$0xff]   ;;  %v13089_v44 = vld [vmem:[#allocation5 + $0x374] ss:$40 sps:$4 sm:$0xff]  }
  0x8e   :  { %3731 = vmatpush1.bf16.msra.mxu1 %v13046_v15  ;;  %3560 = vmatprep.subr.bf16.mxu0 %v13047_v16  ;;  %v13088_v43 = vld [vmem:[#allocation5 + $0x328] ss:$40 sps:$4 sm:$0xff]   ;;  %v13091_v45 = vld [vmem:[#allocation5 + $0x37c] ss:$40 sps:$4 sm:$0xff]   ;;  %v13094_v49 = vld [vmem:[#allocation5 + $0x378] ss:$40 sps:$4 sm:$0xff]  }
  0x8f   :  { %3732 = vmatprep.subr.bf16.mxu1 %v13049_v17  ;;  %v118_v46 = vld [vmem:[#allocation2 + $0x8] sm:$0xff]  ;;  %v125_v47 = vld [vmem:[#allocation2 + $0x40] sm:$0xff]  ;;  %v13095_v51 = vld [vmem:[#allocation5 + $0x3c4] ss:$40 sps:$4 sm:$0xff]   ;;  %s15345_s6 = smov [#allocation14]  }
  0x90   :  { %v13093_v48 = vld [vmem:[#allocation5 + $0x370] ss:$40 sps:$4 sm:$0xff]   ;;  %v15472_v50 = vpack.c.bf16 %v125_v47, %v118_v46  ;;  %v13097_v52 = vld [vmem:[#allocation5 + $0x3cc] ss:$40 sps:$4 sm:$0xff]   ;;  %v13099_v53 = vld [vmem:[#allocation5 + $0x3c0] ss:$40 sps:$4 sm:$0xff]  }
  0x91   :  { %3561 = vmatpush1.bf16.msra.mxu0 %v13051_v18  ;;  %v13100_v54 = vld [vmem:[#allocation5 + $0x3c8] ss:$40 sps:$4 sm:$0xff]   ;;  %v13101_v55 = vld [vmem:[#allocation5 + $0x414] ss:$40 sps:$4 sm:$0xff]   ;;  %v13106_v58 = vld [vmem:[#allocation5 + $0x418] ss:$40 sps:$4 sm:$0xff]  }
  0x92   :  { %3733 = vmatpush1.bf16.msra.mxu1 %v13052_v19  ;;  %3562 = vmatprep.subr.bf16.mxu0 %v13053_v20  ;;  %v13103_v56 = vld [vmem:[#allocation5 + $0x41c] ss:$40 sps:$4 sm:$0xff]   ;;  %v13105_v57 = vld [vmem:[#allocation5 + $0x410] ss:$40 sps:$4 sm:$0xff]   ;;  %v13109_v60 = vld [vmem:[#allocation5 + $0x46c] ss:$40 sps:$4 sm:$0xff]  }
  0x93   :  { %3734 = vmatprep.subr.bf16.mxu1 %v13055_v21  ;;  %3584 = vmatprep.mubr.bf16.mxu0 %v15472_v50  ;;  %v13107_v59 = vld [vmem:[#allocation5 + $0x464] ss:$40 sps:$4 sm:$0xff]   ;;  %v13111_v61 = vld [vmem:[#allocation5 + $0x460] ss:$40 sps:$4 sm:$0xff]   ;;  %v13113_v63 = vld [vmem:[#allocation5 + $0x4b4] ss:$40 sps:$4 sm:$0xff]  }
  0x94   :  { %3756 = vmatprep.mubr.bf16.mxu1 %v15472_v50  ;;  %v13112_v62 = vld [vmem:[#allocation5 + $0x468] ss:$40 sps:$4 sm:$0xff]   ;;  %v13115_v0 = vld [vmem:[#allocation5 + $0x4bc] ss:$40 sps:$4 sm:$0xff]   ;;  %v13118_v2 = vld [vmem:[#allocation5 + $0x4b8] ss:$40 sps:$4 sm:$0xff]  }
  0x95   :  { %3563 = vmatpush1.bf16.msra.mxu0 %v13057_v22  ;;  %v13117_v1 = vld [vmem:[#allocation5 + $0x4b0] ss:$40 sps:$4 sm:$0xff]   ;;  %v13121_v3 = vld [vmem:[#allocation5 + $0x504] ss:$40 sps:$4 sm:$0xff]   ;;  %v13119_v7 = vld [vmem:[#allocation5 + $0x500] ss:$40 sps:$4 sm:$0xff]  }
  0x96   :  { %3735 = vmatpush1.bf16.msra.mxu1 %v13058_v23  ;;  %3564 = vmatprep.subr.bf16.mxu0 %v13059_v24  ;;  %v117_v4 = vld [vmem:[#allocation2] sm:$0xff]  ;;  %v124_v5 = vld [vmem:[#allocation2 + $0x38] sm:$0xff]  ;;  %v13130_v11 = vld [vmem:[#allocation5 + $0x55c] ss:$40 sps:$4 sm:$0xff]   ;;  %s11260_s3 = sshll.u32 %s15345_s6, 4  ;;  %s11261_s3 = int_to_ptr.vmem [resolvable:$true] %s11260_s3 }
  0x97   :  { %3736 = vmatprep.subr.bf16.mxu1 %v13061_v25  ;;  %v13124_v6 = vld [vmem:[#allocation5 + $0x50c] ss:$40 sps:$4 sm:$0xff]   ;;  %v13122_v8 = vld [vmem:[#allocation5 + $0x508] ss:$40 sps:$4 sm:$0xff]   ;;  %v15476_v9 = vpack.c.bf16 %v124_v5, %v117_v4  ;;  %v13128_v13 = vld [vmem:[#allocation5 + $0x558] ss:$40 sps:$4 sm:$0xff]   ;;  %p15304_p1 = scmp.lt.s32.totalorder %s11261_s3, %s11261_s3 }
  0x98   :  { %v13127_v10 = vld [vmem:[#allocation5 + $0x554] ss:$40 sps:$4 sm:$0xff]   ;;  %v13125_v12 = vld [vmem:[#allocation5 + $0x550] ss:$40 sps:$4 sm:$0xff]   ;;  %v13133_v14 = vld [vmem:[#allocation5 + $0x5a4] ss:$40 sps:$4 sm:$0xff]  }
  0x99   :  { %3565 = vmatpush1.bf16.msra.mxu0 %v13063_v26  ;;  %v13136_v15 = vld [vmem:[#allocation5 + $0x5ac] ss:$40 sps:$4 sm:$0xff]   ;;  %v13131_v16 = vld [vmem:[#allocation5 + $0x5a0] ss:$40 sps:$4 sm:$0xff]   ;;  %v13142_v19 = vld [vmem:[#allocation5 + $0x5fc] ss:$40 sps:$4 sm:$0xff]  }
  0x9a   :  { %3737 = vmatpush1.bf16.msra.mxu1 %v13064_v27  ;;  %3566 = vmatprep.subr.bf16.mxu0 %v13065_v28  ;;  %v13134_v17 = vld [vmem:[#allocation5 + $0x5a8] ss:$40 sps:$4 sm:$0xff]   ;;  %v13139_v18 = vld [vmem:[#allocation5 + $0x5f4] ss:$40 sps:$4 sm:$0xff]   ;;  %v13140_v21 = vld [vmem:[#allocation5 + $0x5f8] ss:$40 sps:$4 sm:$0xff]  }
  0x9b   :  { %3738 = vmatprep.subr.bf16.mxu1 %v13067_v29  ;;  %v13137_v20 = vld [vmem:[#allocation5 + $0x5f0] ss:$40 sps:$4 sm:$0xff]   ;;  %v13145_v22 = vld [vmem:[#allocation5 + $0x644] ss:$40 sps:$4 sm:$0xff]   ;;  %v13143_v24 = vld [vmem:[#allocation5 + $0x640] ss:$40 sps:$4 sm:$0xff]  }
  0x9c   :  { %v13148_v23 = vld [vmem:[#allocation5 + $0x64c] ss:$40 sps:$4 sm:$0xff]   ;;  %v13146_v25 = vld [vmem:[#allocation5 + $0x648] ss:$40 sps:$4 sm:$0xff]   ;;  %v13154_v27 = vld [vmem:[#allocation5 + $0x69c] ss:$40 sps:$4 sm:$0xff]  }
  0x9d   :  { %3567 = vmatpush1.bf16.msra.mxu0 %v13069_v30  ;;  %v13151_v26 = vld [vmem:[#allocation5 + $0x694] ss:$40 sps:$4 sm:$0xff]   ;;  %v13149_v28 = vld [vmem:[#allocation5 + $0x690] ss:$40 sps:$4 sm:$0xff]   ;;  %v13157_v30 = vld [vmem:[#allocation5 + $0x6e4] ss:$40 sps:$4 sm:$0xff]  }
  0x9e   :  { %3739 = vmatpush1.bf16.msra.mxu1 %v13070_v31  ;;  %3568 = vmatprep.subr.bf16.mxu0 %v13071_v32  ;;  %v13152_v29 = vld [vmem:[#allocation5 + $0x698] ss:$40 sps:$4 sm:$0xff]   ;;  %v13160_v31 = vld [vmem:[#allocation5 + $0x6ec] ss:$40 sps:$4 sm:$0xff]   ;;  %v13178_v46 = vld [vmem:[#allocation5 + $0x7dc] ss:$40 sps:$4 sm:$0xff]  }
  0x9f   :  { %3740 = vmatprep.subr.bf16.mxu1 %v13073_v33  ;;  %v120_v32 = vld [vmem:[#allocation2 + $0x18] sm:$0xff]  ;;  %v127_v33 = vld [vmem:[#allocation2 + $0x50] sm:$0xff]  ;;  %v13173_v47 = vld [vmem:[#allocation5 + $0x7d0] ss:$40 sps:$4 sm:$0xff]   ;;  %s15299_s11 = scalar_lea.vmem %s11261_s3, 256 }
  0xa0   :  { %v13203_v4 = vld [vmem:[#allocation5 + $0x960] ss:$40 sps:$4 sm:$0xff]   ;;  %p15300_p0 = scmp.ne.s32.totalorder %s11261_s3, %s15299_s11  ;;  %p15305_p2 = scmp.lt.s32.totalorder %s15299_s11, %s15299_s11 }
  0xa1   :  { %3569 = vmatpush1.bf16.msra.mxu0 %v13075_v34  ;;  %v13155_v34 = vld [vmem:[#allocation5 + $0x6e0] ss:$40 sps:$4 sm:$0xff]  }
  0xa2   :  { %3741 = vmatpush1.bf16.msra.mxu1 %v13076_v35  ;;  %3570 = vmatprep.subr.bf16.mxu0 %v13077_v36  ;;  %v13158_v35 = vld [vmem:[#allocation5 + $0x6e8] ss:$40 sps:$4 sm:$0xff]   ;;  %v15480_v36 = vpack.c.bf16 %v127_v33, %v120_v32  ;;  %v13236_v32 = vld [vmem:[#allocation5 + $0xaf8] ss:$40 sps:$4 sm:$0xff]   ;;  %v13241_v33 = vld [vmem:[#allocation5 + $0xb44] ss:$40 sps:$4 sm:$0xff]   ;;  %p15306_p3 = por %p15305_p2, %p15304_p1 }
  0xa3   :  { %3742 = vmatprep.subr.bf16.mxu1 %v13079_v37  ;;  %v13163_v37 = vld [vmem:[#allocation5 + $0x734] ss:$40 sps:$4 sm:$0xff]   ;;  %v13206_v5 = vld [vmem:[#allocation5 + $0x968] ss:$40 sps:$4 sm:$0xff]  }
  0xa4   :  { %p15307_p4 = pnand %p15306_p3, %p15300_p0 }
  0xa5   :  { %3571 = vmatpush1.bf16.msra.mxu0 %v13081_v38  ;;  %v13166_v38 = vld [vmem:[#allocation5 + $0x73c] ss:$40 sps:$4 sm:$0xff]  }
  0xa6   :  { %3743 = vmatpush1.bf16.msra.mxu1 %v13082_v39  ;;  %3572 = vmatprep.subr.bf16.mxu0 %v13083_v40  ;;  %v13161_v39 = vld [vmem:[#allocation5 + $0x730] ss:$40 sps:$4 sm:$0xff]  }
  0xa7   :  { %3744 = vmatprep.subr.bf16.mxu1 %v13085_v41  ;;  %v13164_v40 = vld [vmem:[#allocation5 + $0x738] ss:$40 sps:$4 sm:$0xff]   ;;  %v13169_v41 = vld [vmem:[#allocation5 + $0x784] ss:$40 sps:$4 sm:$0xff]  }
  0xa9   :  { %3573 = vmatpush1.bf16.msra.mxu0 %v13087_v42  ;;  %v13172_v42 = vld [vmem:[#allocation5 + $0x78c] ss:$40 sps:$4 sm:$0xff]  }
  0xaa   :  { %3745 = vmatpush1.bf16.msra.mxu1 %v13088_v43  ;;  %3574 = vmatprep.subr.bf16.mxu0 %v13089_v44  ;;  %v13167_v43 = vld [vmem:[#allocation5 + $0x780] ss:$40 sps:$4 sm:$0xff]  }
  0xab   :  { %3746 = vmatprep.subr.bf16.mxu1 %v13091_v45  ;;  %v13170_v44 = vld [vmem:[#allocation5 + $0x788] ss:$40 sps:$4 sm:$0xff]   ;;  %v13175_v45 = vld [vmem:[#allocation5 + $0x7d4] ss:$40 sps:$4 sm:$0xff]  }
  0xad   :  { %3575 = vmatpush1.bf16.msra.mxu0 %v13093_v48  ;;  %v13176_v48 = vld [vmem:[#allocation5 + $0x7d8] ss:$40 sps:$4 sm:$0xff]  }
  0xae   :  { %3747 = vmatpush1.bf16.msra.mxu1 %v13094_v49  ;;  %3576 = vmatprep.subr.bf16.mxu0 %v13095_v51  ;;  %v13181_v49 = vld [vmem:[#allocation5 + $0x824] ss:$40 sps:$4 sm:$0xff]  }
  0xaf   :  { %3748 = vmatprep.subr.bf16.mxu1 %v13097_v52  ;;  %v13184_v51 = vld [vmem:[#allocation5 + $0x82c] ss:$40 sps:$4 sm:$0xff]   ;;  %v13179_v52 = vld [vmem:[#allocation5 + $0x820] ss:$40 sps:$4 sm:$0xff]  }
  0xb1   :  { %3577 = vmatpush1.bf16.msra.mxu0 %v13099_v53  ;;  %v13182_v53 = vld [vmem:[#allocation5 + $0x828] ss:$40 sps:$4 sm:$0xff]  }
  0xb2   :  { %3749 = vmatpush1.bf16.msra.mxu1 %v13100_v54  ;;  %3578 = vmatprep.subr.bf16.mxu0 %v13101_v55  ;;  %v13187_v54 = vld [vmem:[#allocation5 + $0x874] ss:$40 sps:$4 sm:$0xff]  }
  0xb3   :  { %3750 = vmatprep.subr.bf16.mxu1 %v13103_v56  ;;  %v13190_v55 = vld [vmem:[#allocation5 + $0x87c] ss:$40 sps:$4 sm:$0xff]   ;;  %v13185_v56 = vld [vmem:[#allocation5 + $0x870] ss:$40 sps:$4 sm:$0xff]  }
  0xb5   :  { %3579 = vmatpush1.bf16.msra.mxu0 %v13105_v57  ;;  %v13188_v57 = vld [vmem:[#allocation5 + $0x878] ss:$40 sps:$4 sm:$0xff]  }
  0xb6   :  { %3751 = vmatpush1.bf16.msra.mxu1 %v13106_v58  ;;  %3580 = vmatprep.subr.bf16.mxu0 %v13107_v59  ;;  %v13193_v58 = vld [vmem:[#allocation5 + $0x8c4] ss:$40 sps:$4 sm:$0xff]  }
  0xb7   :  { %3752 = vmatprep.subr.bf16.mxu1 %v13109_v60  ;;  %v13196_v59 = vld [vmem:[#allocation5 + $0x8cc] ss:$40 sps:$4 sm:$0xff]   ;;  %v13191_v60 = vld [vmem:[#allocation5 + $0x8c0] ss:$40 sps:$4 sm:$0xff]  }
  0xb9   :  { %3581 = vmatpush1.bf16.msra.mxu0 %v13111_v61  ;;  %v13194_v61 = vld [vmem:[#allocation5 + $0x8c8] ss:$40 sps:$4 sm:$0xff]  }
  0xba   :  { %3753 = vmatpush1.bf16.msra.mxu1 %v13112_v62  ;;  %3582 = vmatprep.subr.bf16.mxu0 %v13113_v63  ;;  %v13199_v62 = vld [vmem:[#allocation5 + $0x914] ss:$40 sps:$4 sm:$0xff]  }
  0xbb   :  { %3754 = vmatprep.subr.bf16.mxu1 %v13115_v0  ;;  %v13202_v63 = vld [vmem:[#allocation5 + $0x91c] ss:$40 sps:$4 sm:$0xff]   ;;  %v13197_v0 = vld [vmem:[#allocation5 + $0x910] ss:$40 sps:$4 sm:$0xff]  }
  0xbd   :  { %3583 = vmatpush1.bf16.msra.mxu0 %v13117_v1  ;;  %v13200_v1 = vld [vmem:[#allocation5 + $0x918] ss:$40 sps:$4 sm:$0xff]  }
  0xbe   :  { %3755 = vmatpush1.bf16.msra.mxu1 %v13118_v2  ;;  %3595 = vmatprep.subr.bf16.mxu0 %v13121_v3  ;;  %v13205_v2 = vld [vmem:[#allocation5 + $0x964] ss:$40 sps:$4 sm:$0xff]  }
  0xbf   :  { %3767 = vmatprep.subr.bf16.mxu1 %v13124_v6  ;;  %v13208_v3 = vld [vmem:[#allocation5 + $0x96c] ss:$40 sps:$4 sm:$0xff]  }
  0xc0   :  { %3585 = vmatmul.mubr.bf16.vlgmr.msra.gmra.mrb[0].mxu0 %v15476_v9  ;;  %v13211_v6 = vld [vmem:[#allocation5 + $0x9b4] ss:$40 sps:$4 sm:$0xff]  }
  0xc1   :  { %3757 = vmatmul.mubr.bf16.vlgmr.msra.gmra.mrb[0].mxu1 %v15476_v9  ;;  %3596 = vmatpush1.bf16.msra.mxu0 %v13119_v7  ;;  %v13214_v7 = vld [vmem:[#allocation5 + $0x9bc] ss:$40 sps:$4 sm:$0xff]  }
  0xc2   :  { %3768 = vmatpush1.bf16.msra.mxu1 %v13122_v8  ;;  %3597 = vmatprep.subr.bf16.mxu0 %v13127_v10  ;;  %v13209_v8 = vld [vmem:[#allocation5 + $0x9b0] ss:$40 sps:$4 sm:$0xff]  }
  0xc3   :  { %3769 = vmatprep.subr.bf16.mxu1 %v13130_v11  ;;  %3627 = vmatprep.mubr.bf16.mxu0 %v15480_v36  ;;  %v13212_v10 = vld [vmem:[#allocation5 + $0x9b8] ss:$40 sps:$4 sm:$0xff]   ;;  %v13217_v11 = vld [vmem:[#allocation5 + $0xa04] ss:$40 sps:$4 sm:$0xff]  }
  0xc4   :  { %3799 = vmatprep.mubr.bf16.mxu1 %v15480_v36 }
  0xc5   :  { %3598 = vmatpush1.bf16.msra.mxu0 %v13125_v12  ;;  %v119_v12 = vld [vmem:[#allocation2 + $0x10] sm:$0xff] }
  0xc6   :  { %3770 = vmatpush1.bf16.msra.mxu1 %v13128_v13  ;;  %3599 = vmatprep.subr.bf16.mxu0 %v13133_v14  ;;  %v126_v13 = vld [vmem:[#allocation2 + $0x48] sm:$0xff]  ;;  %v13220_v14 = vld [vmem:[#allocation5 + $0xa0c] ss:$40 sps:$4 sm:$0xff]  }
  0xc7   :  { %3771 = vmatprep.subr.bf16.mxu1 %v13136_v15  ;;  %v13215_v15 = vld [vmem:[#allocation5 + $0xa00] ss:$40 sps:$4 sm:$0xff]  }
  0xc9   :  { %3600 = vmatpush1.bf16.msra.mxu0 %v13131_v16  ;;  %v13218_v16 = vld [vmem:[#allocation5 + $0xa08] ss:$40 sps:$4 sm:$0xff]  }
  0xca   :  { %3772 = vmatpush1.bf16.msra.mxu1 %v13134_v17  ;;  %3601 = vmatprep.subr.bf16.mxu0 %v13139_v18  ;;  %v15484_v17 = vpack.c.bf16 %v126_v13, %v119_v12  ;;  %v13223_v18 = vld [vmem:[#allocation5 + $0xa54] ss:$40 sps:$4 sm:$0xff]   ;;  %v13301_v12 = vld [vmem:[#allocation5 + $0xe64] ss:$40 sps:$4 sm:$0xff]  }
  0xcb   :  { %3773 = vmatprep.subr.bf16.mxu1 %v13142_v19  ;;  %v13226_v19 = vld [vmem:[#allocation5 + $0xa5c] ss:$40 sps:$4 sm:$0xff]   ;;  %v13304_v13 = vld [vmem:[#allocation5 + $0xe6c] ss:$40 sps:$4 sm:$0xff]  }
  0xcd   :  { %3602 = vmatpush1.bf16.msra.mxu0 %v13137_v20  ;;  %v122_v20 = vld [vmem:[#allocation2 + $0x28] sm:$0xff] }
  0xce   :  { %3774 = vmatpush1.bf16.msra.mxu1 %v13140_v21  ;;  %3603 = vmatprep.subr.bf16.mxu0 %v13145_v22  ;;  %v129_v21 = vld [vmem:[#allocation2 + $0x60] sm:$0xff] }
  0xcf   :  { %3775 = vmatprep.subr.bf16.mxu1 %v13148_v23  ;;  %v13221_v22 = vld [vmem:[#allocation5 + $0xa50] ss:$40 sps:$4 sm:$0xff]  }
  0xd0   :  { %v13224_v23 = vld [vmem:[#allocation5 + $0xa58] ss:$40 sps:$4 sm:$0xff]  }
  0xd1   :  { %3604 = vmatpush1.bf16.msra.mxu0 %v13143_v24  ;;  %v15488_v24 = vpack.c.bf16 %v129_v21, %v122_v20  ;;  %v13308_v20 = vld [vmem:[#allocation5 + $0xeb8] ss:$40 sps:$4 sm:$0xff]   ;;  %v121_v21 = vld [vmem:[#allocation2 + $0x20] sm:$0xff] }
  0xd2   :  { %3776 = vmatpush1.bf16.msra.mxu1 %v13146_v25  ;;  %3605 = vmatprep.subr.bf16.mxu0 %v13151_v26  ;;  %v13229_v25 = vld [vmem:[#allocation5 + $0xaa4] ss:$40 sps:$4 sm:$0xff]  }
  0xd3   :  { %3777 = vmatprep.subr.bf16.mxu1 %v13154_v27  ;;  %v13232_v26 = vld [vmem:[#allocation5 + $0xaac] ss:$40 sps:$4 sm:$0xff]   ;;  %v13227_v27 = vld [vmem:[#allocation5 + $0xaa0] ss:$40 sps:$4 sm:$0xff]  }
  0xd5   :  { %3606 = vmatpush1.bf16.msra.mxu0 %v13149_v28  ;;  %v13230_v28 = vld [vmem:[#allocation5 + $0xaa8] ss:$40 sps:$4 sm:$0xff]  }
  0xd6   :  { %3778 = vmatpush1.bf16.msra.mxu1 %v13152_v29  ;;  %3607 = vmatprep.subr.bf16.mxu0 %v13157_v30  ;;  %v13235_v29 = vld [vmem:[#allocation5 + $0xaf4] ss:$40 sps:$4 sm:$0xff]  }
  0xd7   :  { %3779 = vmatprep.subr.bf16.mxu1 %v13160_v31  ;;  %v13238_v30 = vld [vmem:[#allocation5 + $0xafc] ss:$40 sps:$4 sm:$0xff]   ;;  %v13233_v31 = vld [vmem:[#allocation5 + $0xaf0] ss:$40 sps:$4 sm:$0xff]  }
  0xd9   :  { %3608 = vmatpush1.bf16.msra.mxu0 %v13155_v34  ;;  %v13244_v34 = vld [vmem:[#allocation5 + $0xb4c] ss:$40 sps:$4 sm:$0xff]  }
  0xda   :  { %3780 = vmatpush1.bf16.msra.mxu1 %v13158_v35  ;;  %3609 = vmatprep.subr.bf16.mxu0 %v13163_v37  ;;  %v13239_v35 = vld [vmem:[#allocation5 + $0xb40] ss:$40 sps:$4 sm:$0xff]  }
  0xdb   :  { %3781 = vmatprep.subr.bf16.mxu1 %v13166_v38  ;;  %v13242_v37 = vld [vmem:[#allocation5 + $0xb48] ss:$40 sps:$4 sm:$0xff]   ;;  %v13247_v38 = vld [vmem:[#allocation5 + $0xb94] ss:$40 sps:$4 sm:$0xff]  }
  0xdd   :  { %3610 = vmatpush1.bf16.msra.mxu0 %v13161_v39  ;;  %v13250_v39 = vld [vmem:[#allocation5 + $0xb9c] ss:$40 sps:$4 sm:$0xff]  }
  0xde   :  { %3782 = vmatpush1.bf16.msra.mxu1 %v13164_v40  ;;  %3611 = vmatprep.subr.bf16.mxu0 %v13169_v41  ;;  %v13245_v40 = vld [vmem:[#allocation5 + $0xb90] ss:$40 sps:$4 sm:$0xff]  }
  0xdf   :  { %3783 = vmatprep.subr.bf16.mxu1 %v13172_v42  ;;  %v13248_v41 = vld [vmem:[#allocation5 + $0xb98] ss:$40 sps:$4 sm:$0xff]   ;;  %v13253_v42 = vld [vmem:[#allocation5 + $0xbe4] ss:$40 sps:$4 sm:$0xff]  }
  0xe1   :  { %3612 = vmatpush1.bf16.msra.mxu0 %v13167_v43  ;;  %v13256_v43 = vld [vmem:[#allocation5 + $0xbec] ss:$40 sps:$4 sm:$0xff]  }
  0xe2   :  { %3784 = vmatpush1.bf16.msra.mxu1 %v13170_v44  ;;  %3613 = vmatprep.subr.bf16.mxu0 %v13175_v45  ;;  %v13251_v44 = vld [vmem:[#allocation5 + $0xbe0] ss:$40 sps:$4 sm:$0xff]  }
  0xe3   :  { %3785 = vmatprep.subr.bf16.mxu1 %v13178_v46  ;;  %v13254_v45 = vld [vmem:[#allocation5 + $0xbe8] ss:$40 sps:$4 sm:$0xff]   ;;  %v13259_v46 = vld [vmem:[#allocation5 + $0xc34] ss:$40 sps:$4 sm:$0xff]  }
  0xe5   :  { %3614 = vmatpush1.bf16.msra.mxu0 %v13173_v47  ;;  %v13262_v47 = vld [vmem:[#allocation5 + $0xc3c] ss:$40 sps:$4 sm:$0xff]  }
  0xe6   :  { %3786 = vmatpush1.bf16.msra.mxu1 %v13176_v48  ;;  %3615 = vmatprep.subr.bf16.mxu0 %v13181_v49  ;;  %v13257_v48 = vld [vmem:[#allocation5 + $0xc30] ss:$40 sps:$4 sm:$0xff]  }
  0xe7   :  { %3787 = vmatprep.subr.bf16.mxu1 %v13184_v51  ;;  %v13260_v49 = vld [vmem:[#allocation5 + $0xc38] ss:$40 sps:$4 sm:$0xff]   ;;  %v13265_v51 = vld [vmem:[#allocation5 + $0xc84] ss:$40 sps:$4 sm:$0xff]  }
  0xe9   :  { %3616 = vmatpush1.bf16.msra.mxu0 %v13179_v52  ;;  %v13268_v52 = vld [vmem:[#allocation5 + $0xc8c] ss:$40 sps:$4 sm:$0xff]  }
  0xea   :  { %3788 = vmatpush1.bf16.msra.mxu1 %v13182_v53  ;;  %3617 = vmatprep.subr.bf16.mxu0 %v13187_v54  ;;  %v13263_v53 = vld [vmem:[#allocation5 + $0xc80] ss:$40 sps:$4 sm:$0xff]  }
  0xeb   :  { %3789 = vmatprep.subr.bf16.mxu1 %v13190_v55  ;;  %v13266_v54 = vld [vmem:[#allocation5 + $0xc88] ss:$40 sps:$4 sm:$0xff]   ;;  %v13271_v55 = vld [vmem:[#allocation5 + $0xcd4] ss:$40 sps:$4 sm:$0xff]  }
  0xed   :  { %3618 = vmatpush1.bf16.msra.mxu0 %v13185_v56  ;;  %v13274_v56 = vld [vmem:[#allocation5 + $0xcdc] ss:$40 sps:$4 sm:$0xff]  }
  0xee   :  { %3790 = vmatpush1.bf16.msra.mxu1 %v13188_v57  ;;  %3619 = vmatprep.subr.bf16.mxu0 %v13193_v58  ;;  %v13269_v57 = vld [vmem:[#allocation5 + $0xcd0] ss:$40 sps:$4 sm:$0xff]  }
  0xef   :  { %3791 = vmatprep.subr.bf16.mxu1 %v13196_v59  ;;  %v13272_v58 = vld [vmem:[#allocation5 + $0xcd8] ss:$40 sps:$4 sm:$0xff]   ;;  %v13277_v59 = vld [vmem:[#allocation5 + $0xd24] ss:$40 sps:$4 sm:$0xff]  }
  0xf1   :  { %3620 = vmatpush1.bf16.msra.mxu0 %v13191_v60  ;;  %v13280_v60 = vld [vmem:[#allocation5 + $0xd2c] ss:$40 sps:$4 sm:$0xff]  }
  0xf2   :  { %3792 = vmatpush1.bf16.msra.mxu1 %v13194_v61  ;;  %3621 = vmatprep.subr.bf16.mxu0 %v13199_v62  ;;  %v13275_v61 = vld [vmem:[#allocation5 + $0xd20] ss:$40 sps:$4 sm:$0xff]  }
  0xf3   :  { %3793 = vmatprep.subr.bf16.mxu1 %v13202_v63  ;;  %v13278_v62 = vld [vmem:[#allocation5 + $0xd28] ss:$40 sps:$4 sm:$0xff]   ;;  %v13283_v63 = vld [vmem:[#allocation5 + $0xd74] ss:$40 sps:$4 sm:$0xff]  }
  0xf5   :  { %3622 = vmatpush1.bf16.msra.mxu0 %v13197_v0  ;;  %v13286_v0 = vld [vmem:[#allocation5 + $0xd7c] ss:$40 sps:$4 sm:$0xff]  }
  0xf6   :  { %3794 = vmatpush1.bf16.msra.mxu1 %v13200_v1  ;;  %3623 = vmatprep.subr.bf16.mxu0 %v13205_v2  ;;  %v13281_v1 = vld [vmem:[#allocation5 + $0xd70] ss:$40 sps:$4 sm:$0xff]  }
  0xf7   :  { %3795 = vmatprep.subr.bf16.mxu1 %v13208_v3  ;;  %v13284_v2 = vld [vmem:[#allocation5 + $0xd78] ss:$40 sps:$4 sm:$0xff]   ;;  %v13289_v3 = vld [vmem:[#allocation5 + $0xdc4] ss:$40 sps:$4 sm:$0xff]  }
  0xf9   :  { %3624 = vmatpush1.bf16.msra.mxu0 %v13203_v4  ;;  %v13292_v4 = vld [vmem:[#allocation5 + $0xdcc] ss:$40 sps:$4 sm:$0xff]  }
  0xfa   :  { %3796 = vmatpush1.bf16.msra.mxu1 %v13206_v5  ;;  %3625 = vmatprep.subr.bf16.mxu0 %v13211_v6  ;;  %v13287_v5 = vld [vmem:[#allocation5 + $0xdc0] ss:$40 sps:$4 sm:$0xff]  }
  0xfb   :  { %3797 = vmatprep.subr.bf16.mxu1 %v13214_v7  ;;  %v13290_v6 = vld [vmem:[#allocation5 + $0xdc8] ss:$40 sps:$4 sm:$0xff]   ;;  %v13295_v7 = vld [vmem:[#allocation5 + $0xe14] ss:$40 sps:$4 sm:$0xff]  }
  0xfd   :  { %3626 = vmatpush1.bf16.msra.mxu0 %v13209_v8  ;;  %v13298_v8 = vld [vmem:[#allocation5 + $0xe1c] ss:$40 sps:$4 sm:$0xff]  }
  0xfe   :  { %3798 = vmatpush1.bf16.msra.mxu1 %v13212_v10  ;;  %3638 = vmatprep.subr.bf16.mxu0 %v13217_v11  ;;  %v13293_v10 = vld [vmem:[#allocation5 + $0xe10] ss:$40 sps:$4 sm:$0xff]  }
  0xff   :  { %3810 = vmatprep.subr.bf16.mxu1 %v13220_v14  ;;  %v13296_v11 = vld [vmem:[#allocation5 + $0xe18] ss:$40 sps:$4 sm:$0xff]  }
 0x100   :  { %3628 = vmatmul.mubr.bf16.vlgmr.msra.gmra.mrb[0].mxu0 %v15484_v17  ;;  %v13299_v14 = vld [vmem:[#allocation5 + $0xe60] ss:$40 sps:$4 sm:$0xff]  }
 0x101   :  { %3800 = vmatmul.mubr.bf16.vlgmr.msra.gmra.mrb[0].mxu1 %v15484_v17  ;;  %3639 = vmatpush1.bf16.msra.mxu0 %v13215_v15  ;;  %v13302_v15 = vld [vmem:[#allocation5 + $0xe68] ss:$40 sps:$4 sm:$0xff]  }
 0x102   :  { %3811 = vmatpush1.bf16.msra.mxu1 %v13218_v16  ;;  %3640 = vmatprep.subr.bf16.mxu0 %v13223_v18  ;;  %v13307_v16 = vld [vmem:[#allocation5 + $0xeb4] ss:$40 sps:$4 sm:$0xff]  }
 0x103   :  { %3812 = vmatprep.subr.bf16.mxu1 %v13226_v19  ;;  %3670 = vmatprep.mubr.bf16.mxu0 %v15488_v24  ;;  %v13310_v18 = vld [vmem:[#allocation5 + $0xebc] ss:$40 sps:$4 sm:$0xff]   ;;  %v13305_v19 = vld [vmem:[#allocation5 + $0xeb0] ss:$40 sps:$4 sm:$0xff]  }
 0x104   :  { %3842 = vmatprep.mubr.bf16.mxu1 %v15488_v24 }
 0x105   :  { %3641 = vmatpush1.bf16.msra.mxu0 %v13221_v22  ;;  %v128_v22 = vld [vmem:[#allocation2 + $0x58] sm:$0xff] }
 0x106   :  { %3813 = vmatpush1.bf16.msra.mxu1 %v13224_v23  ;;  %3642 = vmatprep.subr.bf16.mxu0 %v13229_v25  ;;  %v13313_v23 = vld [vmem:[#allocation5 + $0xf04] ss:$40 sps:$4 sm:$0xff]  }
 0x107   :  { %3814 = vmatprep.subr.bf16.mxu1 %v13232_v26  ;;  %v13316_v25 = vld [vmem:[#allocation5 + $0xf0c] ss:$40 sps:$4 sm:$0xff]   ;;  %v15492_v26 = vpack.c.bf16 %v128_v22, %v121_v21 }
 0x108   :  { %v13391_v21 = vld [vmem:[#allocation5 + $0x1a4] ss:$40 sps:$4 sm:$0xff]  }
 0x109   :  { %3643 = vmatpush1.bf16.msra.mxu0 %v13227_v27  ;;  %v13311_v27 = vld [vmem:[#allocation5 + $0xf00] ss:$40 sps:$4 sm:$0xff]   ;;  %v13394_v22 = vld [vmem:[#allocation5 + $0x1ac] ss:$40 sps:$4 sm:$0xff]  }
 0x10a   :  { %3815 = vmatpush1.bf16.msra.mxu1 %v13230_v28  ;;  %3644 = vmatprep.subr.bf16.mxu0 %v13235_v29  ;;  %v13314_v28 = vld [vmem:[#allocation5 + $0xf08] ss:$40 sps:$4 sm:$0xff]   ;;  %v13319_v29 = vld [vmem:[#allocation5 + $0xf54] ss:$40 sps:$4 sm:$0xff]  }
 0x10b   :  { %3816 = vmatprep.subr.bf16.mxu1 %v13238_v30  ;;  %v13322_v30 = vld [vmem:[#allocation5 + $0xf5c] ss:$40 sps:$4 sm:$0xff]  }
 0x10d   :  { %3645 = vmatpush1.bf16.msra.mxu0 %v13233_v31  ;;  %v13317_v31 = vld [vmem:[#allocation5 + $0xf50] ss:$40 sps:$4 sm:$0xff]  }
 0x10e   :  { %3817 = vmatpush1.bf16.msra.mxu1 %v13236_v32  ;;  %3646 = vmatprep.subr.bf16.mxu0 %v13241_v33  ;;  %v13320_v32 = vld [vmem:[#allocation5 + $0xf58] ss:$40 sps:$4 sm:$0xff]   ;;  %v13325_v33 = vld [vmem:[#allocation5 + $0xfa4] ss:$40 sps:$4 sm:$0xff]  }
 0x10f   :  { %3818 = vmatprep.subr.bf16.mxu1 %v13244_v34  ;;  %v13328_v34 = vld [vmem:[#allocation5 + $0xfac] ss:$40 sps:$4 sm:$0xff]  }
 0x111   :  { %3647 = vmatpush1.bf16.msra.mxu0 %v13239_v35  ;;  %v15344_v35 = vmov 0  }
 0x112   :  { %3819 = vmatpush1.bf16.msra.mxu1 %v13242_v37  ;;  %3648 = vmatprep.subr.bf16.mxu0 %v13247_v38  ;;  %v13323_v37 = vld [vmem:[#allocation5 + $0xfa0] ss:$40 sps:$4 sm:$0xff]  }
 0x113   :  { %3820 = vmatprep.subr.bf16.mxu1 %v13250_v39  ;;  %v13326_v38 = vld [vmem:[#allocation5 + $0xfa8] ss:$40 sps:$4 sm:$0xff]   ;;  %v13331_v39 = vld [vmem:[#allocation5 + $0xff4] ss:$40 sps:$4 sm:$0xff]  }
 0x115   :  { %3649 = vmatpush1.bf16.msra.mxu0 %v13245_v40  ;;  %v13334_v40 = vld [vmem:[#allocation5 + $0xffc] ss:$40 sps:$4 sm:$0xff]  }
 0x116   :  { %3821 = vmatpush1.bf16.msra.mxu1 %v13248_v41  ;;  %3650 = vmatprep.subr.bf16.mxu0 %v13253_v42  ;;  %v13329_v41 = vld [vmem:[#allocation5 + $0xff0] ss:$40 sps:$4 sm:$0xff]  }
 0x117   :  { %3822 = vmatprep.subr.bf16.mxu1 %v13256_v43  ;;  %v13332_v42 = vld [vmem:[#allocation5 + $0xff8] ss:$40 sps:$4 sm:$0xff]   ;;  %v13337_v43 = vld [vmem:[#allocation5 + $0x1044] ss:$40 sps:$4 sm:$0xff]  }
 0x119   :  { %3651 = vmatpush1.bf16.msra.mxu0 %v13251_v44  ;;  %v13340_v44 = vld [vmem:[#allocation5 + $0x104c] ss:$40 sps:$4 sm:$0xff]  }
 0x11a   :  { %3823 = vmatpush1.bf16.msra.mxu1 %v13254_v45  ;;  %3652 = vmatprep.subr.bf16.mxu0 %v13259_v46  ;;  %v13335_v45 = vld [vmem:[#allocation5 + $0x1040] ss:$40 sps:$4 sm:$0xff]  }
 0x11b   :  { %3824 = vmatprep.subr.bf16.mxu1 %v13262_v47  ;;  %v13338_v46 = vld [vmem:[#allocation5 + $0x1048] ss:$40 sps:$4 sm:$0xff]   ;;  %v13343_v47 = vld [vmem:[#allocation5 + $0x1094] ss:$40 sps:$4 sm:$0xff]  }
 0x11d   :  { %3653 = vmatpush1.bf16.msra.mxu0 %v13257_v48  ;;  %v13346_v48 = vld [vmem:[#allocation5 + $0x109c] ss:$40 sps:$4 sm:$0xff]  }
 0x11e   :  { %3825 = vmatpush1.bf16.msra.mxu1 %v13260_v49  ;;  %3654 = vmatprep.subr.bf16.mxu0 %v13265_v51  ;;  %v13341_v49 = vld [vmem:[#allocation5 + $0x1090] ss:$40 sps:$4 sm:$0xff]  }
 0x11f   :  { %3826 = vmatprep.subr.bf16.mxu1 %v13268_v52  ;;  %v13344_v51 = vld [vmem:[#allocation5 + $0x1098] ss:$40 sps:$4 sm:$0xff]   ;;  %v13349_v52 = vld [vmem:[#allocation5 + $0x10e4] ss:$40 sps:$4 sm:$0xff]  }
 0x121   :  { %3655 = vmatpush1.bf16.msra.mxu0 %v13263_v53  ;;  %v13352_v53 = vld [vmem:[#allocation5 + $0x10ec] ss:$40 sps:$4 sm:$0xff]  }
 0x122   :  { %3827 = vmatpush1.bf16.msra.mxu1 %v13266_v54  ;;  %3656 = vmatprep.subr.bf16.mxu0 %v13271_v55  ;;  %v13347_v54 = vld [vmem:[#allocation5 + $0x10e0] ss:$40 sps:$4 sm:$0xff]  }
 0x123   :  { %3828 = vmatprep.subr.bf16.mxu1 %v13274_v56  ;;  %v13350_v55 = vld [vmem:[#allocation5 + $0x10e8] ss:$40 sps:$4 sm:$0xff]   ;;  %v13355_v56 = vld [vmem:[#allocation5 + $0x1134] ss:$40 sps:$4 sm:$0xff]  }
 0x125   :  { %3657 = vmatpush1.bf16.msra.mxu0 %v13269_v57  ;;  %v13358_v57 = vld [vmem:[#allocation5 + $0x113c] ss:$40 sps:$4 sm:$0xff]  }
 0x126   :  { %3829 = vmatpush1.bf16.msra.mxu1 %v13272_v58  ;;  %3658 = vmatprep.subr.bf16.mxu0 %v13277_v59  ;;  %v13353_v58 = vld [vmem:[#allocation5 + $0x1130] ss:$40 sps:$4 sm:$0xff]  }
 0x127   :  { %3830 = vmatprep.subr.bf16.mxu1 %v13280_v60  ;;  %v13356_v59 = vld [vmem:[#allocation5 + $0x1138] ss:$40 sps:$4 sm:$0xff]  }
 0x128   :  { %v123_v60 = vld [vmem:[#allocation2 + $0x30] sm:$0xff] }
 0x129   :  { %3659 = vmatpush1.bf16.msra.mxu0 %v13275_v61  ;;  %v130_v61 = vld [vmem:[#allocation2 + $0x68] sm:$0xff] }
 0x12a   :  { %3831 = vmatpush1.bf16.msra.mxu1 %v13278_v62  ;;  %3660 = vmatprep.subr.bf16.mxu0 %v13283_v63  ;;  %v13361_v62 = vld [vmem:[#allocation5 + $0x14] ss:$40 sps:$4 sm:$0xff]  }
 0x12b   :  { %3832 = vmatprep.subr.bf16.mxu1 %v13286_v0  ;;  %v13364_v63 = vld [vmem:[#allocation5 + $0x1c] ss:$40 sps:$4 sm:$0xff]   ;;  %v15498_v0 = vpack.c.bf16 %v130_v61, %v123_v60  ;;  %v13437_v60 = vld [vmem:[#allocation5 + $0x420] ss:$40 sps:$4 sm:$0xff]  }
 0x12c   :  { %v13440_v61 = vld [vmem:[#allocation5 + $0x428] ss:$40 sps:$4 sm:$0xff]  }
 0x12d   :  { %3661 = vmatpush1.bf16.msra.mxu0 %v13281_v1  ;;  %v13359_v1 = vld [vmem:[#allocation5 + $0x10] ss:$40 sps:$4 sm:$0xff]  }
 0x12e   :  { %3833 = vmatpush1.bf16.msra.mxu1 %v13284_v2  ;;  %3662 = vmatprep.subr.bf16.mxu0 %v13289_v3  ;;  %v13362_v2 = vld [vmem:[#allocation5 + $0x18] ss:$40 sps:$4 sm:$0xff]   ;;  %v13367_v3 = vld [vmem:[#allocation5 + $0x64] ss:$40 sps:$4 sm:$0xff]  }
 0x12f   :  { %3834 = vmatprep.subr.bf16.mxu1 %v13292_v4  ;;  %v13370_v4 = vld [vmem:[#allocation5 + $0x6c] ss:$40 sps:$4 sm:$0xff]  }
 0x131   :  { %3663 = vmatpush1.bf16.msra.mxu0 %v13287_v5  ;;  %v13365_v5 = vld [vmem:[#allocation5 + $0x60] ss:$40 sps:$4 sm:$0xff]  }
 0x132   :  { %3835 = vmatpush1.bf16.msra.mxu1 %v13290_v6  ;;  %3664 = vmatprep.subr.bf16.mxu0 %v13295_v7  ;;  %v13368_v6 = vld [vmem:[#allocation5 + $0x68] ss:$40 sps:$4 sm:$0xff]   ;;  %v13373_v7 = vld [vmem:[#allocation5 + $0xb4] ss:$40 sps:$4 sm:$0xff]  }
 0x133   :  { %3836 = vmatprep.subr.bf16.mxu1 %v13298_v8  ;;  %v13376_v8 = vld [vmem:[#allocation5 + $0xbc] ss:$40 sps:$4 sm:$0xff]  }
 0x135   :  { %3665 = vmatpush1.bf16.msra.mxu0 %v13293_v10  ;;  %v13371_v10 = vld [vmem:[#allocation5 + $0xb0] ss:$40 sps:$4 sm:$0xff]  }
 0x136   :  { %3837 = vmatpush1.bf16.msra.mxu1 %v13296_v11  ;;  %3666 = vmatprep.subr.bf16.mxu0 %v13301_v12  ;;  %v13374_v11 = vld [vmem:[#allocation5 + $0xb8] ss:$40 sps:$4 sm:$0xff]   ;;  %v13379_v12 = vld [vmem:[#allocation5 + $0x104] ss:$40 sps:$4 sm:$0xff]  }
 0x137   :  { %3838 = vmatprep.subr.bf16.mxu1 %v13304_v13  ;;  %v13382_v13 = vld [vmem:[#allocation5 + $0x10c] ss:$40 sps:$4 sm:$0xff]  }
 0x139   :  { %3667 = vmatpush1.bf16.msra.mxu0 %v13299_v14  ;;  %v13377_v14 = vld [vmem:[#allocation5 + $0x100] ss:$40 sps:$4 sm:$0xff]  }
 0x13a   :  { %3839 = vmatpush1.bf16.msra.mxu1 %v13302_v15  ;;  %3668 = vmatprep.subr.bf16.mxu0 %v13307_v16  ;;  %v13380_v15 = vld [vmem:[#allocation5 + $0x108] ss:$40 sps:$4 sm:$0xff]   ;;  %v13385_v16 = vld [vmem:[#allocation5 + $0x154] ss:$40 sps:$4 sm:$0xff]  }
 0x13b   :  { %3840 = vmatprep.subr.bf16.mxu1 %v13310_v18  ;;  %v13388_v18 = vld [vmem:[#allocation5 + $0x15c] ss:$40 sps:$4 sm:$0xff]  }
 0x13d   :  { %3669 = vmatpush1.bf16.msra.mxu0 %v13305_v19  ;;  %v13383_v19 = vld [vmem:[#allocation5 + $0x150] ss:$40 sps:$4 sm:$0xff]  }
 0x13e   :  { %3841 = vmatpush1.bf16.msra.mxu1 %v13308_v20  ;;  %3681 = vmatprep.subr.bf16.mxu0 %v13313_v23  ;;  %v13386_v20 = vld [vmem:[#allocation5 + $0x158] ss:$40 sps:$4 sm:$0xff]  }
 0x13f   :  { %3853 = vmatprep.subr.bf16.mxu1 %v13316_v25  ;;  %v13389_v23 = vld [vmem:[#allocation5 + $0x1a0] ss:$40 sps:$4 sm:$0xff]  }
 0x140   :  { %3671 = vmatmul.mubr.bf16.vlgmr.msra.gmra.mrb[0].mxu0 %v15492_v26  ;;  %v13392_v25 = vld [vmem:[#allocation5 + $0x1a8] ss:$40 sps:$4 sm:$0xff]  }
 0x141   :  { %3843 = vmatmul.mubr.bf16.vlgmr.msra.gmra.mrb[0].mxu1 %v15492_v26  ;;  %3682 = vmatpush1.bf16.msra.mxu0 %v13311_v27  ;;  %v13397_v27 = vld [vmem:[#allocation5 + $0x1f4] ss:$40 sps:$4 sm:$0xff]  }
 0x142   :  { %3854 = vmatpush1.bf16.msra.mxu1 %v13314_v28  ;;  %3683 = vmatprep.subr.bf16.mxu0 %v13319_v29  ;;  %v13400_v28 = vld [vmem:[#allocation5 + $0x1fc] ss:$40 sps:$4 sm:$0xff]   ;;  %v13395_v29 = vld [vmem:[#allocation5 + $0x1f0] ss:$40 sps:$4 sm:$0xff]  }
 0x143   :  { %3855 = vmatprep.subr.bf16.mxu1 %v13322_v30  ;;  %3713 = vmatprep.mubr.bf16.mxu0 %v15344_v35  ;;  %v13398_v30 = vld [vmem:[#allocation5 + $0x1f8] ss:$40 sps:$4 sm:$0xff]  }
 0x144   :  { %3885 = vmatprep.mubr.bf16.mxu1 %v15344_v35 }
 0x145   :  { %3684 = vmatpush1.bf16.msra.mxu0 %v13317_v31  ;;  %v13403_v31 = vld [vmem:[#allocation5 + $0x244] ss:$40 sps:$4 sm:$0xff]  }
 0x146   :  { %3856 = vmatpush1.bf16.msra.mxu1 %v13320_v32  ;;  %3685 = vmatprep.subr.bf16.mxu0 %v13325_v33  ;;  %v13406_v32 = vld [vmem:[#allocation5 + $0x24c] ss:$40 sps:$4 sm:$0xff]   ;;  %v13401_v33 = vld [vmem:[#allocation5 + $0x240] ss:$40 sps:$4 sm:$0xff]  }
 0x147   :  { %3857 = vmatprep.subr.bf16.mxu1 %v13328_v34  ;;  %v13404_v34 = vld [vmem:[#allocation5 + $0x248] ss:$40 sps:$4 sm:$0xff]  }
 0x149   :  { %3686 = vmatpush1.bf16.msra.mxu0 %v13323_v37  ;;  %v13409_v37 = vld [vmem:[#allocation5 + $0x294] ss:$40 sps:$4 sm:$0xff]  }
 0x14a   :  { %3858 = vmatpush1.bf16.msra.mxu1 %v13326_v38  ;;  %3687 = vmatprep.subr.bf16.mxu0 %v13331_v39  ;;  %v13412_v38 = vld [vmem:[#allocation5 + $0x29c] ss:$40 sps:$4 sm:$0xff]   ;;  %v13407_v39 = vld [vmem:[#allocation5 + $0x290] ss:$40 sps:$4 sm:$0xff]  }
 0x14b   :  { %3859 = vmatprep.subr.bf16.mxu1 %v13334_v40  ;;  %v13410_v40 = vld [vmem:[#allocation5 + $0x298] ss:$40 sps:$4 sm:$0xff]  }
 0x14d   :  { %3688 = vmatpush1.bf16.msra.mxu0 %v13329_v41  ;;  %v13415_v41 = vld [vmem:[#allocation5 + $0x2e4] ss:$40 sps:$4 sm:$0xff]  }
 0x14e   :  { %3860 = vmatpush1.bf16.msra.mxu1 %v13332_v42  ;;  %3689 = vmatprep.subr.bf16.mxu0 %v13337_v43  ;;  %v13418_v42 = vld [vmem:[#allocation5 + $0x2ec] ss:$40 sps:$4 sm:$0xff]   ;;  %v13413_v43 = vld [vmem:[#allocation5 + $0x2e0] ss:$40 sps:$4 sm:$0xff]  }
 0x14f   :  { %3861 = vmatprep.subr.bf16.mxu1 %v13340_v44  ;;  %v13416_v44 = vld [vmem:[#allocation5 + $0x2e8] ss:$40 sps:$4 sm:$0xff]  }
 0x151   :  { %3690 = vmatpush1.bf16.msra.mxu0 %v13335_v45  ;;  %v13421_v45 = vld [vmem:[#allocation5 + $0x334] ss:$40 sps:$4 sm:$0xff]  }
 0x152   :  { %3862 = vmatpush1.bf16.msra.mxu1 %v13338_v46  ;;  %3691 = vmatprep.subr.bf16.mxu0 %v13343_v47  ;;  %v13424_v46 = vld [vmem:[#allocation5 + $0x33c] ss:$40 sps:$4 sm:$0xff]   ;;  %v13419_v47 = vld [vmem:[#allocation5 + $0x330] ss:$40 sps:$4 sm:$0xff]  }
 0x153   :  { %3863 = vmatprep.subr.bf16.mxu1 %v13346_v48  ;;  %v13422_v48 = vld [vmem:[#allocation5 + $0x338] ss:$40 sps:$4 sm:$0xff]  }
 0x155   :  { %3692 = vmatpush1.bf16.msra.mxu0 %v13341_v49  ;;  %v13427_v49 = vld [vmem:[#allocation5 + $0x384] ss:$40 sps:$4 sm:$0xff]  }
 0x156   :  { %3864 = vmatpush1.bf16.msra.mxu1 %v13344_v51  ;;  %3693 = vmatprep.subr.bf16.mxu0 %v13349_v52  ;;  %v13430_v51 = vld [vmem:[#allocation5 + $0x38c] ss:$40 sps:$4 sm:$0xff]   ;;  %v13425_v52 = vld [vmem:[#allocation5 + $0x380] ss:$40 sps:$4 sm:$0xff]  }
 0x157   :  { %3865 = vmatprep.subr.bf16.mxu1 %v13352_v53  ;;  %v13428_v53 = vld [vmem:[#allocation5 + $0x388] ss:$40 sps:$4 sm:$0xff]  }
 0x159   :  { %3694 = vmatpush1.bf16.msra.mxu0 %v13347_v54  ;;  %v13433_v54 = vld [vmem:[#allocation5 + $0x3d4] ss:$40 sps:$4 sm:$0xff]  }
 0x15a   :  { %3866 = vmatpush1.bf16.msra.mxu1 %v13350_v55  ;;  %3695 = vmatprep.subr.bf16.mxu0 %v13355_v56  ;;  %v13436_v55 = vld [vmem:[#allocation5 + $0x3dc] ss:$40 sps:$4 sm:$0xff]   ;;  %v13431_v56 = vld [vmem:[#allocation5 + $0x3d0] ss:$40 sps:$4 sm:$0xff]  }
 0x15b   :  { %3867 = vmatprep.subr.bf16.mxu1 %v13358_v57  ;;  %v13434_v57 = vld [vmem:[#allocation5 + $0x3d8] ss:$40 sps:$4 sm:$0xff]  }
 0x15d   :  { %3696 = vmatpush1.bf16.msra.mxu0 %v13353_v58  ;;  %v13439_v58 = vld [vmem:[#allocation5 + $0x424] ss:$40 sps:$4 sm:$0xff]  }
 0x15e   :  { %3868 = vmatpush1.bf16.msra.mxu1 %v13356_v59  ;;  %3896 = vmatprep.subr.bf16.mxu0 %v13361_v62  ;;  %v13442_v59 = vld [vmem:[#allocation5 + $0x42c] ss:$40 sps:$4 sm:$0xff]  }
 0x15f   :  { %4068 = vmatprep.subr.bf16.mxu1 %v13364_v63  ;;  %v13445_v62 = vld [vmem:[#allocation5 + $0x474] ss:$40 sps:$4 sm:$0xff]  }
 0x160   :  { %3714 = vmatmul.mubr.bf16.vlgmr.msra.gmra.mrb[0].mxu0 %v15498_v0  ;;  %v13448_v63 = vld [vmem:[#allocation5 + $0x47c] ss:$40 sps:$4 sm:$0xff]  }
 0x161   :  { %3886 = vmatmul.mubr.bf16.vlgmr.msra.gmra.mrb[0].mxu1 %v15498_v0  ;;  %3897 = vmatpush1.bf16.msra.mxu0 %v13359_v1  ;;  %v13443_v1 = vld [vmem:[#allocation5 + $0x470] ss:$40 sps:$4 sm:$0xff]  }
 0x162   :  { %4069 = vmatpush1.bf16.msra.mxu1 %v13362_v2  ;;  %3898 = vmatprep.subr.bf16.mxu0 %v13367_v3  ;;  %v13446_v2 = vld [vmem:[#allocation5 + $0x478] ss:$40 sps:$4 sm:$0xff]   ;;  %v13451_v3 = vld [vmem:[#allocation5 + $0x4c4] ss:$40 sps:$4 sm:$0xff]  }
 0x163   :  { %4070 = vmatprep.subr.bf16.mxu1 %v13370_v4  ;;  %3928 = vmatprep.mubr.bf16.mxu0 %v15472_v50  ;;  %v13454_v4 = vld [vmem:[#allocation5 + $0x4cc] ss:$40 sps:$4 sm:$0xff]  }
 0x164   :  { %4100 = vmatprep.mubr.bf16.mxu1 %v15472_v50 }
 0x165   :  { %3899 = vmatpush1.bf16.msra.mxu0 %v13365_v5  ;;  %v13449_v5 = vld [vmem:[#allocation5 + $0x4c0] ss:$40 sps:$4 sm:$0xff]  }
 0x166   :  { %4071 = vmatpush1.bf16.msra.mxu1 %v13368_v6  ;;  %3900 = vmatprep.subr.bf16.mxu0 %v13373_v7  ;;  %v13452_v6 = vld [vmem:[#allocation5 + $0x4c8] ss:$40 sps:$4 sm:$0xff]   ;;  %v13457_v7 = vld [vmem:[#allocation5 + $0x514] ss:$40 sps:$4 sm:$0xff]  }
 0x167   :  { %4072 = vmatprep.subr.bf16.mxu1 %v13376_v8  ;;  %v13460_v8 = vld [vmem:[#allocation5 + $0x51c] ss:$40 sps:$4 sm:$0xff]  }
 0x169   :  { %3901 = vmatpush1.bf16.msra.mxu0 %v13371_v10  ;;  %v13455_v10 = vld [vmem:[#allocation5 + $0x510] ss:$40 sps:$4 sm:$0xff]  }
 0x16a   :  { %4073 = vmatpush1.bf16.msra.mxu1 %v13374_v11  ;;  %3902 = vmatprep.subr.bf16.mxu0 %v13379_v12  ;;  %v13458_v11 = vld [vmem:[#allocation5 + $0x518] ss:$40 sps:$4 sm:$0xff]   ;;  %v13463_v12 = vld [vmem:[#allocation5 + $0x564] ss:$40 sps:$4 sm:$0xff]  }
 0x16b   :  { %4074 = vmatprep.subr.bf16.mxu1 %v13382_v13  ;;  %v13466_v13 = vld [vmem:[#allocation5 + $0x56c] ss:$40 sps:$4 sm:$0xff]  }
 0x16d   :  { %3903 = vmatpush1.bf16.msra.mxu0 %v13377_v14  ;;  %v13461_v14 = vld [vmem:[#allocation5 + $0x560] ss:$40 sps:$4 sm:$0xff]  }
 0x16e   :  { %4075 = vmatpush1.bf16.msra.mxu1 %v13380_v15  ;;  %3904 = vmatprep.subr.bf16.mxu0 %v13385_v16  ;;  %v13464_v15 = vld [vmem:[#allocation5 + $0x568] ss:$40 sps:$4 sm:$0xff]   ;;  %v13469_v16 = vld [vmem:[#allocation5 + $0x5b4] ss:$40 sps:$4 sm:$0xff]  }
 0x16f   :  { %4076 = vmatprep.subr.bf16.mxu1 %v13388_v18  ;;  %v13472_v18 = vld [vmem:[#allocation5 + $0x5bc] ss:$40 sps:$4 sm:$0xff]  }
 0x171   :  { %3905 = vmatpush1.bf16.msra.mxu0 %v13383_v19  ;;  %v13467_v19 = vld [vmem:[#allocation5 + $0x5b0] ss:$40 sps:$4 sm:$0xff]  }
 0x172   :  { %4077 = vmatpush1.bf16.msra.mxu1 %v13386_v20  ;;  %3906 = vmatprep.subr.bf16.mxu0 %v13391_v21  ;;  %v13470_v20 = vld [vmem:[#allocation5 + $0x5b8] ss:$40 sps:$4 sm:$0xff]   ;;  %v13475_v21 = vld [vmem:[#allocation5 + $0x604] ss:$40 sps:$4 sm:$0xff]  }
 0x173   :  { %4078 = vmatprep.subr.bf16.mxu1 %v13394_v22  ;;  %v13478_v22 = vld [vmem:[#allocation5 + $0x60c] ss:$40 sps:$4 sm:$0xff]  }
 0x175   :  { %3907 = vmatpush1.bf16.msra.mxu0 %v13389_v23  ;;  %v13473_v23 = vld [vmem:[#allocation5 + $0x600] ss:$40 sps:$4 sm:$0xff]  }
 0x176   :  { %4079 = vmatpush1.bf16.msra.mxu1 %v13392_v25  ;;  %3908 = vmatprep.subr.bf16.mxu0 %v13397_v27  ;;  %v13476_v25 = vld [vmem:[#allocation5 + $0x608] ss:$40 sps:$4 sm:$0xff]   ;;  %v13481_v27 = vld [vmem:[#allocation5 + $0x654] ss:$40 sps:$4 sm:$0xff]  }
 0x177   :  { %4080 = vmatprep.subr.bf16.mxu1 %v13400_v28  ;;  %v13484_v28 = vld [vmem:[#allocation5 + $0x65c] ss:$40 sps:$4 sm:$0xff]  }
 0x179   :  { %3909 = vmatpush1.bf16.msra.mxu0 %v13395_v29  ;;  %v13479_v29 = vld [vmem:[#allocation5 + $0x650] ss:$40 sps:$4 sm:$0xff]  }
 0x17a   :  { %4081 = vmatpush1.bf16.msra.mxu1 %v13398_v30  ;;  %3910 = vmatprep.subr.bf16.mxu0 %v13403_v31  ;;  %v13482_v30 = vld [vmem:[#allocation5 + $0x658] ss:$40 sps:$4 sm:$0xff]   ;;  %v13487_v31 = vld [vmem:[#allocation5 + $0x6a4] ss:$40 sps:$4 sm:$0xff]  }
 0x17b   :  { %4082 = vmatprep.subr.bf16.mxu1 %v13406_v32  ;;  %v13490_v32 = vld [vmem:[#allocation5 + $0x6ac] ss:$40 sps:$4 sm:$0xff]  }
 0x17d   :  { %3911 = vmatpush1.bf16.msra.mxu0 %v13401_v33  ;;  %v13485_v33 = vld [vmem:[#allocation5 + $0x6a0] ss:$40 sps:$4 sm:$0xff]  }
 0x17e   :  { %4083 = vmatpush1.bf16.msra.mxu1 %v13404_v34  ;;  %3912 = vmatprep.subr.bf16.mxu0 %v13409_v37  ;;  %v13488_v34 = vld [vmem:[#allocation5 + $0x6a8] ss:$40 sps:$4 sm:$0xff]   ;;  %v13493_v37 = vld [vmem:[#allocation5 + $0x6f4] ss:$40 sps:$4 sm:$0xff]  }
 0x17f   :  { %4084 = vmatprep.subr.bf16.mxu1 %v13412_v38  ;;  %v13496_v38 = vld [vmem:[#allocation5 + $0x6fc] ss:$40 sps:$4 sm:$0xff]  }
 0x181   :  { %3913 = vmatpush1.bf16.msra.mxu0 %v13407_v39  ;;  %v13491_v39 = vld [vmem:[#allocation5 + $0x6f0] ss:$40 sps:$4 sm:$0xff]  }
 0x182   :  { %4085 = vmatpush1.bf16.msra.mxu1 %v13410_v40  ;;  %3914 = vmatprep.subr.bf16.mxu0 %v13415_v41  ;;  %v13494_v40 = vld [vmem:[#allocation5 + $0x6f8] ss:$40 sps:$4 sm:$0xff]   ;;  %v13499_v41 = vld [vmem:[#allocation5 + $0x744] ss:$40 sps:$4 sm:$0xff]  }
 0x183   :  { %4086 = vmatprep.subr.bf16.mxu1 %v13418_v42  ;;  %v13502_v42 = vld [vmem:[#allocation5 + $0x74c] ss:$40 sps:$4 sm:$0xff]  }
 0x185   :  { %3915 = vmatpush1.bf16.msra.mxu0 %v13413_v43  ;;  %v13497_v43 = vld [vmem:[#allocation5 + $0x740] ss:$40 sps:$4 sm:$0xff]  }
 0x186   :  { %4087 = vmatpush1.bf16.msra.mxu1 %v13416_v44  ;;  %3916 = vmatprep.subr.bf16.mxu0 %v13421_v45  ;;  %v13500_v44 = vld [vmem:[#allocation5 + $0x748] ss:$40 sps:$4 sm:$0xff]   ;;  %v13505_v45 = vld [vmem:[#allocation5 + $0x794] ss:$40 sps:$4 sm:$0xff]  }
 0x187   :  { %4088 = vmatprep.subr.bf16.mxu1 %v13424_v46  ;;  %v13508_v46 = vld [vmem:[#allocation5 + $0x79c] ss:$40 sps:$4 sm:$0xff]  }
 0x189   :  { %3917 = vmatpush1.bf16.msra.mxu0 %v13419_v47  ;;  %v13503_v47 = vld [vmem:[#allocation5 + $0x790] ss:$40 sps:$4 sm:$0xff]  }
 0x18a   :  { %4089 = vmatpush1.bf16.msra.mxu1 %v13422_v48  ;;  %3918 = vmatprep.subr.bf16.mxu0 %v13427_v49  ;;  %v13506_v48 = vld [vmem:[#allocation5 + $0x798] ss:$40 sps:$4 sm:$0xff]   ;;  %v13511_v49 = vld [vmem:[#allocation5 + $0x7e4] ss:$40 sps:$4 sm:$0xff]  }
 0x18b   :  { %4090 = vmatprep.subr.bf16.mxu1 %v13430_v51  ;;  %v13514_v51 = vld [vmem:[#allocation5 + $0x7ec] ss:$40 sps:$4 sm:$0xff]  }
 0x18d   :  { %3919 = vmatpush1.bf16.msra.mxu0 %v13425_v52  ;;  %v13509_v52 = vld [vmem:[#allocation5 + $0x7e0] ss:$40 sps:$4 sm:$0xff]  }
 0x18e   :  { %4091 = vmatpush1.bf16.msra.mxu1 %v13428_v53  ;;  %3920 = vmatprep.subr.bf16.mxu0 %v13433_v54  ;;  %v13512_v53 = vld [vmem:[#allocation5 + $0x7e8] ss:$40 sps:$4 sm:$0xff]   ;;  %v13517_v54 = vld [vmem:[#allocation5 + $0x834] ss:$40 sps:$4 sm:$0xff]  }
 0x18f   :  { %4092 = vmatprep.subr.bf16.mxu1 %v13436_v55  ;;  %v13520_v55 = vld [vmem:[#allocation5 + $0x83c] ss:$40 sps:$4 sm:$0xff]  }
 0x191   :  { %3921 = vmatpush1.bf16.msra.mxu0 %v13431_v56  ;;  %v13515_v56 = vld [vmem:[#allocation5 + $0x830] ss:$40 sps:$4 sm:$0xff]  }
 0x192   :  { %4093 = vmatpush1.bf16.msra.mxu1 %v13434_v57  ;;  %3922 = vmatprep.subr.bf16.mxu0 %v13439_v58  ;;  %v13518_v57 = vld [vmem:[#allocation5 + $0x838] ss:$40 sps:$4 sm:$0xff]   ;;  %v13523_v58 = vld [vmem:[#allocation5 + $0x884] ss:$40 sps:$4 sm:$0xff]  }
 0x193   :  { %4094 = vmatprep.subr.bf16.mxu1 %v13442_v59  ;;  %v13526_v59 = vld [vmem:[#allocation5 + $0x88c] ss:$40 sps:$4 sm:$0xff]  }
 0x195   :  { %3923 = vmatpush1.bf16.msra.mxu0 %v13437_v60  ;;  %v13521_v60 = vld [vmem:[#allocation5 + $0x880] ss:$40 sps:$4 sm:$0xff]  }
 0x196   :  { %4095 = vmatpush1.bf16.msra.mxu1 %v13440_v61  ;;  %3924 = vmatprep.subr.bf16.mxu0 %v13445_v62  ;;  %v13524_v61 = vld [vmem:[#allocation5 + $0x888] ss:$40 sps:$4 sm:$0xff]   ;;  %v13529_v62 = vld [vmem:[#allocation5 + $0x8d4] ss:$40 sps:$4 sm:$0xff]  }
 0x197   :  { %4096 = vmatprep.subr.bf16.mxu1 %v13448_v63  ;;  %v13532_v63 = vld [vmem:[#allocation5 + $0x8dc] ss:$40 sps:$4 sm:$0xff]  }
 0x199   :  { %3925 = vmatpush1.bf16.msra.mxu0 %v13443_v1  ;;  %v13527_v1 = vld [vmem:[#allocation5 + $0x8d0] ss:$40 sps:$4 sm:$0xff]  }
 0x19a   :  { %4097 = vmatpush1.bf16.msra.mxu1 %v13446_v2  ;;  %3926 = vmatprep.subr.bf16.mxu0 %v13451_v3  ;;  %v13530_v2 = vld [vmem:[#allocation5 + $0x8d8] ss:$40 sps:$4 sm:$0xff]   ;;  %v13535_v3 = vld [vmem:[#allocation5 + $0x924] ss:$40 sps:$4 sm:$0xff]  }
 0x19b   :  { %4098 = vmatprep.subr.bf16.mxu1 %v13454_v4  ;;  %v13538_v4 = vld [vmem:[#allocation5 + $0x92c] ss:$40 sps:$4 sm:$0xff]  }
 0x19d   :  { %3927 = vmatpush1.bf16.msra.mxu0 %v13449_v5  ;;  %v13533_v5 = vld [vmem:[#allocation5 + $0x920] ss:$40 sps:$4 sm:$0xff]  }
 0x19e   :  { %4099 = vmatpush1.bf16.msra.mxu1 %v13452_v6  ;;  %3939 = vmatprep.subr.bf16.mxu0 %v13457_v7  ;;  %v13536_v6 = vld [vmem:[#allocation5 + $0x928] ss:$40 sps:$4 sm:$0xff]   ;;  %v13541_v7 = vld [vmem:[#allocation5 + $0x974] ss:$40 sps:$4 sm:$0xff]  }
 0x19f   :  { %4111 = vmatprep.subr.bf16.mxu1 %v13460_v8  ;;  %v13544_v8 = vld [vmem:[#allocation5 + $0x97c] ss:$40 sps:$4 sm:$0xff]  }
 0x1a0   :  { %3929 = vmatmul.mubr.bf16.vlgmr.msra.gmra.mrb[4].mxu0 %v15476_v9 }
 0x1a1   :  { %4101 = vmatmul.mubr.bf16.vlgmr.msra.gmra.mrb[4].mxu1 %v15476_v9  ;;  %3940 = vmatpush1.bf16.msra.mxu0 %v13455_v10  ;;  %v13539_v10 = vld [vmem:[#allocation5 + $0x970] ss:$40 sps:$4 sm:$0xff]  }
 0x1a2   :  { %4112 = vmatpush1.bf16.msra.mxu1 %v13458_v11  ;;  %3941 = vmatprep.subr.bf16.mxu0 %v13463_v12  ;;  %v13542_v11 = vld [vmem:[#allocation5 + $0x978] ss:$40 sps:$4 sm:$0xff]   ;;  %v13547_v12 = vld [vmem:[#allocation5 + $0x9c4] ss:$40 sps:$4 sm:$0xff]  }
 0x1a3   :  { %4113 = vmatprep.subr.bf16.mxu1 %v13466_v13  ;;  %3971 = vmatprep.mubr.bf16.mxu0 %v15480_v36  ;;  %v13550_v13 = vld [vmem:[#allocation5 + $0x9cc] ss:$40 sps:$4 sm:$0xff]  }
 0x1a4   :  { %4143 = vmatprep.mubr.bf16.mxu1 %v15480_v36 }
 0x1a5   :  { %3942 = vmatpush1.bf16.msra.mxu0 %v13461_v14  ;;  %v13545_v14 = vld [vmem:[#allocation5 + $0x9c0] ss:$40 sps:$4 sm:$0xff]  }
 0x1a6   :  { %4114 = vmatpush1.bf16.msra.mxu1 %v13464_v15  ;;  %3943 = vmatprep.subr.bf16.mxu0 %v13469_v16  ;;  %v13548_v15 = vld [vmem:[#allocation5 + $0x9c8] ss:$40 sps:$4 sm:$0xff]   ;;  %v13553_v16 = vld [vmem:[#allocation5 + $0xa14] ss:$40 sps:$4 sm:$0xff]  }
 0x1a7   :  { %4115 = vmatprep.subr.bf16.mxu1 %v13472_v18  ;;  %v13556_v18 = vld [vmem:[#allocation5 + $0xa1c] ss:$40 sps:$4 sm:$0xff]  }
 0x1a9   :  { %3944 = vmatpush1.bf16.msra.mxu0 %v13467_v19  ;;  %v13551_v19 = vld [vmem:[#allocation5 + $0xa10] ss:$40 sps:$4 sm:$0xff]  }
 0x1aa   :  { %4116 = vmatpush1.bf16.msra.mxu1 %v13470_v20  ;;  %3945 = vmatprep.subr.bf16.mxu0 %v13475_v21  ;;  %v13554_v20 = vld [vmem:[#allocation5 + $0xa18] ss:$40 sps:$4 sm:$0xff]   ;;  %v13559_v21 = vld [vmem:[#allocation5 + $0xa64] ss:$40 sps:$4 sm:$0xff]  }
 0x1ab   :  { %4117 = vmatprep.subr.bf16.mxu1 %v13478_v22  ;;  %v13562_v22 = vld [vmem:[#allocation5 + $0xa6c] ss:$40 sps:$4 sm:$0xff]  }
 0x1ad   :  { %3946 = vmatpush1.bf16.msra.mxu0 %v13473_v23  ;;  %v13557_v23 = vld [vmem:[#allocation5 + $0xa60] ss:$40 sps:$4 sm:$0xff]  }
 0x1ae   :  { %4118 = vmatpush1.bf16.msra.mxu1 %v13476_v25  ;;  %3947 = vmatprep.subr.bf16.mxu0 %v13481_v27  ;;  %v13560_v25 = vld [vmem:[#allocation5 + $0xa68] ss:$40 sps:$4 sm:$0xff]   ;;  %v13565_v27 = vld [vmem:[#allocation5 + $0xab4] ss:$40 sps:$4 sm:$0xff]  }
 0x1af   :  { %4119 = vmatprep.subr.bf16.mxu1 %v13484_v28  ;;  %v13568_v28 = vld [vmem:[#allocation5 + $0xabc] ss:$40 sps:$4 sm:$0xff]  }
 0x1b1   :  { %3948 = vmatpush1.bf16.msra.mxu0 %v13479_v29  ;;  %v13563_v29 = vld [vmem:[#allocation5 + $0xab0] ss:$40 sps:$4 sm:$0xff]  }
 0x1b2   :  { %4120 = vmatpush1.bf16.msra.mxu1 %v13482_v30  ;;  %3949 = vmatprep.subr.bf16.mxu0 %v13487_v31  ;;  %v13566_v30 = vld [vmem:[#allocation5 + $0xab8] ss:$40 sps:$4 sm:$0xff]   ;;  %v13571_v31 = vld [vmem:[#allocation5 + $0xb04] ss:$40 sps:$4 sm:$0xff]  }
 0x1b3   :  { %4121 = vmatprep.subr.bf16.mxu1 %v13490_v32  ;;  %v13574_v32 = vld [vmem:[#allocation5 + $0xb0c] ss:$40 sps:$4 sm:$0xff]  }
 0x1b5   :  { %3950 = vmatpush1.bf16.msra.mxu0 %v13485_v33  ;;  %v13569_v33 = vld [vmem:[#allocation5 + $0xb00] ss:$40 sps:$4 sm:$0xff]  }
 0x1b6   :  { %4122 = vmatpush1.bf16.msra.mxu1 %v13488_v34  ;;  %3951 = vmatprep.subr.bf16.mxu0 %v13493_v37  ;;  %v13572_v34 = vld [vmem:[#allocation5 + $0xb08] ss:$40 sps:$4 sm:$0xff]   ;;  %v13577_v37 = vld [vmem:[#allocation5 + $0xb54] ss:$40 sps:$4 sm:$0xff]  }
 0x1b7   :  { %4123 = vmatprep.subr.bf16.mxu1 %v13496_v38  ;;  %v13580_v38 = vld [vmem:[#allocation5 + $0xb5c] ss:$40 sps:$4 sm:$0xff]  }
 0x1b9   :  { %3952 = vmatpush1.bf16.msra.mxu0 %v13491_v39  ;;  %v13575_v39 = vld [vmem:[#allocation5 + $0xb50] ss:$40 sps:$4 sm:$0xff]  }
 0x1ba   :  { %4124 = vmatpush1.bf16.msra.mxu1 %v13494_v40  ;;  %3953 = vmatprep.subr.bf16.mxu0 %v13499_v41  ;;  %v13578_v40 = vld [vmem:[#allocation5 + $0xb58] ss:$40 sps:$4 sm:$0xff]   ;;  %v13583_v41 = vld [vmem:[#allocation5 + $0xba4] ss:$40 sps:$4 sm:$0xff]  }
 0x1bb   :  { %4125 = vmatprep.subr.bf16.mxu1 %v13502_v42  ;;  %v13586_v42 = vld [vmem:[#allocation5 + $0xbac] ss:$40 sps:$4 sm:$0xff]  }
 0x1bd   :  { %3954 = vmatpush1.bf16.msra.mxu0 %v13497_v43  ;;  %v13581_v43 = vld [vmem:[#allocation5 + $0xba0] ss:$40 sps:$4 sm:$0xff]  }
 0x1be   :  { %4126 = vmatpush1.bf16.msra.mxu1 %v13500_v44  ;;  %3955 = vmatprep.subr.bf16.mxu0 %v13505_v45  ;;  %v13584_v44 = vld [vmem:[#allocation5 + $0xba8] ss:$40 sps:$4 sm:$0xff]   ;;  %v13589_v45 = vld [vmem:[#allocation5 + $0xbf4] ss:$40 sps:$4 sm:$0xff]  }
 0x1bf   :  { %4127 = vmatprep.subr.bf16.mxu1 %v13508_v46  ;;  %v13592_v46 = vld [vmem:[#allocation5 + $0xbfc] ss:$40 sps:$4 sm:$0xff]  }
 0x1c1   :  { %3956 = vmatpush1.bf16.msra.mxu0 %v13503_v47  ;;  %v13587_v47 = vld [vmem:[#allocation5 + $0xbf0] ss:$40 sps:$4 sm:$0xff]  }
 0x1c2   :  { %4128 = vmatpush1.bf16.msra.mxu1 %v13506_v48  ;;  %3957 = vmatprep.subr.bf16.mxu0 %v13511_v49  ;;  %v13590_v48 = vld [vmem:[#allocation5 + $0xbf8] ss:$40 sps:$4 sm:$0xff]   ;;  %v13595_v49 = vld [vmem:[#allocation5 + $0xc44] ss:$40 sps:$4 sm:$0xff]  }
 0x1c3   :  { %4129 = vmatprep.subr.bf16.mxu1 %v13514_v51  ;;  %v13598_v51 = vld [vmem:[#allocation5 + $0xc4c] ss:$40 sps:$4 sm:$0xff]  }
 0x1c5   :  { %3958 = vmatpush1.bf16.msra.mxu0 %v13509_v52  ;;  %v13593_v52 = vld [vmem:[#allocation5 + $0xc40] ss:$40 sps:$4 sm:$0xff]  }
 0x1c6   :  { %4130 = vmatpush1.bf16.msra.mxu1 %v13512_v53  ;;  %3959 = vmatprep.subr.bf16.mxu0 %v13517_v54  ;;  %v13596_v53 = vld [vmem:[#allocation5 + $0xc48] ss:$40 sps:$4 sm:$0xff]   ;;  %v13601_v54 = vld [vmem:[#allocation5 + $0xc94] ss:$40 sps:$4 sm:$0xff]  }
 0x1c7   :  { %4131 = vmatprep.subr.bf16.mxu1 %v13520_v55  ;;  %v13604_v55 = vld [vmem:[#allocation5 + $0xc9c] ss:$40 sps:$4 sm:$0xff]  }
 0x1c9   :  { %3960 = vmatpush1.bf16.msra.mxu0 %v13515_v56  ;;  %v13599_v56 = vld [vmem:[#allocation5 + $0xc90] ss:$40 sps:$4 sm:$0xff]  }
 0x1ca   :  { %4132 = vmatpush1.bf16.msra.mxu1 %v13518_v57  ;;  %3961 = vmatprep.subr.bf16.mxu0 %v13523_v58  ;;  %v13602_v57 = vld [vmem:[#allocation5 + $0xc98] ss:$40 sps:$4 sm:$0xff]   ;;  %v13607_v58 = vld [vmem:[#allocation5 + $0xce4] ss:$40 sps:$4 sm:$0xff]  }
 0x1cb   :  { %4133 = vmatprep.subr.bf16.mxu1 %v13526_v59  ;;  %v13610_v59 = vld [vmem:[#allocation5 + $0xcec] ss:$40 sps:$4 sm:$0xff]  }
 0x1cd   :  { %3962 = vmatpush1.bf16.msra.mxu0 %v13521_v60  ;;  %v13605_v60 = vld [vmem:[#allocation5 + $0xce0] ss:$40 sps:$4 sm:$0xff]  }
 0x1ce   :  { %4134 = vmatpush1.bf16.msra.mxu1 %v13524_v61  ;;  %3963 = vmatprep.subr.bf16.mxu0 %v13529_v62  ;;  %v13608_v61 = vld [vmem:[#allocation5 + $0xce8] ss:$40 sps:$4 sm:$0xff]   ;;  %v13613_v62 = vld [vmem:[#allocation5 + $0xd34] ss:$40 sps:$4 sm:$0xff]  }
 0x1cf   :  { %4135 = vmatprep.subr.bf16.mxu1 %v13532_v63  ;;  %v13616_v63 = vld [vmem:[#allocation5 + $0xd3c] ss:$40 sps:$4 sm:$0xff]  }
 0x1d1   :  { %3964 = vmatpush1.bf16.msra.mxu0 %v13527_v1  ;;  %v13611_v1 = vld [vmem:[#allocation5 + $0xd30] ss:$40 sps:$4 sm:$0xff]  }
 0x1d2   :  { %4136 = vmatpush1.bf16.msra.mxu1 %v13530_v2  ;;  %3965 = vmatprep.subr.bf16.mxu0 %v13535_v3  ;;  %v13614_v2 = vld [vmem:[#allocation5 + $0xd38] ss:$40 sps:$4 sm:$0xff]   ;;  %v13619_v3 = vld [vmem:[#allocation5 + $0xd84] ss:$40 sps:$4 sm:$0xff]  }
 0x1d3   :  { %4137 = vmatprep.subr.bf16.mxu1 %v13538_v4  ;;  %v13622_v4 = vld [vmem:[#allocation5 + $0xd8c] ss:$40 sps:$4 sm:$0xff]  }
 0x1d5   :  { %3966 = vmatpush1.bf16.msra.mxu0 %v13533_v5  ;;  %v13617_v5 = vld [vmem:[#allocation5 + $0xd80] ss:$40 sps:$4 sm:$0xff]  }
 0x1d6   :  { %4138 = vmatpush1.bf16.msra.mxu1 %v13536_v6  ;;  %3967 = vmatprep.subr.bf16.mxu0 %v13541_v7  ;;  %v13620_v6 = vld [vmem:[#allocation5 + $0xd88] ss:$40 sps:$4 sm:$0xff]   ;;  %v13625_v7 = vld [vmem:[#allocation5 + $0xdd4] ss:$40 sps:$4 sm:$0xff]  }
 0x1d7   :  { %4139 = vmatprep.subr.bf16.mxu1 %v13544_v8  ;;  %v13628_v8 = vld [vmem:[#allocation5 + $0xddc] ss:$40 sps:$4 sm:$0xff]  }
 0x1d9   :  { %3968 = vmatpush1.bf16.msra.mxu0 %v13539_v10  ;;  %v13623_v10 = vld [vmem:[#allocation5 + $0xdd0] ss:$40 sps:$4 sm:$0xff]  }
 0x1da   :  { %4140 = vmatpush1.bf16.msra.mxu1 %v13542_v11  ;;  %3969 = vmatprep.subr.bf16.mxu0 %v13547_v12  ;;  %v13626_v11 = vld [vmem:[#allocation5 + $0xdd8] ss:$40 sps:$4 sm:$0xff]   ;;  %v13631_v12 = vld [vmem:[#allocation5 + $0xe24] ss:$40 sps:$4 sm:$0xff]  }
 0x1db   :  { %4141 = vmatprep.subr.bf16.mxu1 %v13550_v13  ;;  %v13634_v13 = vld [vmem:[#allocation5 + $0xe2c] ss:$40 sps:$4 sm:$0xff]  }
 0x1dd   :  { %3970 = vmatpush1.bf16.msra.mxu0 %v13545_v14  ;;  %v13629_v14 = vld [vmem:[#allocation5 + $0xe20] ss:$40 sps:$4 sm:$0xff]  }
 0x1de   :  { %4142 = vmatpush1.bf16.msra.mxu1 %v13548_v15  ;;  %3982 = vmatprep.subr.bf16.mxu0 %v13553_v16  ;;  %v13632_v15 = vld [vmem:[#allocation5 + $0xe28] ss:$40 sps:$4 sm:$0xff]   ;;  %v13637_v16 = vld [vmem:[#allocation5 + $0xe74] ss:$40 sps:$4 sm:$0xff]  }
 0x1df   :  { %4154 = vmatprep.subr.bf16.mxu1 %v13556_v18  ;;  %v13640_v18 = vld [vmem:[#allocation5 + $0xe7c] ss:$40 sps:$4 sm:$0xff]  }
 0x1e0   :  { %3972 = vmatmul.mubr.bf16.vlgmr.msra.gmra.mrb[4].mxu0 %v15484_v17 }
 0x1e1   :  { %4144 = vmatmul.mubr.bf16.vlgmr.msra.gmra.mrb[4].mxu1 %v15484_v17  ;;  %3983 = vmatpush1.bf16.msra.mxu0 %v13551_v19  ;;  %v13635_v19 = vld [vmem:[#allocation5 + $0xe70] ss:$40 sps:$4 sm:$0xff]  }
 0x1e2   :  { %4155 = vmatpush1.bf16.msra.mxu1 %v13554_v20  ;;  %3984 = vmatprep.subr.bf16.mxu0 %v13559_v21  ;;  %v13638_v20 = vld [vmem:[#allocation5 + $0xe78] ss:$40 sps:$4 sm:$0xff]   ;;  %v13643_v21 = vld [vmem:[#allocation5 + $0xec4] ss:$40 sps:$4 sm:$0xff]  }
 0x1e3   :  { %4156 = vmatprep.subr.bf16.mxu1 %v13562_v22  ;;  %4014 = vmatprep.mubr.bf16.mxu0 %v15488_v24  ;;  %v13646_v22 = vld [vmem:[#allocation5 + $0xecc] ss:$40 sps:$4 sm:$0xff]  }
 0x1e4   :  { %4186 = vmatprep.mubr.bf16.mxu1 %v15488_v24 }
 0x1e5   :  { %3985 = vmatpush1.bf16.msra.mxu0 %v13557_v23  ;;  %v13641_v23 = vld [vmem:[#allocation5 + $0xec0] ss:$40 sps:$4 sm:$0xff]  }
 0x1e6   :  { %4157 = vmatpush1.bf16.msra.mxu1 %v13560_v25  ;;  %3986 = vmatprep.subr.bf16.mxu0 %v13565_v27  ;;  %v13644_v25 = vld [vmem:[#allocation5 + $0xec8] ss:$40 sps:$4 sm:$0xff]   ;;  %v13649_v27 = vld [vmem:[#allocation5 + $0xf14] ss:$40 sps:$4 sm:$0xff]  }
 0x1e7   :  { %4158 = vmatprep.subr.bf16.mxu1 %v13568_v28  ;;  %v13652_v28 = vld [vmem:[#allocation5 + $0xf1c] ss:$40 sps:$4 sm:$0xff]  }
 0x1e9   :  { %3987 = vmatpush1.bf16.msra.mxu0 %v13563_v29  ;;  %v13647_v29 = vld [vmem:[#allocation5 + $0xf10] ss:$40 sps:$4 sm:$0xff]  }
 0x1ea   :  { %4159 = vmatpush1.bf16.msra.mxu1 %v13566_v30  ;;  %3988 = vmatprep.subr.bf16.mxu0 %v13571_v31  ;;  %v13650_v30 = vld [vmem:[#allocation5 + $0xf18] ss:$40 sps:$4 sm:$0xff]   ;;  %v13655_v31 = vld [vmem:[#allocation5 + $0xf64] ss:$40 sps:$4 sm:$0xff]  }
 0x1eb   :  { %4160 = vmatprep.subr.bf16.mxu1 %v13574_v32  ;;  %v13658_v32 = vld [vmem:[#allocation5 + $0xf6c] ss:$40 sps:$4 sm:$0xff]  }
 0x1ed   :  { %3989 = vmatpush1.bf16.msra.mxu0 %v13569_v33  ;;  %v13653_v33 = vld [vmem:[#allocation5 + $0xf60] ss:$40 sps:$4 sm:$0xff]  }
 0x1ee   :  { %4161 = vmatpush1.bf16.msra.mxu1 %v13572_v34  ;;  %3990 = vmatprep.subr.bf16.mxu0 %v13577_v37  ;;  %v13656_v34 = vld [vmem:[#allocation5 + $0xf68] ss:$40 sps:$4 sm:$0xff]   ;;  %v13661_v37 = vld [vmem:[#allocation5 + $0xfb4] ss:$40 sps:$4 sm:$0xff]  }
 0x1ef   :  { %4162 = vmatprep.subr.bf16.mxu1 %v13580_v38  ;;  %v13664_v38 = vld [vmem:[#allocation5 + $0xfbc] ss:$40 sps:$4 sm:$0xff]  }
 0x1f1   :  { %3991 = vmatpush1.bf16.msra.mxu0 %v13575_v39  ;;  %v702_v39 = vlaneseq }
 0x1f2   :  { %4163 = vmatpush1.bf16.msra.mxu1 %v13578_v40  ;;  %3992 = vmatprep.subr.bf16.mxu0 %v13583_v41  ;;  %v13659_v40 = vld [vmem:[#allocation5 + $0xfb0] ss:$40 sps:$4 sm:$0xff]  }
 0x1f3   :  { %4164 = vmatprep.subr.bf16.mxu1 %v13586_v42  ;;  %v13662_v41 = vld [vmem:[#allocation5 + $0xfb8] ss:$40 sps:$4 sm:$0xff]   ;;  %v13667_v42 = vld [vmem:[#allocation5 + $0x1004] ss:$40 sps:$4 sm:$0xff]  }
 0x1f5   :  { %3993 = vmatpush1.bf16.msra.mxu0 %v13581_v43  ;;  %v13670_v43 = vld [vmem:[#allocation5 + $0x100c] ss:$40 sps:$4 sm:$0xff]  }
 0x1f6   :  { %4165 = vmatpush1.bf16.msra.mxu1 %v13584_v44  ;;  %3994 = vmatprep.subr.bf16.mxu0 %v13589_v45  ;;  %v15516_v44 = vshrl.u32 %v702_v39, 7  ;;  %v13665_v45 = vld [vmem:[#allocation5 + $0x1000] ss:$40 sps:$4 sm:$0xff]  }
 0x1f7   :  { %4166 = vmatprep.subr.bf16.mxu1 %v13592_v46  ;;  %v13668_v46 = vld [vmem:[#allocation5 + $0x1008] ss:$40 sps:$4 sm:$0xff]  }
 0x1f8   :  { %v13692_v39 = vld [vmem:[#allocation5 + $0x1148] ss:$40 sps:$4 sm:$0xff]  }
 0x1f9   :  { %3995 = vmatpush1.bf16.msra.mxu0 %v13587_v47  ;;  %v13673_v47 = vld [vmem:[#allocation5 + $0x1054] ss:$40 sps:$4 sm:$0xff]  }
 0x1fa   :  { %4167 = vmatpush1.bf16.msra.mxu1 %v13590_v48  ;;  %3996 = vmatprep.subr.bf16.mxu0 %v13595_v49  ;;  %v13676_v48 = vld [vmem:[#allocation5 + $0x105c] ss:$40 sps:$4 sm:$0xff]   ;;  %v13671_v49 = vld [vmem:[#allocation5 + $0x1050] ss:$40 sps:$4 sm:$0xff]  }
 0x1fb   :  { %4168 = vmatprep.subr.bf16.mxu1 %v13598_v51  ;;  %v15519_v51 = vsub.s32 0, %v15516_v44 }
 0x1fd   :  { %3997 = vmatpush1.bf16.msra.mxu0 %v13593_v52  ;;  %v712_v52 = vsub.s32 2, %v15516_v44 }
 0x1fe   :  { %4169 = vmatpush1.bf16.msra.mxu1 %v13596_v53  ;;  %3998 = vmatprep.subr.bf16.mxu0 %v13601_v54  ;;  %v13674_v53 = vld [vmem:[#allocation5 + $0x1058] ss:$40 sps:$4 sm:$0xff]  }
 0x1ff   :  { %4170 = vmatprep.subr.bf16.mxu1 %v13604_v55  ;;  %v698_v54 = vld [vmem:[#allocation7] sm:$0xff]  ;;  %v15523_v55 = vsub.s32 1, %v15516_v44 }
 0x201   :  { %3999 = vmatpush1.bf16.msra.mxu0 %v13599_v56  ;;  %v716_v56 = vsub.s32 3, %v15516_v44 }
 0x202   :  { %4171 = vmatpush1.bf16.msra.mxu1 %v13602_v57  ;;  %4000 = vmatprep.subr.bf16.mxu0 %v13607_v58  ;;  %v13679_v57 = vld [vmem:[#allocation5 + $0x10a4] ss:$40 sps:$4 sm:$0xff]  }
 0x203   :  { %4172 = vmatprep.subr.bf16.mxu1 %v13610_v59  ;;  %v13682_v58 = vld [vmem:[#allocation5 + $0x10ac] ss:$40 sps:$4 sm:$0xff]   ;;  %v705_v59 = vrot.slane %v698_v54, %v15519_v51 }
 0x205   :  { %4001 = vmatpush1.bf16.msra.mxu0 %v13605_v60  ;;  %v713_v60 = vrot.slane %v698_v54, %v712_v52 }
 0x206   :  { %4173 = vmatpush1.bf16.msra.mxu1 %v13608_v61  ;;  %4002 = vmatprep.subr.bf16.mxu0 %v13613_v62  ;;  %v709_v61 = vrot.slane %v698_v54, %v15523_v55  ;;  %v717_v62 = vrot.slane %v698_v54, %v716_v56  ;;  %v13701_v54 = vld [vmem:[#allocation5 + $0x70] ss:$40 sps:$4 sm:$0xff]  }
 0x207   :  { %4174 = vmatprep.subr.bf16.mxu1 %v13616_v63  ;;  %v13677_v63 = vld [vmem:[#allocation5 + $0x10a0] ss:$40 sps:$4 sm:$0xff]  }
 0x209   :  { %4003 = vmatpush1.bf16.msra.mxu0 %v13611_v1  ;;  %v13680_v1 = vld [vmem:[#allocation5 + $0x10a8] ss:$40 sps:$4 sm:$0xff]  }
 0x20a   :  { %4175 = vmatpush1.bf16.msra.mxu1 %v13614_v2  ;;  %4004 = vmatprep.subr.bf16.mxu0 %v13619_v3  ;;  %v13685_v2 = vld [vmem:[#allocation5 + $0x10f4] ss:$40 sps:$4 sm:$0xff]  }
 0x20b   :  { %4176 = vmatprep.subr.bf16.mxu1 %v13622_v4  ;;  %v13688_v3 = vld [vmem:[#allocation5 + $0x10fc] ss:$40 sps:$4 sm:$0xff]  }
 0x20d   :  { %4005 = vmatpush1.bf16.msra.mxu0 %v13617_v5 }
 0x20e   :  { %4177 = vmatpush1.bf16.msra.mxu1 %v13620_v6  ;;  %4006 = vmatprep.subr.bf16.mxu0 %v13625_v7 }
 0x20f   :  { %4178 = vmatprep.subr.bf16.mxu1 %v13628_v8 }
 0x211   :  { %4007 = vmatpush1.bf16.msra.mxu0 %v13623_v10 }
 0x212   :  { %4179 = vmatpush1.bf16.msra.mxu1 %v13626_v11  ;;  %4008 = vmatprep.subr.bf16.mxu0 %v13631_v12 }
 0x213   :  { %4180 = vmatprep.subr.bf16.mxu1 %v13634_v13 }
 0x215   :  { %4009 = vmatpush1.bf16.msra.mxu0 %v13629_v14 }
 0x216   :  { %4181 = vmatpush1.bf16.msra.mxu1 %v13632_v15  ;;  %4010 = vmatprep.subr.bf16.mxu0 %v13637_v16  ;;  %v13683_v15 = vld [vmem:[#allocation5 + $0x10f0] ss:$40 sps:$4 sm:$0xff]  }
 0x217   :  { %4182 = vmatprep.subr.bf16.mxu1 %v13640_v18  ;;  %v13686_v16 = vld [vmem:[#allocation5 + $0x10f8] ss:$40 sps:$4 sm:$0xff]  }
 0x219   :  { %4011 = vmatpush1.bf16.msra.mxu0 %v13635_v19 }
 0x21a   :  { %4183 = vmatpush1.bf16.msra.mxu1 %v13638_v20  ;;  %4012 = vmatprep.subr.bf16.mxu0 %v13643_v21 }
 0x21b   :  { %4184 = vmatprep.subr.bf16.mxu1 %v13646_v22  ;;  %v13691_v22 = vld [vmem:[#allocation5 + $0x1144] ss:$40 sps:$4 sm:$0xff]  }
 0x21d   :  { %4013 = vmatpush1.bf16.msra.mxu0 %v13641_v23  ;;  %v13694_v23 = vld [vmem:[#allocation5 + $0x114c] ss:$40 sps:$4 sm:$0xff]  }
 0x21e   :  { %4185 = vmatpush1.bf16.msra.mxu1 %v13644_v25  ;;  %4025 = vmatprep.subr.bf16.mxu0 %v13649_v27 }
 0x21f   :  { %4197 = vmatprep.subr.bf16.mxu1 %v13652_v28 }
 0x220   :  { %4015 = vmatmul.mubr.bf16.vlgmr.msra.gmra.mrb[4].mxu0 %v15492_v26 }
 0x221   :  { %4187 = vmatmul.mubr.bf16.vlgmr.msra.gmra.mrb[4].mxu1 %v15492_v26  ;;  %4026 = vmatpush1.bf16.msra.mxu0 %v13647_v29  ;;  %v13689_v29 = vld [vmem:[#allocation5 + $0x1140] ss:$40 sps:$4 sm:$0xff]  }
 0x222   :  { %4198 = vmatpush1.bf16.msra.mxu1 %v13650_v30  ;;  %4027 = vmatprep.subr.bf16.mxu0 %v13655_v31 }
 0x223   :  { %4199 = vmatprep.subr.bf16.mxu1 %v13658_v32  ;;  %4057 = vmatprep.mubr.bf16.mxu0 %v15344_v35 }
 0x224   :  { %4229 = vmatprep.mubr.bf16.mxu1 %v15344_v35 }
 0x225   :  { %4028 = vmatpush1.bf16.msra.mxu0 %v13653_v33 }
 0x226   :  { %4200 = vmatpush1.bf16.msra.mxu1 %v13656_v34  ;;  %4029 = vmatprep.subr.bf16.mxu0 %v13661_v37 }
 0x227   :  { %4201 = vmatprep.subr.bf16.mxu1 %v13664_v38 }
 0x229   :  { %4030 = vmatpush1.bf16.msra.mxu0 %v13659_v40 }
 0x22a   :  { %4202 = vmatpush1.bf16.msra.mxu1 %v13662_v41  ;;  %4031 = vmatprep.subr.bf16.mxu0 %v13667_v42  ;;  %v13697_v42 = vld [vmem:[#allocation5 + $0x24] ss:$40 sps:$4 sm:$0xff]  }
 0x22b   :  { %4203 = vmatprep.subr.bf16.mxu1 %v13670_v43  ;;  %v13700_v43 = vld [vmem:[#allocation8 + $0x4] ss:$40 sps:$4 sm:$0xff]  }
 0x22d   :  { %4032 = vmatpush1.bf16.msra.mxu0 %v13665_v45 }
 0x22e   :  { %4204 = vmatpush1.bf16.msra.mxu1 %v13668_v46  ;;  %4033 = vmatprep.subr.bf16.mxu0 %v13673_v47  ;;  %v13695_v47 = vld [vmem:[#allocation5 + $0x20] ss:$40 sps:$4 sm:$0xff]  }
 0x22f   :  { %4205 = vmatprep.subr.bf16.mxu1 %v13676_v48  ;;  %v13698_v48 = vld [vmem:[#allocation8] ss:$40 sps:$4 sm:$0xff]  }
 0x231   :  { %4034 = vmatpush1.bf16.msra.mxu0 %v13671_v49  ;;  %v13703_v49 = vld [vmem:[#allocation5 + $0x74] ss:$40 sps:$4 sm:$0xff]  }
 0x232   :  { %4206 = vmatpush1.bf16.msra.mxu1 %v13674_v53  ;;  %4035 = vmatprep.subr.bf16.mxu0 %v13679_v57  ;;  %v13706_v53 = vld [vmem:[#allocation8 + $0x54] ss:$40 sps:$4 sm:$0xff]   ;;  %v13704_v57 = vld [vmem:[#allocation8 + $0x50] ss:$40 sps:$4 sm:$0xff]  }
 0x233   :  { %4207 = vmatprep.subr.bf16.mxu1 %v13682_v58  ;;  %v3715_v4 = vpop.f32.mrb[0].mxu0  ;;  %v13709_v58 = vld [vmem:[#allocation5 + $0xc4] ss:$40 sps:$4 sm:$0xff]  }
 0x234   :  { %v3887_v5 = vpop.f32.mrb[0].mxu1  ;;  %v12826_v6 = vadd.f32 %v3715_v4, %v705_v59  ;;  %v3717_v8 = vpop.f32.mrb[1].mxu0  ;;  %v13724_v4 = vld [vmem:[#allocation8 + $0x144] ss:$40 sps:$4 sm:$0xff]  }
 0x235   :  { %v12830_v7 = vadd.f32 %v3887_v5, %v713_v60  ;;  %v3889_v10 = vpop.f32.mrb[1].mxu1  ;;  %v12827_v11 = vadd.f32 %v3717_v8, %v709_v61  ;;  %v3719_v13 = vpop.f32.mrb[2].mxu0  ;;  %4036 = vmatpush1.bf16.msra.mxu0 %v13677_v63  ;;  %v13718_v63 = vld [vmem:[#allocation8 + $0xf4] ss:$40 sps:$4 sm:$0xff]   ;;  %v13725_v8 = vld [vmem:[#allocation5 + $0x1b0] ss:$40 sps:$4 sm:$0xff]  }
 0x236   :  { %v12831_v12 = vadd.f32 %v3889_v10, %v717_v62  ;;  %v3891_v14 = vpop.f32.mrb[2].mxu1  ;;  %4208 = vmatpush1.bf16.msra.mxu1 %v13680_v1  ;;  %v12828_v18 = vadd.f32 %v3719_v13, %v705_v59  ;;  %v3721_v20 = vpop.f32.mrb[3].mxu0  ;;  %4037 = vmatprep.subr.bf16.mxu0 %v13685_v2  ;;  %v4412_v25 = vmax.f32 %v12826_v6, 0.0  ;;  %v13712_v59 = vld [vmem:[#allocation8 + $0xa4] ss:$40 sps:$4 sm:$0xff]  }
 0x237   :  { %v12832_v19 = vadd.f32 %v3891_v14, %v713_v60  ;;  %v3893_v21 = vpop.f32.mrb[3].mxu1  ;;  %4209 = vmatprep.subr.bf16.mxu1 %v13688_v3  ;;  %v12829_v27 = vadd.f32 %v3721_v20, %v709_v61  ;;  %v4414_v30 = vmax.f32 %v12830_v7, 0.0  ;;  %v4413_v33 = vmax.f32 %v12827_v11, 0.0  ;;  %v13707_v60 = vld [vmem:[#allocation5 + $0xc0] ss:$40 sps:$4 sm:$0xff]  }
 0x238   :  { %v12833_v28 = vadd.f32 %v3893_v21, %v717_v62  ;;  %v4422_v31 = vmax.f32 %v12828_v18, 0.0  ;;  %v4415_v34 = vmax.f32 %v12831_v12, 0.0  ;;  %v13710_v61 = vld [vmem:[#allocation8 + $0xa0] ss:$40 sps:$4 sm:$0xff]   ;;  %v13716_v2 = vld [vmem:[#allocation8 + $0xf0] ss:$40 sps:$4 sm:$0xff]  }
 0x239   :  { %v4424_v32 = vmax.f32 %v12832_v19, 0.0  ;;  %v4423_v37 = vmax.f32 %v12829_v27, 0.0  ;;  %4038 = vmatpush1.bf16.msra.mxu0 %v13683_v15  ;;  %v13715_v62 = vld [vmem:[#allocation5 + $0x114] ss:$40 sps:$4 sm:$0xff]   ;;  %v13713_v1 = vld [vmem:[#allocation5 + $0x110] ss:$40 sps:$4 sm:$0xff]  }
 0x23a   :  { %v4425_v38 = vmax.f32 %v12833_v28, 0.0  ;;  %4210 = vmatpush1.bf16.msra.mxu1 %v13686_v16  ;;  %v15532_v40 = vpack.c.bf16 %v4422_v31, %v4412_v25  ;;  %4039 = vmatprep.subr.bf16.mxu0 %v13691_v22  ;;  %v13721_v3 = vld [vmem:[#allocation5 + $0x164] ss:$40 sps:$4 sm:$0xff]   ;;  %v13719_v5 = vld [vmem:[#allocation5 + $0x160] ss:$40 sps:$4 sm:$0xff]  }
 0x23b   :  { %v15534_v41 = vpack.c.bf16 %v4424_v32, %v4414_v30  ;;  %4211 = vmatprep.subr.bf16.mxu1 %v13694_v23  ;;  %v15536_v45 = vpack.c.bf16 %v4423_v37, %v4413_v33  ;;  %v13722_v6 = vld [vmem:[#allocation8 + $0x140] ss:$40 sps:$4 sm:$0xff]   ;;  %v13728_v10 = vld [vmem:[#allocation8 + $0x190] ss:$40 sps:$4 sm:$0xff]   ;;  %v13736_v12 = vld [vmem:[#allocation8 + $0x1e4] ss:$40 sps:$4 sm:$0xff]  }
 0x23c   :  { %v15538_v46 = vpack.c.bf16 %v4425_v38, %v4415_v34  ;;  %v13727_v7 = vld [vmem:[#allocation5 + $0x1b4] ss:$40 sps:$4 sm:$0xff]   ;;  %v13733_v11 = vld [vmem:[#allocation5 + $0x204] ss:$40 sps:$4 sm:$0xff]   ;;  %v13731_v13 = vld [vmem:[#allocation5 + $0x200] ss:$40 sps:$4 sm:$0xff]  }
 0x23d   :  { %4040 = vmatpush1.bf16.msra.mxu0 %v13689_v29  ;;  %v13734_v14 = vld [vmem:[#allocation8 + $0x1e0] ss:$40 sps:$4 sm:$0xff]   ;;  %v13742_v16 = vld [vmem:[#allocation8 + $0x234] ss:$40 sps:$4 sm:$0xff]   ;;  %v13740_v19 = vld [vmem:[#allocation8 + $0x230] ss:$40 sps:$4 sm:$0xff]  }
 0x23e   :  { %4212 = vmatpush1.bf16.msra.mxu1 %v13692_v39  ;;  %4240 = vmatprep.subr.bf16.mxu0 %v13697_v42  ;;  %v13739_v15 = vld [vmem:[#allocation5 + $0x254] ss:$40 sps:$4 sm:$0xff]   ;;  %v13737_v18 = vld [vmem:[#allocation5 + $0x250] ss:$40 sps:$4 sm:$0xff]   ;;  %v13745_v20 = vld [vmem:[#allocation5 + $0x2a4] ss:$40 sps:$4 sm:$0xff]  }
 0x23f   :  { %9296 = vmatprep.subr.bf16.mxu1 %v13700_v43  ;;  %v13748_v21 = vld [vmem:[#allocation8 + $0x284] ss:$40 sps:$4 sm:$0xff]   ;;  %v13743_v22 = vld [vmem:[#allocation5 + $0x2a0] ss:$40 sps:$4 sm:$0xff]  }
 0x240   :  { %4058 = vmatmul.mubr.bf16.vlgmr.msra.gmra.mrb[4].mxu0 %v15498_v0  ;;  %v13746_v23 = vld [vmem:[#allocation8 + $0x280] ss:$40 sps:$4 sm:$0xff]   ;;  %v13754_v27 = vld [vmem:[#allocation8 + $0x2d4] ss:$40 sps:$4 sm:$0xff]   ;;  %v13752_v29 = vld [vmem:[#allocation8 + $0x2d0] ss:$40 sps:$4 sm:$0xff]  }
 0x241   :  { %4230 = vmatmul.mubr.bf16.vlgmr.msra.gmra.mrb[4].mxu1 %v15498_v0  ;;  %4241 = vmatpush1.bf16.msra.mxu0 %v13695_v47  ;;  %v13751_v25 = vld [vmem:[#allocation5 + $0x2f4] ss:$40 sps:$4 sm:$0xff]   ;;  %v13749_v28 = vld [vmem:[#allocation5 + $0x2f0] ss:$40 sps:$4 sm:$0xff]   ;;  %v13757_v30 = vld [vmem:[#allocation5 + $0x344] ss:$40 sps:$4 sm:$0xff]  }
 0x242   :  { %9297 = vmatpush1.bf16.msra.mxu1 %v13698_v48  ;;  %9328 = vmatprep.mubr.bf16.mxu1 %v15536_v45  ;;  %v13760_v31 = vld [vmem:[#allocation8 + $0x324] ss:$40 sps:$4 sm:$0xff]   ;;  %v13755_v32 = vld [vmem:[#allocation5 + $0x340] ss:$40 sps:$4 sm:$0xff]  }
 0x243   :  { %4242 = vmatprep.subr.bf16.mxu0 %v13703_v49  ;;  %9298 = vmatprep.subr.bf16.mxu1 %v13706_v53  ;;  %v13758_v33 = vld [vmem:[#allocation8 + $0x320] ss:$40 sps:$4 sm:$0xff]   ;;  %v13766_v37 = vld [vmem:[#allocation8 + $0x374] ss:$40 sps:$4 sm:$0xff]   ;;  %v13764_v39 = vld [vmem:[#allocation8 + $0x370] ss:$40 sps:$4 sm:$0xff]  }
 0x244   :  { %4272 = vmatprep.mubr.bf16.mxu0 %v15472_v50  ;;  %v13730_v50 = vld [vmem:[#allocation8 + $0x194] ss:$40 sps:$4 sm:$0xff]   ;;  %v13761_v38 = vld [vmem:[#allocation5 + $0x390] ss:$40 sps:$4 sm:$0xff]  }
 0x245   :  { %4243 = vmatpush1.bf16.msra.mxu0 %v13701_v54  ;;  %v13763_v34 = vld [vmem:[#allocation5 + $0x394] ss:$40 sps:$4 sm:$0xff]   ;;  %v13769_v42 = vld [vmem:[#allocation5 + $0x3e4] ss:$40 sps:$4 sm:$0xff]   ;;  %v13767_v47 = vld [vmem:[#allocation5 + $0x3e0] ss:$40 sps:$4 sm:$0xff]  }
 0x246   :  { %9299 = vmatpush1.bf16.msra.mxu1 %v13704_v57  ;;  %4244 = vmatprep.subr.bf16.mxu0 %v13709_v58  ;;  %v13772_v43 = vld [vmem:[#allocation8 + $0x3c4] ss:$40 sps:$4 sm:$0xff]   ;;  %v13770_v48 = vld [vmem:[#allocation8 + $0x3c0] ss:$40 sps:$4 sm:$0xff]   ;;  %v13778_v53 = vld [vmem:[#allocation8 + $0x414] ss:$40 sps:$4 sm:$0xff]  }
 0x247   :  { %9300 = vmatprep.subr.bf16.mxu1 %v13712_v59  ;;  %v13775_v49 = vld [vmem:[#allocation5 + $0x434] ss:$40 sps:$4 sm:$0xff]   ;;  %v13773_v54 = vld [vmem:[#allocation5 + $0x430] ss:$40 sps:$4 sm:$0xff]   ;;  %v13781_v58 = vld [vmem:[#allocation5 + $0x484] ss:$40 sps:$4 sm:$0xff]  }
 0x248   :  { %v13776_v57 = vld [vmem:[#allocation8 + $0x410] ss:$40 sps:$4 sm:$0xff]   ;;  %v13784_v59 = vld [vmem:[#allocation8 + $0x464] ss:$40 sps:$4 sm:$0xff]  }
 0x249   :  { %4245 = vmatpush1.bf16.msra.mxu0 %v13707_v60  ;;  %v13779_v60 = vld [vmem:[#allocation5 + $0x480] ss:$40 sps:$4 sm:$0xff]  }
 0x24a   :  { %9301 = vmatpush1.bf16.msra.mxu1 %v13710_v61  ;;  %4246 = vmatprep.subr.bf16.mxu0 %v13715_v62  ;;  %v13782_v61 = vld [vmem:[#allocation8 + $0x460] ss:$40 sps:$4 sm:$0xff]  }
 0x24b   :  { %9302 = vmatprep.subr.bf16.mxu1 %v13718_v63  ;;  %v13787_v62 = vld [vmem:[#allocation5 + $0x4d4] ss:$40 sps:$4 sm:$0xff]  }
 0x24c   :  { %v13790_v63 = vld [vmem:[#allocation8 + $0x4b4] ss:$40 sps:$4 sm:$0xff]  }
 0x24d   :  { %4247 = vmatpush1.bf16.msra.mxu0 %v13713_v1  ;;  %v13785_v1 = vld [vmem:[#allocation5 + $0x4d0] ss:$40 sps:$4 sm:$0xff]  }
 0x24e   :  { %9303 = vmatpush1.bf16.msra.mxu1 %v13716_v2  ;;  %4248 = vmatprep.subr.bf16.mxu0 %v13721_v3  ;;  %v13788_v2 = vld [vmem:[#allocation8 + $0x4b0] ss:$40 sps:$4 sm:$0xff]  }
 0x24f   :  { %9304 = vmatprep.subr.bf16.mxu1 %v13724_v4  ;;  %v13793_v3 = vld [vmem:[#allocation5 + $0x524] ss:$40 sps:$4 sm:$0xff]  }
 0x250   :  { %v13796_v4 = vld [vmem:[#allocation8 + $0x504] ss:$40 sps:$4 sm:$0xff]  }
 0x251   :  { %4249 = vmatpush1.bf16.msra.mxu0 %v13719_v5  ;;  %v13791_v5 = vld [vmem:[#allocation5 + $0x520] ss:$40 sps:$4 sm:$0xff]  }
 0x252   :  { %9305 = vmatpush1.bf16.msra.mxu1 %v13722_v6  ;;  %4250 = vmatprep.subr.bf16.mxu0 %v13727_v7  ;;  %v13794_v6 = vld [vmem:[#allocation8 + $0x500] ss:$40 sps:$4 sm:$0xff]  }
 0x253   :  { %9306 = vmatprep.subr.bf16.mxu1 %v13730_v50  ;;  %v13799_v7 = vld [vmem:[#allocation5 + $0x574] ss:$40 sps:$4 sm:$0xff]  }
 0x254   :  { %v13802_v50 = vld [vmem:[#allocation8 + $0x554] ss:$40 sps:$4 sm:$0xff]  }
 0x255   :  { %4251 = vmatpush1.bf16.msra.mxu0 %v13725_v8  ;;  %v13797_v8 = vld [vmem:[#allocation5 + $0x570] ss:$40 sps:$4 sm:$0xff]  }
 0x256   :  { %9307 = vmatpush1.bf16.msra.mxu1 %v13728_v10  ;;  %4252 = vmatprep.subr.bf16.mxu0 %v13733_v11  ;;  %v13800_v10 = vld [vmem:[#allocation8 + $0x550] ss:$40 sps:$4 sm:$0xff]  }
 0x257   :  { %9308 = vmatprep.subr.bf16.mxu1 %v13736_v12  ;;  %v13805_v11 = vld [vmem:[#allocation5 + $0x5c4] ss:$40 sps:$4 sm:$0xff]  }
 0x258   :  { %v13808_v12 = vld [vmem:[#allocation8 + $0x5a4] ss:$40 sps:$4 sm:$0xff]  }
 0x259   :  { %4253 = vmatpush1.bf16.msra.mxu0 %v13731_v13  ;;  %v13803_v13 = vld [vmem:[#allocation5 + $0x5c0] ss:$40 sps:$4 sm:$0xff]  }
 0x25a   :  { %9309 = vmatpush1.bf16.msra.mxu1 %v13734_v14  ;;  %4254 = vmatprep.subr.bf16.mxu0 %v13739_v15  ;;  %v13806_v14 = vld [vmem:[#allocation8 + $0x5a0] ss:$40 sps:$4 sm:$0xff]  }
 0x25b   :  { %9310 = vmatprep.subr.bf16.mxu1 %v13742_v16  ;;  %v13811_v15 = vld [vmem:[#allocation5 + $0x614] ss:$40 sps:$4 sm:$0xff]  }
 0x25c   :  { %v13814_v16 = vld [vmem:[#allocation8 + $0x5f4] ss:$40 sps:$4 sm:$0xff]  }
 0x25d   :  { %4255 = vmatpush1.bf16.msra.mxu0 %v13737_v18  ;;  %v13812_v18 = vld [vmem:[#allocation8 + $0x5f0] ss:$40 sps:$4 sm:$0xff]  }
 0x25e   :  { %9311 = vmatpush1.bf16.msra.mxu1 %v13740_v19  ;;  %4256 = vmatprep.subr.bf16.mxu0 %v13745_v20  ;;  %v13817_v19 = vld [vmem:[#allocation5 + $0x664] ss:$40 sps:$4 sm:$0xff]  }
 0x25f   :  { %9312 = vmatprep.subr.bf16.mxu1 %v13748_v21  ;;  %v13820_v20 = vld [vmem:[#allocation8 + $0x644] ss:$40 sps:$4 sm:$0xff]   ;;  %v13815_v21 = vld [vmem:[#allocation5 + $0x660] ss:$40 sps:$4 sm:$0xff]  }
 0x261   :  { %4257 = vmatpush1.bf16.msra.mxu0 %v13743_v22  ;;  %v13823_v22 = vld [vmem:[#allocation5 + $0x6b4] ss:$40 sps:$4 sm:$0xff]  }
 0x262   :  { %9313 = vmatpush1.bf16.msra.mxu1 %v13746_v23  ;;  %4258 = vmatprep.subr.bf16.mxu0 %v13751_v25  ;;  %v13826_v23 = vld [vmem:[#allocation8 + $0x694] ss:$40 sps:$4 sm:$0xff]   ;;  %v13821_v25 = vld [vmem:[#allocation5 + $0x6b0] ss:$40 sps:$4 sm:$0xff]  }
 0x263   :  { %9314 = vmatprep.subr.bf16.mxu1 %v13754_v27  ;;  %v13824_v27 = vld [vmem:[#allocation8 + $0x690] ss:$40 sps:$4 sm:$0xff]  }
 0x265   :  { %4259 = vmatpush1.bf16.msra.mxu0 %v13749_v28  ;;  %v13829_v28 = vld [vmem:[#allocation5 + $0x704] ss:$40 sps:$4 sm:$0xff]  }
 0x266   :  { %9315 = vmatpush1.bf16.msra.mxu1 %v13752_v29  ;;  %4260 = vmatprep.subr.bf16.mxu0 %v13757_v30  ;;  %v13832_v29 = vld [vmem:[#allocation8 + $0x6e4] ss:$40 sps:$4 sm:$0xff]   ;;  %v13827_v30 = vld [vmem:[#allocation5 + $0x700] ss:$40 sps:$4 sm:$0xff]  }
 0x267   :  { %9316 = vmatprep.subr.bf16.mxu1 %v13760_v31  ;;  %v13830_v31 = vld [vmem:[#allocation8 + $0x6e0] ss:$40 sps:$4 sm:$0xff]  }
 0x269   :  { %4261 = vmatpush1.bf16.msra.mxu0 %v13755_v32  ;;  %v13835_v32 = vld [vmem:[#allocation5 + $0x754] ss:$40 sps:$4 sm:$0xff]  }
 0x26a   :  { %9317 = vmatpush1.bf16.msra.mxu1 %v13758_v33  ;;  %4262 = vmatprep.subr.bf16.mxu0 %v13763_v34  ;;  %v13838_v33 = vld [vmem:[#allocation8 + $0x734] ss:$40 sps:$4 sm:$0xff]   ;;  %v13833_v34 = vld [vmem:[#allocation5 + $0x750] ss:$40 sps:$4 sm:$0xff]  }
 0x26b   :  { %9318 = vmatprep.subr.bf16.mxu1 %v13766_v37  ;;  %v13836_v37 = vld [vmem:[#allocation8 + $0x730] ss:$40 sps:$4 sm:$0xff]  }
 0x26d   :  { %4263 = vmatpush1.bf16.msra.mxu0 %v13761_v38  ;;  %v13841_v38 = vld [vmem:[#allocation5 + $0x7a4] ss:$40 sps:$4 sm:$0xff]  }
 0x26e   :  { %9319 = vmatpush1.bf16.msra.mxu1 %v13764_v39  ;;  %4264 = vmatprep.subr.bf16.mxu0 %v13769_v42  ;;  %v13844_v39 = vld [vmem:[#allocation8 + $0x784] ss:$40 sps:$4 sm:$0xff]   ;;  %v13839_v42 = vld [vmem:[#allocation5 + $0x7a0] ss:$40 sps:$4 sm:$0xff]  }
 0x26f   :  { %9320 = vmatprep.subr.bf16.mxu1 %v13772_v43  ;;  %v13842_v43 = vld [vmem:[#allocation8 + $0x780] ss:$40 sps:$4 sm:$0xff]  }
 0x271   :  { %4265 = vmatpush1.bf16.msra.mxu0 %v13767_v47  ;;  %v13847_v47 = vld [vmem:[#allocation5 + $0x7f4] ss:$40 sps:$4 sm:$0xff]  }
 0x272   :  { %9321 = vmatpush1.bf16.msra.mxu1 %v13770_v48  ;;  %4266 = vmatprep.subr.bf16.mxu0 %v13775_v49  ;;  %v13850_v48 = vld [vmem:[#allocation8 + $0x7d4] ss:$40 sps:$4 sm:$0xff]   ;;  %v13845_v49 = vld [vmem:[#allocation5 + $0x7f0] ss:$40 sps:$4 sm:$0xff]  }
 0x273   :  { %9322 = vmatprep.subr.bf16.mxu1 %v13778_v53  ;;  %v13848_v53 = vld [vmem:[#allocation8 + $0x7d0] ss:$40 sps:$4 sm:$0xff]  }
 0x275   :  { %4267 = vmatpush1.bf16.msra.mxu0 %v13773_v54  ;;  %v13853_v54 = vld [vmem:[#allocation5 + $0x844] ss:$40 sps:$4 sm:$0xff]  }
 0x276   :  { %9323 = vmatpush1.bf16.msra.mxu1 %v13776_v57  ;;  %4268 = vmatprep.subr.bf16.mxu0 %v13781_v58  ;;  %v13856_v57 = vld [vmem:[#allocation8 + $0x824] ss:$40 sps:$4 sm:$0xff]   ;;  %v13851_v58 = vld [vmem:[#allocation5 + $0x840] ss:$40 sps:$4 sm:$0xff]  }
 0x277   :  { %9324 = vmatprep.subr.bf16.mxu1 %v13784_v59  ;;  %v13854_v59 = vld [vmem:[#allocation8 + $0x820] ss:$40 sps:$4 sm:$0xff]  }
 0x279   :  { %4269 = vmatpush1.bf16.msra.mxu0 %v13779_v60  ;;  %v13859_v60 = vld [vmem:[#allocation5 + $0x894] ss:$40 sps:$4 sm:$0xff]  }
 0x27a   :  { %9325 = vmatpush1.bf16.msra.mxu1 %v13782_v61  ;;  %4270 = vmatprep.subr.bf16.mxu0 %v13787_v62  ;;  %v13862_v61 = vld [vmem:[#allocation8 + $0x874] ss:$40 sps:$4 sm:$0xff]   ;;  %v13857_v62 = vld [vmem:[#allocation5 + $0x890] ss:$40 sps:$4 sm:$0xff]  }
 0x27b   :  { %9326 = vmatprep.subr.bf16.mxu1 %v13790_v63  ;;  %v13860_v63 = vld [vmem:[#allocation8 + $0x870] ss:$40 sps:$4 sm:$0xff]  }
 0x27d   :  { %4271 = vmatpush1.bf16.msra.mxu0 %v13785_v1  ;;  %v13865_v1 = vld [vmem:[#allocation5 + $0x8e4] ss:$40 sps:$4 sm:$0xff]  }
 0x27e   :  { %9327 = vmatpush1.bf16.msra.mxu1 %v13788_v2  ;;  %4283 = vmatprep.subr.bf16.mxu0 %v13793_v3  ;;  %v13868_v2 = vld [vmem:[#allocation8 + $0x8c4] ss:$40 sps:$4 sm:$0xff]   ;;  %v13863_v3 = vld [vmem:[#allocation5 + $0x8e0] ss:$40 sps:$4 sm:$0xff]  }
 0x27f   :  { %9339 = vmatprep.subr.bf16.mxu1 %v13796_v4  ;;  %v13866_v4 = vld [vmem:[#allocation8 + $0x8c0] ss:$40 sps:$4 sm:$0xff]  }
 0x280   :  { %4273 = vmatmul.mubr.bf16.vlgmr.msra.gmra.mrb[8].mxu0 %v15476_v9  ;;  %v13809_v9 = vld [vmem:[#allocation5 + $0x610] ss:$40 sps:$4 sm:$0xff]  }
 0x281   :  { %9329 = vmatmul.mubr.bf16.vlgmr.msra.gmra.mrb[8].mxu1 %v15532_v40  ;;  %4284 = vmatpush1.bf16.msra.mxu0 %v13791_v5  ;;  %v13871_v5 = vld [vmem:[#allocation5 + $0x934] ss:$40 sps:$4 sm:$0xff]  }
 0x282   :  { %9340 = vmatpush1.bf16.msra.mxu1 %v13794_v6  ;;  %9371 = vmatprep.mubr.bf16.mxu1 %v15538_v46  ;;  %v13874_v6 = vld [vmem:[#allocation8 + $0x914] ss:$40 sps:$4 sm:$0xff]  }
 0x283   :  { %4285 = vmatprep.subr.bf16.mxu0 %v13799_v7  ;;  %9341 = vmatprep.subr.bf16.mxu1 %v13802_v50  ;;  %v13869_v7 = vld [vmem:[#allocation5 + $0x930] ss:$40 sps:$4 sm:$0xff]  }
 0x284   :  { %4315 = vmatprep.mubr.bf16.mxu0 %v15480_v36  ;;  %v13818_v36 = vld [vmem:[#allocation8 + $0x640] ss:$40 sps:$4 sm:$0xff]   ;;  %v13872_v50 = vld [vmem:[#allocation8 + $0x910] ss:$40 sps:$4 sm:$0xff]  }
 0x285   :  { %4286 = vmatpush1.bf16.msra.mxu0 %v13797_v8  ;;  %v13877_v8 = vld [vmem:[#allocation5 + $0x984] ss:$40 sps:$4 sm:$0xff]  }
 0x286   :  { %9342 = vmatpush1.bf16.msra.mxu1 %v13800_v10  ;;  %4287 = vmatprep.subr.bf16.mxu0 %v13805_v11  ;;  %v13880_v10 = vld [vmem:[#allocation8 + $0x964] ss:$40 sps:$4 sm:$0xff]   ;;  %v13875_v11 = vld [vmem:[#allocation5 + $0x980] ss:$40 sps:$4 sm:$0xff]  }
 0x287   :  { %9343 = vmatprep.subr.bf16.mxu1 %v13808_v12  ;;  %v13878_v12 = vld [vmem:[#allocation8 + $0x960] ss:$40 sps:$4 sm:$0xff]  }
 0x289   :  { %4288 = vmatpush1.bf16.msra.mxu0 %v13803_v13  ;;  %v13883_v13 = vld [vmem:[#allocation5 + $0x9d4] ss:$40 sps:$4 sm:$0xff]  }
 0x28a   :  { %9344 = vmatpush1.bf16.msra.mxu1 %v13806_v14  ;;  %4289 = vmatprep.subr.bf16.mxu0 %v13811_v15  ;;  %v13886_v14 = vld [vmem:[#allocation8 + $0x9b4] ss:$40 sps:$4 sm:$0xff]   ;;  %v13881_v15 = vld [vmem:[#allocation5 + $0x9d0] ss:$40 sps:$4 sm:$0xff]  }
 0x28b   :  { %9345 = vmatprep.subr.bf16.mxu1 %v13814_v16  ;;  %v13884_v16 = vld [vmem:[#allocation8 + $0x9b0] ss:$40 sps:$4 sm:$0xff]  }
 0x28d   :  { %4290 = vmatpush1.bf16.msra.mxu0 %v13809_v9  ;;  %v13889_v9 = vld [vmem:[#allocation5 + $0xa24] ss:$40 sps:$4 sm:$0xff]  }
 0x28e   :  { %9346 = vmatpush1.bf16.msra.mxu1 %v13812_v18  ;;  %4291 = vmatprep.subr.bf16.mxu0 %v13817_v19  ;;  %v13913_v18 = vld [vmem:[#allocation8 + $0xa04] ss:$40 sps:$4 sm:$0xff]   ;;  %v13887_v19 = vld [vmem:[#allocation5 + $0xa20] ss:$40 sps:$4 sm:$0xff]  }
 0x28f   :  { %9347 = vmatprep.subr.bf16.mxu1 %v13820_v20  ;;  %v13911_v20 = vld [vmem:[#allocation8 + $0xa00] ss:$40 sps:$4 sm:$0xff]  }
 0x291   :  { %4292 = vmatpush1.bf16.msra.mxu0 %v13815_v21  ;;  %v13892_v21 = vld [vmem:[#allocation5 + $0xa74] ss:$40 sps:$4 sm:$0xff]  }
 0x292   :  { %9348 = vmatpush1.bf16.msra.mxu1 %v13818_v36  ;;  %4293 = vmatprep.subr.bf16.mxu0 %v13823_v22  ;;  %v13919_v36 = vld [vmem:[#allocation8 + $0xa54] ss:$40 sps:$4 sm:$0xff]   ;;  %v13890_v22 = vld [vmem:[#allocation5 + $0xa70] ss:$40 sps:$4 sm:$0xff]  }
 0x293   :  { %9349 = vmatprep.subr.bf16.mxu1 %v13826_v23  ;;  %v13917_v23 = vld [vmem:[#allocation8 + $0xa50] ss:$40 sps:$4 sm:$0xff]  }
 0x295   :  { %4294 = vmatpush1.bf16.msra.mxu0 %v13821_v25  ;;  %v13895_v25 = vld [vmem:[#allocation5 + $0xac4] ss:$40 sps:$4 sm:$0xff]  }
 0x296   :  { %9350 = vmatpush1.bf16.msra.mxu1 %v13824_v27  ;;  %4295 = vmatprep.subr.bf16.mxu0 %v13829_v28  ;;  %v13925_v27 = vld [vmem:[#allocation8 + $0xaa4] ss:$40 sps:$4 sm:$0xff]   ;;  %v13893_v28 = vld [vmem:[#allocation5 + $0xac0] ss:$40 sps:$4 sm:$0xff]  }
 0x297   :  { %9351 = vmatprep.subr.bf16.mxu1 %v13832_v29  ;;  %v13923_v29 = vld [vmem:[#allocation8 + $0xaa0] ss:$40 sps:$4 sm:$0xff]  }
 0x299   :  { %4296 = vmatpush1.bf16.msra.mxu0 %v13827_v30  ;;  %v13898_v30 = vld [vmem:[#allocation5 + $0xb14] ss:$40 sps:$4 sm:$0xff]  }
 0x29a   :  { %9352 = vmatpush1.bf16.msra.mxu1 %v13830_v31  ;;  %4297 = vmatprep.subr.bf16.mxu0 %v13835_v32  ;;  %v13931_v31 = vld [vmem:[#allocation8 + $0xaf4] ss:$40 sps:$4 sm:$0xff]   ;;  %v13896_v32 = vld [vmem:[#allocation5 + $0xb10] ss:$40 sps:$4 sm:$0xff]  }
 0x29b   :  { %9353 = vmatprep.subr.bf16.mxu1 %v13838_v33  ;;  %v13929_v33 = vld [vmem:[#allocation8 + $0xaf0] ss:$40 sps:$4 sm:$0xff]  }
 0x29d   :  { %4298 = vmatpush1.bf16.msra.mxu0 %v13833_v34  ;;  %v13901_v34 = vld [vmem:[#allocation5 + $0xb64] ss:$40 sps:$4 sm:$0xff]  }
 0x29e   :  { %9354 = vmatpush1.bf16.msra.mxu1 %v13836_v37  ;;  %4299 = vmatprep.subr.bf16.mxu0 %v13841_v38  ;;  %v13899_v37 = vld [vmem:[#allocation5 + $0xb60] ss:$40 sps:$4 sm:$0xff]  }
 0x29f   :  { %9355 = vmatprep.subr.bf16.mxu1 %v13844_v39  ;;  %v13935_v38 = vld [vmem:[#allocation8 + $0xb40] ss:$40 sps:$4 sm:$0xff]  }
 0x2a0   :  { %v13904_v39 = vld [vmem:[#allocation5 + $0xbb4] ss:$40 sps:$4 sm:$0xff]  }
 0x2a1   :  { %4300 = vmatpush1.bf16.msra.mxu0 %v13839_v42  ;;  %v13943_v42 = vld [vmem:[#allocation8 + $0xb94] ss:$40 sps:$4 sm:$0xff]  }
 0x2a2   :  { %9356 = vmatpush1.bf16.msra.mxu1 %v13842_v43  ;;  %4301 = vmatprep.subr.bf16.mxu0 %v13847_v47  ;;  %v13941_v43 = vld [vmem:[#allocation8 + $0xb90] ss:$40 sps:$4 sm:$0xff]  }
 0x2a3   :  { %9357 = vmatprep.subr.bf16.mxu1 %v13850_v48  ;;  %v13907_v47 = vld [vmem:[#allocation5 + $0xc04] ss:$40 sps:$4 sm:$0xff]  }
 0x2a4   :  { %v13949_v48 = vld [vmem:[#allocation8 + $0xbe4] ss:$40 sps:$4 sm:$0xff]  }
 0x2a5   :  { %4302 = vmatpush1.bf16.msra.mxu0 %v13845_v49  ;;  %v13905_v49 = vld [vmem:[#allocation5 + $0xc00] ss:$40 sps:$4 sm:$0xff]  }
 0x2a6   :  { %9358 = vmatpush1.bf16.msra.mxu1 %v13848_v53  ;;  %4303 = vmatprep.subr.bf16.mxu0 %v13853_v54  ;;  %v13947_v53 = vld [vmem:[#allocation8 + $0xbe0] ss:$40 sps:$4 sm:$0xff]  }
 0x2a7   :  { %9359 = vmatprep.subr.bf16.mxu1 %v13856_v57  ;;  %v13910_v54 = vld [vmem:[#allocation5 + $0xc54] ss:$40 sps:$4 sm:$0xff]  }
 0x2a8   :  { %v13955_v57 = vld [vmem:[#allocation8 + $0xc34] ss:$40 sps:$4 sm:$0xff]  }
 0x2a9   :  { %4304 = vmatpush1.bf16.msra.mxu0 %v13851_v58  ;;  %v13908_v58 = vld [vmem:[#allocation5 + $0xc50] ss:$40 sps:$4 sm:$0xff]  }
 0x2aa   :  { %9360 = vmatpush1.bf16.msra.mxu1 %v13854_v59  ;;  %4305 = vmatprep.subr.bf16.mxu0 %v13859_v60  ;;  %v13953_v59 = vld [vmem:[#allocation8 + $0xc30] ss:$40 sps:$4 sm:$0xff]  }
 0x2ab   :  { %9361 = vmatprep.subr.bf16.mxu1 %v13862_v61  ;;  %v13916_v60 = vld [vmem:[#allocation5 + $0xca4] ss:$40 sps:$4 sm:$0xff]  }
 0x2ac   :  { %v13961_v61 = vld [vmem:[#allocation8 + $0xc84] ss:$40 sps:$4 sm:$0xff]  }
 0x2ad   :  { %4306 = vmatpush1.bf16.msra.mxu0 %v13857_v62  ;;  %v13914_v62 = vld [vmem:[#allocation5 + $0xca0] ss:$40 sps:$4 sm:$0xff]  }
 0x2ae   :  { %9362 = vmatpush1.bf16.msra.mxu1 %v13860_v63  ;;  %4307 = vmatprep.subr.bf16.mxu0 %v13865_v1  ;;  %v13959_v63 = vld [vmem:[#allocation8 + $0xc80] ss:$40 sps:$4 sm:$0xff]  }
 0x2af   :  { %9363 = vmatprep.subr.bf16.mxu1 %v13868_v2  ;;  %v13922_v1 = vld [vmem:[#allocation5 + $0xcf4] ss:$40 sps:$4 sm:$0xff]  }
 0x2b0   :  { %v13967_v2 = vld [vmem:[#allocation8 + $0xcd4] ss:$40 sps:$4 sm:$0xff]  }
 0x2b1   :  { %4308 = vmatpush1.bf16.msra.mxu0 %v13863_v3  ;;  %v13920_v3 = vld [vmem:[#allocation5 + $0xcf0] ss:$40 sps:$4 sm:$0xff]  }
 0x2b2   :  { %9364 = vmatpush1.bf16.msra.mxu1 %v13866_v4  ;;  %4309 = vmatprep.subr.bf16.mxu0 %v13871_v5  ;;  %v13928_v4 = vld [vmem:[#allocation5 + $0xd44] ss:$40 sps:$4 sm:$0xff]  }
 0x2b3   :  { %9365 = vmatprep.subr.bf16.mxu1 %v13874_v6  ;;  %v13965_v5 = vld [vmem:[#allocation8 + $0xcd0] ss:$40 sps:$4 sm:$0xff]   ;;  %v13973_v6 = vld [vmem:[#allocation8 + $0xd24] ss:$40 sps:$4 sm:$0xff]  }
 0x2b5   :  { %4310 = vmatpush1.bf16.msra.mxu0 %v13869_v7  ;;  %v13926_v7 = vld [vmem:[#allocation5 + $0xd40] ss:$40 sps:$4 sm:$0xff]  }
 0x2b6   :  { %9366 = vmatpush1.bf16.msra.mxu1 %v13872_v50  ;;  %4311 = vmatprep.subr.bf16.mxu0 %v13877_v8  ;;  %v13934_v50 = vld [vmem:[#allocation5 + $0xd94] ss:$40 sps:$4 sm:$0xff]  }
 0x2b7   :  { %9367 = vmatprep.subr.bf16.mxu1 %v13880_v10  ;;  %v13971_v8 = vld [vmem:[#allocation8 + $0xd20] ss:$40 sps:$4 sm:$0xff]   ;;  %v13979_v10 = vld [vmem:[#allocation8 + $0xd74] ss:$40 sps:$4 sm:$0xff]  }
 0x2b9   :  { %4312 = vmatpush1.bf16.msra.mxu0 %v13875_v11  ;;  %v13932_v11 = vld [vmem:[#allocation5 + $0xd90] ss:$40 sps:$4 sm:$0xff]  }
 0x2ba   :  { %9368 = vmatpush1.bf16.msra.mxu1 %v13878_v12  ;;  %4313 = vmatprep.subr.bf16.mxu0 %v13883_v13  ;;  %v13940_v12 = vld [vmem:[#allocation5 + $0xde4] ss:$40 sps:$4 sm:$0xff]  }
 0x2bb   :  { %9369 = vmatprep.subr.bf16.mxu1 %v13886_v14  ;;  %v13977_v13 = vld [vmem:[#allocation8 + $0xd70] ss:$40 sps:$4 sm:$0xff]   ;;  %v13985_v14 = vld [vmem:[#allocation8 + $0xdc4] ss:$40 sps:$4 sm:$0xff]  }
 0x2bd   :  { %4314 = vmatpush1.bf16.msra.mxu0 %v13881_v15  ;;  %v13938_v15 = vld [vmem:[#allocation5 + $0xde0] ss:$40 sps:$4 sm:$0xff]  }
 0x2be   :  { %9370 = vmatpush1.bf16.msra.mxu1 %v13884_v16  ;;  %4326 = vmatprep.subr.bf16.mxu0 %v13889_v9  ;;  %v13946_v16 = vld [vmem:[#allocation5 + $0xe34] ss:$40 sps:$4 sm:$0xff]  }
 0x2bf   :  { %9382 = vmatprep.subr.bf16.mxu1 %v13913_v18  ;;  %v13983_v9 = vld [vmem:[#allocation8 + $0xdc0] ss:$40 sps:$4 sm:$0xff]   ;;  %v13991_v18 = vld [vmem:[#allocation8 + $0xe14] ss:$40 sps:$4 sm:$0xff]  }
 0x2c0   :  { %4316 = vmatmul.mubr.bf16.vlgmr.msra.gmra.mrb[8].mxu0 %v15484_v17  ;;  %v13937_v17 = vld [vmem:[#allocation8 + $0xb44] ss:$40 sps:$4 sm:$0xff]  }
 0x2c1   :  { %9372 = vmatmul.mubr.bf16.vlgmr.msra.gmra.mrb[8].mxu1 %v15534_v41  ;;  %4327 = vmatpush1.bf16.msra.mxu0 %v13887_v19  ;;  %v13944_v19 = vld [vmem:[#allocation5 + $0xe30] ss:$40 sps:$4 sm:$0xff]  }
 0x2c2   :  { %9383 = vmatpush1.bf16.msra.mxu1 %v13911_v20  ;;  %4328 = vmatprep.subr.bf16.mxu0 %v13892_v21  ;;  %v13952_v20 = vld [vmem:[#allocation5 + $0xe84] ss:$40 sps:$4 sm:$0xff]  }
 0x2c3   :  { %9384 = vmatprep.subr.bf16.mxu1 %v13919_v36  ;;  %4358 = vmatprep.mubr.bf16.mxu0 %v15488_v24  ;;  %v13902_v24 = vld [vmem:[#allocation5 + $0xbb0] ss:$40 sps:$4 sm:$0xff]  }
 0x2c4   :  { %v13989_v21 = vld [vmem:[#allocation8 + $0xe10] ss:$40 sps:$4 sm:$0xff]   ;;  %v13997_v36 = vld [vmem:[#allocation8 + $0xe64] ss:$40 sps:$4 sm:$0xff]  }
 0x2c5   :  { %4329 = vmatpush1.bf16.msra.mxu0 %v13890_v22  ;;  %v13950_v22 = vld [vmem:[#allocation5 + $0xe80] ss:$40 sps:$4 sm:$0xff]  }
 0x2c6   :  { %9385 = vmatpush1.bf16.msra.mxu1 %v13917_v23  ;;  %4330 = vmatprep.subr.bf16.mxu0 %v13895_v25  ;;  %v13958_v23 = vld [vmem:[#allocation5 + $0xed4] ss:$40 sps:$4 sm:$0xff]  }
 0x2c7   :  { %9386 = vmatprep.subr.bf16.mxu1 %v13925_v27  ;;  %v13995_v25 = vld [vmem:[#allocation8 + $0xe60] ss:$40 sps:$4 sm:$0xff]   ;;  %v14003_v27 = vld [vmem:[#allocation8 + $0xeb4] ss:$40 sps:$4 sm:$0xff]  }
 0x2c9   :  { %4331 = vmatpush1.bf16.msra.mxu0 %v13893_v28  ;;  %v13956_v28 = vld [vmem:[#allocation5 + $0xed0] ss:$40 sps:$4 sm:$0xff]  }
 0x2ca   :  { %9387 = vmatpush1.bf16.msra.mxu1 %v13923_v29  ;;  %4332 = vmatprep.subr.bf16.mxu0 %v13898_v30  ;;  %v13964_v29 = vld [vmem:[#allocation5 + $0xf24] ss:$40 sps:$4 sm:$0xff]  }
 0x2cb   :  { %9388 = vmatprep.subr.bf16.mxu1 %v13931_v31  ;;  %v14001_v30 = vld [vmem:[#allocation8 + $0xeb0] ss:$40 sps:$4 sm:$0xff]   ;;  %v14009_v31 = vld [vmem:[#allocation8 + $0xf04] ss:$40 sps:$4 sm:$0xff]  }
 0x2cd   :  { %4333 = vmatpush1.bf16.msra.mxu0 %v13896_v32  ;;  %v13962_v32 = vld [vmem:[#allocation5 + $0xf20] ss:$40 sps:$4 sm:$0xff]  }
 0x2ce   :  { %9389 = vmatpush1.bf16.msra.mxu1 %v13929_v33  ;;  %4334 = vmatprep.subr.bf16.mxu0 %v13901_v34  ;;  %v13970_v33 = vld [vmem:[#allocation5 + $0xf74] ss:$40 sps:$4 sm:$0xff]   ;;  %v13968_v34 = vld [vmem:[#allocation5 + $0xf70] ss:$40 sps:$4 sm:$0xff]  }
 0x2cf   :  { %9390 = vmatprep.subr.bf16.mxu1 %v13937_v17  ;;  %v13976_v17 = vld [vmem:[#allocation5 + $0xfc4] ss:$40 sps:$4 sm:$0xff]  }
 0x2d1   :  { %4335 = vmatpush1.bf16.msra.mxu0 %v13899_v37  ;;  %v13974_v37 = vld [vmem:[#allocation5 + $0xfc0] ss:$40 sps:$4 sm:$0xff]  }
 0x2d2   :  { %9391 = vmatpush1.bf16.msra.mxu1 %v13935_v38  ;;  %4336 = vmatprep.subr.bf16.mxu0 %v13904_v39  ;;  %v13982_v38 = vld [vmem:[#allocation5 + $0x1014] ss:$40 sps:$4 sm:$0xff]   ;;  %v13980_v39 = vld [vmem:[#allocation5 + $0x1010] ss:$40 sps:$4 sm:$0xff]  }
 0x2d3   :  { %9392 = vmatprep.subr.bf16.mxu1 %v13943_v42  ;;  %v13988_v42 = vld [vmem:[#allocation5 + $0x1064] ss:$40 sps:$4 sm:$0xff]  }
 0x2d5   :  { %4337 = vmatpush1.bf16.msra.mxu0 %v13902_v24  ;;  %v13986_v24 = vld [vmem:[#allocation5 + $0x1060] ss:$40 sps:$4 sm:$0xff]  }
 0x2d6   :  { %9393 = vmatpush1.bf16.msra.mxu1 %v13941_v43  ;;  %4338 = vmatprep.subr.bf16.mxu0 %v13907_v47  ;;  %v720_v43 = vsub.s32 4, %v15516_v44  ;;  %v728_v47 = vsub.s32 6, %v15516_v44 }
 0x2d7   :  { %9394 = vmatprep.subr.bf16.mxu1 %v13949_v48  ;;  %v732_v48 = vsub.s32 7, %v15516_v44 }
 0x2d9   :  { %4339 = vmatpush1.bf16.msra.mxu0 %v13905_v49  ;;  %v15143_v49 = vld [vmem:[#allocation7] sm:$0xff] }
 0x2da   :  { %9395 = vmatpush1.bf16.msra.mxu1 %v13947_v53  ;;  %4340 = vmatprep.subr.bf16.mxu0 %v13910_v54  ;;  %v721_v53 = vrot.slane %v15143_v49, %v720_v43  ;;  %v729_v54 = vrot.slane %v15143_v49, %v728_v47 }
 0x2db   :  { %9396 = vmatprep.subr.bf16.mxu1 %v13955_v57 }
 0x2dd   :  { %4341 = vmatpush1.bf16.msra.mxu0 %v13908_v58  ;;  %v733_v58 = vrot.slane %v15143_v49, %v732_v48 }
 0x2de   :  { %9397 = vmatpush1.bf16.msra.mxu1 %v13953_v59  ;;  %4342 = vmatprep.subr.bf16.mxu0 %v13916_v60  ;;  %v13992_v59 = vld [vmem:[#allocation5 + $0x10b0] ss:$40 sps:$4 sm:$0xff]   ;;  %v14000_v60 = vld [vmem:[#allocation5 + $0x1104] ss:$40 sps:$4 sm:$0xff]  }
 0x2df   :  { %9398 = vmatprep.subr.bf16.mxu1 %v13961_v61 }
 0x2e1   :  { %4343 = vmatpush1.bf16.msra.mxu0 %v13914_v62 }
 0x2e2   :  { %9399 = vmatpush1.bf16.msra.mxu1 %v13959_v63  ;;  %4344 = vmatprep.subr.bf16.mxu0 %v13922_v1 }
 0x2e3   :  { %9400 = vmatprep.subr.bf16.mxu1 %v13967_v2 }
 0x2e5   :  { %4345 = vmatpush1.bf16.msra.mxu0 %v13920_v3 }
 0x2e6   :  { %9401 = vmatpush1.bf16.msra.mxu1 %v13965_v5  ;;  %4346 = vmatprep.subr.bf16.mxu0 %v13928_v4 }
 0x2e7   :  { %9402 = vmatprep.subr.bf16.mxu1 %v13973_v6 }
 0x2e9   :  { %4347 = vmatpush1.bf16.msra.mxu0 %v13926_v7 }
 0x2ea   :  { %9403 = vmatpush1.bf16.msra.mxu1 %v13971_v8  ;;  %4348 = vmatprep.subr.bf16.mxu0 %v13934_v50  ;;  %v13998_v50 = vld [vmem:[#allocation5 + $0x1100] ss:$40 sps:$4 sm:$0xff]  }
 0x2eb   :  { %9404 = vmatprep.subr.bf16.mxu1 %v13979_v10 }
 0x2ed   :  { %4349 = vmatpush1.bf16.msra.mxu0 %v13932_v11 }
 0x2ee   :  { %9405 = vmatpush1.bf16.msra.mxu1 %v13977_v13  ;;  %4350 = vmatprep.subr.bf16.mxu0 %v13940_v12  ;;  %v14006_v13 = vld [vmem:[#allocation5 + $0x1154] ss:$40 sps:$4 sm:$0xff]  }
 0x2ef   :  { %9406 = vmatprep.subr.bf16.mxu1 %v13985_v14 }
 0x2f1   :  { %4351 = vmatpush1.bf16.msra.mxu0 %v13938_v15 }
 0x2f2   :  { %9407 = vmatpush1.bf16.msra.mxu1 %v13983_v9  ;;  %4352 = vmatprep.subr.bf16.mxu0 %v13946_v16  ;;  %v14004_v9 = vld [vmem:[#allocation5 + $0x1150] ss:$40 sps:$4 sm:$0xff]  }
 0x2f3   :  { %9408 = vmatprep.subr.bf16.mxu1 %v13991_v18 }
 0x2f5   :  { %4353 = vmatpush1.bf16.msra.mxu0 %v13944_v19 }
 0x2f6   :  { %9409 = vmatpush1.bf16.msra.mxu1 %v13989_v21  ;;  %4354 = vmatprep.subr.bf16.mxu0 %v13952_v20 }
 0x2f7   :  { %9410 = vmatprep.subr.bf16.mxu1 %v13997_v36 }
 0x2f9   :  { %4355 = vmatpush1.bf16.msra.mxu0 %v13950_v22 }
 0x2fa   :  { %9411 = vmatpush1.bf16.msra.mxu1 %v13995_v25  ;;  %4356 = vmatprep.subr.bf16.mxu0 %v13958_v23  ;;  %v14007_v25 = vld [vmem:[#allocation8 + $0xf00] ss:$40 sps:$4 sm:$0xff]  }
 0x2fb   :  { %9412 = vmatprep.subr.bf16.mxu1 %v14003_v27  ;;  %v14012_v27 = vld [vmem:[#allocation8 + $0xc] ss:$40 sps:$4 sm:$0xff]  }
 0x2fd   :  { %4357 = vmatpush1.bf16.msra.mxu0 %v13956_v28 }
 0x2fe   :  { %9413 = vmatpush1.bf16.msra.mxu1 %v14001_v30  ;;  %4369 = vmatprep.subr.bf16.mxu0 %v13964_v29  ;;  %v14015_v30 = vld [vmem:[#allocation8 + $0xf54] ss:$40 sps:$4 sm:$0xff]  }
 0x2ff   :  { %9425 = vmatprep.subr.bf16.mxu1 %v14009_v31 }
 0x300   :  { %4359 = vmatmul.mubr.bf16.vlgmr.msra.gmra.mrb[8].mxu0 %v15492_v26  ;;  %v724_v26 = vsub.s32 5, %v15516_v44  ;;  %v15127_v44 = vld [vmem:[#allocation11 + $0x240] sm:$0xff]  }
 0x301   :  { %4370 = vmatpush1.bf16.msra.mxu0 %v13962_v32  ;;  %4401 = vmatprep.mubr.bf16.mxu0 %v15344_v35  ;;  %v13994_v35 = vld [vmem:[#allocation5 + $0x10b4] ss:$40 sps:$4 sm:$0xff]  }
 0x302   :  { %4371 = vmatprep.subr.bf16.mxu0 %v13970_v33  ;;  %v725_v57 = vrot.slane %v15143_v49, %v724_v26  ;;  %v14010_v33 = vld [vmem:[#allocation8 + $0x8] ss:$40 sps:$4 sm:$0xff]  }
 0x303   :  { %v14025_v49 = vld [vmem:[#allocation8 + $0xff0] ss:$40 sps:$4 sm:$0xff]  }
 0x305   :  { %4372 = vmatpush1.bf16.msra.mxu0 %v13968_v34  ;;  %v14018_v34 = vld [vmem:[#allocation8 + $0x5c] ss:$40 sps:$4 sm:$0xff]  }
 0x306   :  { %4373 = vmatprep.subr.bf16.mxu0 %v13976_v17  ;;  %v14013_v17 = vld [vmem:[#allocation8 + $0xf50] ss:$40 sps:$4 sm:$0xff]  }
 0x309   :  { %4374 = vmatpush1.bf16.msra.mxu0 %v13974_v37  ;;  %v14016_v37 = vld [vmem:[#allocation8 + $0x58] ss:$40 sps:$4 sm:$0xff]  }
 0x30a   :  { %4375 = vmatprep.subr.bf16.mxu0 %v13982_v38  ;;  %v14021_v38 = vld [vmem:[#allocation8 + $0xfa4] ss:$40 sps:$4 sm:$0xff]  }
 0x30d   :  { %4376 = vmatpush1.bf16.msra.mxu0 %v13980_v39  ;;  %v14019_v39 = vld [vmem:[#allocation8 + $0xfa0] ss:$40 sps:$4 sm:$0xff]  }
 0x30e   :  { %4377 = vmatprep.subr.bf16.mxu0 %v13988_v42  ;;  %v14024_v42 = vld [vmem:[#allocation8 + $0xac] ss:$40 sps:$4 sm:$0xff]  }
 0x311   :  { %4378 = vmatpush1.bf16.msra.mxu0 %v13986_v24  ;;  %v14027_v24 = vld [vmem:[#allocation8 + $0xff4] ss:$40 sps:$4 sm:$0xff]  }
 0x312   :  { %4379 = vmatprep.subr.bf16.mxu0 %v13994_v35  ;;  %v14022_v35 = vld [vmem:[#allocation8 + $0xa8] ss:$40 sps:$4 sm:$0xff]  }
 0x313   :  { %v4059_v61 = vpop.f32.mrb[4].mxu0 }
 0x314   :  { %v4231_v62 = vpop.f32.mrb[4].mxu1  ;;  %v12834_v63 = vadd.f32 %v4059_v61, %v721_v53  ;;  %v4061_v2 = vpop.f32.mrb[5].mxu0  ;;  %v14037_v61 = vld [vmem:[#allocation8 + $0x1090] ss:$40 sps:$4 sm:$0xff]  }
 0x315   :  { %v12838_v1 = vadd.f32 %v4231_v62, %v729_v54  ;;  %v4233_v3 = vpop.f32.mrb[5].mxu1  ;;  %v12835_v4 = vadd.f32 %v4061_v2, %v725_v57  ;;  %v4063_v6 = vpop.f32.mrb[6].mxu0  ;;  %4380 = vmatpush1.bf16.msra.mxu0 %v13992_v59  ;;  %v14039_v59 = vld [vmem:[#allocation8 + $0x1094] ss:$40 sps:$4 sm:$0xff]   ;;  %v14043_v2 = vld [vmem:[#allocation8 + $0x10e0] ss:$40 sps:$4 sm:$0xff]  }
 0x316   :  { %v12839_v5 = vadd.f32 %v4233_v3, %v733_v58  ;;  %v4235_v7 = vpop.f32.mrb[6].mxu1  ;;  %v12836_v8 = vadd.f32 %v4063_v6, %v721_v53  ;;  %v4065_v11 = vpop.f32.mrb[7].mxu0  ;;  %4381 = vmatprep.subr.bf16.mxu0 %v14000_v60  ;;  %v4416_v14 = vmax.f32 %v12834_v63, 0.0  ;;  %v14030_v53 = vld [vmem:[#allocation8 + $0xfc] ss:$40 sps:$4 sm:$0xff]  }
 0x317   :  { %v12840_v10 = vadd.f32 %v4235_v7, %v729_v54  ;;  %v4237_v12 = vpop.f32.mrb[7].mxu1  ;;  %v12837_v15 = vadd.f32 %v4065_v11, %v725_v57  ;;  %v4418_v18 = vmax.f32 %v12838_v1, 0.0  ;;  %v4417_v21 = vmax.f32 %v12835_v4, 0.0  ;;  %v14033_v54 = vld [vmem:[#allocation8 + $0x1044] ss:$40 sps:$4 sm:$0xff]  }
 0x318   :  { %v12841_v16 = vadd.f32 %v4237_v12, %v733_v58  ;;  %v4426_v19 = vmax.f32 %v12836_v8, 0.0  ;;  %v4419_v36 = vmax.f32 %v12839_v5, 0.0  ;;  %v14028_v57 = vld [vmem:[#allocation8 + $0xf8] ss:$40 sps:$4 sm:$0xff]   ;;  %v14036_v58 = vld [vmem:[#allocation8 + $0x14c] ss:$40 sps:$4 sm:$0xff]  }
 0x319   :  { %v4428_v20 = vmax.f32 %v12840_v10, 0.0  ;;  %v4427_v22 = vmax.f32 %v12837_v15, 0.0  ;;  %4382 = vmatpush1.bf16.msra.mxu0 %v13998_v50  ;;  %v14034_v60 = vld [vmem:[#allocation8 + $0x148] ss:$40 sps:$4 sm:$0xff]   ;;  %v14042_v62 = vld [vmem:[#allocation8 + $0x19c] ss:$40 sps:$4 sm:$0xff]  }
 0x31a   :  { %v4429_v23 = vmax.f32 %v12841_v16, 0.0  ;;  %v15565_v28 = vpack.c.bf16 %v4426_v19, %v4416_v14  ;;  %4383 = vmatprep.subr.bf16.mxu0 %v14006_v13  ;;  %v14045_v63 = vld [vmem:[#allocation8 + $0x10e4] ss:$40 sps:$4 sm:$0xff]   ;;  %v14040_v1 = vld [vmem:[#allocation8 + $0x198] ss:$40 sps:$4 sm:$0xff]  }
 0x31b   :  { %v15567_v29 = vpack.c.bf16 %v4428_v20, %v4418_v18  ;;  %v15569_v31 = vpack.c.bf16 %v4427_v22, %v4417_v21  ;;  %v14048_v3 = vld [vmem:[#allocation8 + $0x1ec] ss:$40 sps:$4 sm:$0xff]   ;;  %v14046_v5 = vld [vmem:[#allocation8 + $0x1e8] ss:$40 sps:$4 sm:$0xff]   ;;  %v14054_v7 = vld [vmem:[#allocation8 + $0x23c] ss:$40 sps:$4 sm:$0xff]  }
 0x31c   :  { %v15571_v32 = vpack.c.bf16 %v4429_v23, %v4419_v36  ;;  %v14051_v4 = vld [vmem:[#allocation8 + $0x1134] ss:$40 sps:$4 sm:$0xff]   ;;  %v14049_v6 = vld [vmem:[#allocation8 + $0x1130] ss:$40 sps:$4 sm:$0xff]   ;;  %v14057_v50 = vld [vmem:[#allocation8 + $0x1184] ss:$40 sps:$4 sm:$0xff]  }
 0x31d   :  { %4384 = vmatpush1.bf16.msra.mxu0 %v14004_v9  ;;  %9414 = vmatprep.mubr.bf16.mxu1 %v15569_v31  ;;  %v14052_v8 = vld [vmem:[#allocation8 + $0x238] ss:$40 sps:$4 sm:$0xff]   ;;  %v14060_v11 = vld [vmem:[#allocation8 + $0x28c] ss:$40 sps:$4 sm:$0xff]   ;;  %v14058_v13 = vld [vmem:[#allocation8 + $0x288] ss:$40 sps:$4 sm:$0xff]  }
 0x31e   :  { %9415 = vmatmul.mubr.bf16.vlgmr.msra.gmra.mrb[8].mxu1 %v15565_v28  ;;  %9511 = vmatprep.subr.bf16.mxu0 %v14012_v27  ;;  %v14055_v10 = vld [vmem:[#allocation8 + $0x1180] ss:$40 sps:$4 sm:$0xff]   ;;  %v14063_v12 = vld [vmem:[#allocation8 + $0x11d4] ss:$40 sps:$4 sm:$0xff]   ;;  %v14061_v14 = vld [vmem:[#allocation8 + $0x11d0] ss:$40 sps:$4 sm:$0xff]  }
 0x31f   :  { %9426 = vmatpush1.bf16.msra.mxu1 %v14007_v25  ;;  %9457 = vmatprep.mubr.bf16.mxu1 %v15571_v32  ;;  %v14066_v15 = vld [vmem:[#allocation8 + $0x2dc] ss:$40 sps:$4 sm:$0xff]   ;;  %v14064_v9 = vld [vmem:[#allocation8 + $0x2d8] ss:$40 sps:$4 sm:$0xff]   ;;  %v14072_v19 = vld [vmem:[#allocation8 + $0x32c] ss:$40 sps:$4 sm:$0xff]  }
 0x320   :  { %4402 = vmatmul.mubr.bf16.vlgmr.msra.gmra.mrb[8].mxu0 %v15498_v0  ;;  %9427 = vmatprep.subr.bf16.mxu1 %v14015_v30  ;;  %v14031_v0 = vld [vmem:[#allocation8 + $0x1040] ss:$40 sps:$4 sm:$0xff]   ;;  %v14069_v16 = vld [vmem:[#allocation8 + $0x1224] ss:$40 sps:$4 sm:$0xff]   ;;  %v14075_v20 = vld [vmem:[#allocation8 + $0x1274] ss:$40 sps:$4 sm:$0xff]  }
 0x321   :  { %9512 = vmatpush1.bf16.msra.mxu0 %v14010_v33  ;;  %9543 = vmatprep.mubr.bf16.mxu0 %v15536_v45  ;;  %v14067_v18 = vld [vmem:[#allocation8 + $0x1220] ss:$40 sps:$4 sm:$0xff]   ;;  %v14073_v36 = vld [vmem:[#allocation8 + $0x1270] ss:$40 sps:$4 sm:$0xff]   ;;  %v14078_v22 = vld [vmem:[#allocation8 + $0x37c] ss:$40 sps:$4 sm:$0xff]  }
 0x322   :  { %9513 = vmatprep.subr.bf16.mxu0 %v14018_v34  ;;  %v14070_v21 = vld [vmem:[#allocation8 + $0x328] ss:$40 sps:$4 sm:$0xff]   ;;  %v14081_v23 = vld [vmem:[#allocation8 + $0x12c4] ss:$40 sps:$4 sm:$0xff]   ;;  %v14076_v25 = vld [vmem:[#allocation8 + $0x378] ss:$40 sps:$4 sm:$0xff]  }
 0x323   :  { %9428 = vmatpush1.bf16.msra.mxu1 %v14013_v17  ;;  %v14079_v27 = vld [vmem:[#allocation8 + $0x12c0] ss:$40 sps:$4 sm:$0xff]   ;;  %v14084_v30 = vld [vmem:[#allocation8 + $0x3cc] ss:$40 sps:$4 sm:$0xff]   ;;  %v14085_v17 = vld [vmem:[#allocation8 + $0x1310] ss:$40 sps:$4 sm:$0xff]  }
 0x324   :  { %9429 = vmatprep.subr.bf16.mxu1 %v14021_v38  ;;  %v14087_v33 = vld [vmem:[#allocation8 + $0x1314] ss:$40 sps:$4 sm:$0xff]   ;;  %v14082_v34 = vld [vmem:[#allocation8 + $0x3c8] ss:$40 sps:$4 sm:$0xff]   ;;  %v14093_v38 = vld [vmem:[#allocation8 + $0x1364] ss:$40 sps:$4 sm:$0xff]  }
 0x325   :  { %9514 = vmatpush1.bf16.msra.mxu0 %v14016_v37  ;;  %v14090_v37 = vld [vmem:[#allocation8 + $0x41c] ss:$40 sps:$4 sm:$0xff]  }
 0x326   :  { %9515 = vmatprep.subr.bf16.mxu0 %v14024_v42  ;;  %v14091_v42 = vld [vmem:[#allocation8 + $0x1360] ss:$40 sps:$4 sm:$0xff]  }
 0x327   :  { %9430 = vmatpush1.bf16.msra.mxu1 %v14019_v39  ;;  %v14088_v39 = vld [vmem:[#allocation8 + $0x418] ss:$40 sps:$4 sm:$0xff]  }
 0x328   :  { %9431 = vmatprep.subr.bf16.mxu1 %v14027_v24  ;;  %v14096_v24 = vld [vmem:[#allocation8 + $0x46c] ss:$40 sps:$4 sm:$0xff]  }
 0x329   :  { %9516 = vmatpush1.bf16.msra.mxu0 %v14022_v35  ;;  %v14099_v35 = vld [vmem:[#allocation8 + $0x13b4] ss:$40 sps:$4 sm:$0xff]  }
 0x32a   :  { %9517 = vmatprep.subr.bf16.mxu0 %v14030_v53  ;;  %v14097_v53 = vld [vmem:[#allocation8 + $0x13b0] ss:$40 sps:$4 sm:$0xff]  }
 0x32b   :  { %9432 = vmatpush1.bf16.msra.mxu1 %v14025_v49  ;;  %v14094_v49 = vld [vmem:[#allocation8 + $0x468] ss:$40 sps:$4 sm:$0xff]  }
 0x32c   :  { %9433 = vmatprep.subr.bf16.mxu1 %v14033_v54  ;;  %v14102_v54 = vld [vmem:[#allocation8 + $0x4bc] ss:$40 sps:$4 sm:$0xff]  }
 0x32d   :  { %9518 = vmatpush1.bf16.msra.mxu0 %v14028_v57  ;;  %v14177_v57 = vld [vmem:[#allocation8 + $0x1404] ss:$40 sps:$4 sm:$0xff]  }
 0x32e   :  { %9519 = vmatprep.subr.bf16.mxu0 %v14036_v58  ;;  %v14105_v58 = vld [vmem:[#allocation8 + $0x50c] ss:$40 sps:$4 sm:$0xff]  }
 0x32f   :  { %9434 = vmatpush1.bf16.msra.mxu1 %v14031_v0  ;;  %v14100_v0 = vld [vmem:[#allocation8 + $0x4b8] ss:$40 sps:$4 sm:$0xff]  }
 0x330   :  { %9435 = vmatprep.subr.bf16.mxu1 %v14039_v59  ;;  %v14175_v59 = vld [vmem:[#allocation8 + $0x1400] ss:$40 sps:$4 sm:$0xff]  }
 0x331   :  { %9520 = vmatpush1.bf16.msra.mxu0 %v14034_v60  ;;  %v14183_v60 = vld [vmem:[#allocation8 + $0x1454] ss:$40 sps:$4 sm:$0xff]  }
 0x332   :  { %9521 = vmatprep.subr.bf16.mxu0 %v14042_v62  ;;  %v14108_v62 = vld [vmem:[#allocation8 + $0x55c] ss:$40 sps:$4 sm:$0xff]  }
 0x333   :  { %9436 = vmatpush1.bf16.msra.mxu1 %v14037_v61  ;;  %v14103_v61 = vld [vmem:[#allocation8 + $0x508] ss:$40 sps:$4 sm:$0xff]  }
 0x334   :  { %9437 = vmatprep.subr.bf16.mxu1 %v14045_v63  ;;  %v14181_v63 = vld [vmem:[#allocation8 + $0x1450] ss:$40 sps:$4 sm:$0xff]  }
 0x335   :  { %9522 = vmatpush1.bf16.msra.mxu0 %v14040_v1  ;;  %v14189_v1 = vld [vmem:[#allocation8 + $0x14a4] ss:$40 sps:$4 sm:$0xff]  }
 0x336   :  { %9523 = vmatprep.subr.bf16.mxu0 %v14048_v3  ;;  %v14111_v3 = vld [vmem:[#allocation8 + $0x5ac] ss:$40 sps:$4 sm:$0xff]  }
 0x337   :  { %9438 = vmatpush1.bf16.msra.mxu1 %v14043_v2  ;;  %v14106_v2 = vld [vmem:[#allocation8 + $0x558] ss:$40 sps:$4 sm:$0xff]  }
 0x338   :  { %9439 = vmatprep.subr.bf16.mxu1 %v14051_v4  ;;  %v14187_v4 = vld [vmem:[#allocation8 + $0x14a0] ss:$40 sps:$4 sm:$0xff]  }
 0x339   :  { %9524 = vmatpush1.bf16.msra.mxu0 %v14046_v5  ;;  %v14195_v5 = vld [vmem:[#allocation8 + $0x14f4] ss:$40 sps:$4 sm:$0xff]  }
 0x33a   :  { %9525 = vmatprep.subr.bf16.mxu0 %v14054_v7  ;;  %v14114_v7 = vld [vmem:[#allocation8 + $0x5fc] ss:$40 sps:$4 sm:$0xff]  }
 0x33b   :  { %9440 = vmatpush1.bf16.msra.mxu1 %v14049_v6  ;;  %v14109_v6 = vld [vmem:[#allocation8 + $0x5a8] ss:$40 sps:$4 sm:$0xff]  }
 0x33c   :  { %9441 = vmatprep.subr.bf16.mxu1 %v14057_v50  ;;  %v14193_v50 = vld [vmem:[#allocation8 + $0x14f0] ss:$40 sps:$4 sm:$0xff]  }
 0x33d   :  { %9526 = vmatpush1.bf16.msra.mxu0 %v14052_v8  ;;  %v14201_v8 = vld [vmem:[#allocation8 + $0x1544] ss:$40 sps:$4 sm:$0xff]  }
 0x33e   :  { %9527 = vmatprep.subr.bf16.mxu0 %v14060_v11  ;;  %v14117_v11 = vld [vmem:[#allocation8 + $0x64c] ss:$40 sps:$4 sm:$0xff]  }
 0x33f   :  { %9442 = vmatpush1.bf16.msra.mxu1 %v14055_v10  ;;  %v14112_v10 = vld [vmem:[#allocation8 + $0x5f8] ss:$40 sps:$4 sm:$0xff]  }
 0x340   :  { %9443 = vmatprep.subr.bf16.mxu1 %v14063_v12  ;;  %v14199_v12 = vld [vmem:[#allocation8 + $0x1540] ss:$40 sps:$4 sm:$0xff]  }
 0x341   :  { %9528 = vmatpush1.bf16.msra.mxu0 %v14058_v13  ;;  %v14207_v13 = vld [vmem:[#allocation8 + $0x1594] ss:$40 sps:$4 sm:$0xff]  }
 0x342   :  { %9529 = vmatprep.subr.bf16.mxu0 %v14066_v15  ;;  %v14120_v15 = vld [vmem:[#allocation8 + $0x69c] ss:$40 sps:$4 sm:$0xff]  }
 0x343   :  { %9444 = vmatpush1.bf16.msra.mxu1 %v14061_v14  ;;  %v14115_v14 = vld [vmem:[#allocation8 + $0x648] ss:$40 sps:$4 sm:$0xff]  }
 0x344   :  { %9445 = vmatprep.subr.bf16.mxu1 %v14069_v16  ;;  %v14205_v16 = vld [vmem:[#allocation8 + $0x1590] ss:$40 sps:$4 sm:$0xff]  }
 0x345   :  { %9530 = vmatpush1.bf16.msra.mxu0 %v14064_v9  ;;  %v14213_v9 = vld [vmem:[#allocation8 + $0x15e4] ss:$40 sps:$4 sm:$0xff]  }
 0x346   :  { %9531 = vmatprep.subr.bf16.mxu0 %v14072_v19  ;;  %v14123_v19 = vld [vmem:[#allocation8 + $0x6ec] ss:$40 sps:$4 sm:$0xff]  }
 0x347   :  { %9446 = vmatpush1.bf16.msra.mxu1 %v14067_v18  ;;  %v14118_v18 = vld [vmem:[#allocation8 + $0x698] ss:$40 sps:$4 sm:$0xff]  }
 0x348   :  { %9447 = vmatprep.subr.bf16.mxu1 %v14075_v20  ;;  %v14211_v20 = vld [vmem:[#allocation8 + $0x15e0] ss:$40 sps:$4 sm:$0xff]  }
 0x349   :  { %9532 = vmatpush1.bf16.msra.mxu0 %v14070_v21  ;;  %v14121_v21 = vld [vmem:[#allocation8 + $0x6e8] ss:$40 sps:$4 sm:$0xff]  }
 0x34a   :  { %9533 = vmatprep.subr.bf16.mxu0 %v14078_v22  ;;  %v14126_v22 = vld [vmem:[#allocation8 + $0x73c] ss:$40 sps:$4 sm:$0xff]  }
 0x34b   :  { %9448 = vmatpush1.bf16.msra.mxu1 %v14073_v36  ;;  %v14219_v36 = vld [vmem:[#allocation8 + $0x1634] ss:$40 sps:$4 sm:$0xff]  }
 0x34c   :  { %9449 = vmatprep.subr.bf16.mxu1 %v14081_v23  ;;  %v14217_v23 = vld [vmem:[#allocation8 + $0x1630] ss:$40 sps:$4 sm:$0xff]  }
 0x34d   :  { %9534 = vmatpush1.bf16.msra.mxu0 %v14076_v25  ;;  %v14124_v25 = vld [vmem:[#allocation8 + $0x738] ss:$40 sps:$4 sm:$0xff]  }
 0x34e   :  { %9535 = vmatprep.subr.bf16.mxu0 %v14084_v30  ;;  %v14129_v30 = vld [vmem:[#allocation8 + $0x78c] ss:$40 sps:$4 sm:$0xff]  }
 0x34f   :  { %9450 = vmatpush1.bf16.msra.mxu1 %v14079_v27  ;;  %v14225_v27 = vld [vmem:[#allocation8 + $0x1684] ss:$40 sps:$4 sm:$0xff]  }
 0x350   :  { %9451 = vmatprep.subr.bf16.mxu1 %v14087_v33  ;;  %v14127_v33 = vld [vmem:[#allocation8 + $0x788] ss:$40 sps:$4 sm:$0xff]  }
 0x351   :  { %9536 = vmatpush1.bf16.msra.mxu0 %v14082_v34  ;;  %v14223_v34 = vld [vmem:[#allocation8 + $0x1680] ss:$40 sps:$4 sm:$0xff]  }
 0x352   :  { %9537 = vmatprep.subr.bf16.mxu0 %v14090_v37  ;;  %v14132_v37 = vld [vmem:[#allocation8 + $0x7dc] ss:$40 sps:$4 sm:$0xff]  }
 0x353   :  { %9452 = vmatpush1.bf16.msra.mxu1 %v14085_v17  ;;  %v14231_v17 = vld [vmem:[#allocation8 + $0x16d4] ss:$40 sps:$4 sm:$0xff]  }
 0x354   :  { %9453 = vmatprep.subr.bf16.mxu1 %v14093_v38  ;;  %v14130_v38 = vld [vmem:[#allocation8 + $0x7d8] ss:$40 sps:$4 sm:$0xff]  }
 0x355   :  { %9538 = vmatpush1.bf16.msra.mxu0 %v14088_v39  ;;  %v14229_v39 = vld [vmem:[#allocation8 + $0x16d0] ss:$40 sps:$4 sm:$0xff]  }
 0x356   :  { %9539 = vmatprep.subr.bf16.mxu0 %v14096_v24  ;;  %v14135_v24 = vld [vmem:[#allocation8 + $0x82c] ss:$40 sps:$4 sm:$0xff]  }
 0x357   :  { %9454 = vmatpush1.bf16.msra.mxu1 %v14091_v42  ;;  %v14237_v42 = vld [vmem:[#allocation8 + $0x1724] ss:$40 sps:$4 sm:$0xff]  }
 0x358   :  { %9455 = vmatprep.subr.bf16.mxu1 %v14099_v35  ;;  %v14133_v35 = vld [vmem:[#allocation8 + $0x828] ss:$40 sps:$4 sm:$0xff]  }
 0x359   :  { %9540 = vmatpush1.bf16.msra.mxu0 %v14094_v49  ;;  %v14235_v49 = vld [vmem:[#allocation8 + $0x1720] ss:$40 sps:$4 sm:$0xff]  }
 0x35a   :  { %9541 = vmatprep.subr.bf16.mxu0 %v14102_v54  ;;  %v14138_v54 = vld [vmem:[#allocation8 + $0x87c] ss:$40 sps:$4 sm:$0xff]  }
 0x35b   :  { %9456 = vmatpush1.bf16.msra.mxu1 %v14097_v53  ;;  %v14243_v53 = vld [vmem:[#allocation8 + $0x1774] ss:$40 sps:$4 sm:$0xff]  }
 0x35c   :  { %9468 = vmatprep.subr.bf16.mxu1 %v14177_v57  ;;  %v14136_v57 = vld [vmem:[#allocation8 + $0x878] ss:$40 sps:$4 sm:$0xff]  }
 0x35d   :  { %9542 = vmatpush1.bf16.msra.mxu0 %v14100_v0  ;;  %v14241_v0 = vld [vmem:[#allocation8 + $0x1770] ss:$40 sps:$4 sm:$0xff]  }
 0x35e   :  { %9458 = vmatmul.mubr.bf16.vlgmr.msra.gmra.mrb[8].mxu1 %v15567_v29  ;;  %9554 = vmatprep.subr.bf16.mxu0 %v14105_v58  ;;  %v14249_v58 = vld [vmem:[#allocation8 + $0x17c4] ss:$40 sps:$4 sm:$0xff]  }
 0x35f   :  { %9469 = vmatpush1.bf16.msra.mxu1 %v14175_v59  ;;  %v14141_v59 = vld [vmem:[#allocation8 + $0x8cc] ss:$40 sps:$4 sm:$0xff]  }
 0x360   :  { %9544 = vmatmul.mubr.bf16.vlgmr.msra.gmra.mrb[12].mxu0 %v15532_v40  ;;  %9470 = vmatprep.subr.bf16.mxu1 %v14183_v60  ;;  %v14139_v60 = vld [vmem:[#allocation8 + $0x8c8] ss:$40 sps:$4 sm:$0xff]  }
 0x361   :  { %9555 = vmatpush1.bf16.msra.mxu0 %v14103_v61  ;;  %9586 = vmatprep.mubr.bf16.mxu0 %v15538_v46  ;;  %v14247_v61 = vld [vmem:[#allocation8 + $0x17c0] ss:$40 sps:$4 sm:$0xff]  }
 0x362   :  { %9556 = vmatprep.subr.bf16.mxu0 %v14108_v62  ;;  %v14255_v62 = vld [vmem:[#allocation8 + $0x1814] ss:$40 sps:$4 sm:$0xff]  }
 0x363   :  { %9471 = vmatpush1.bf16.msra.mxu1 %v14181_v63  ;;  %v14144_v63 = vld [vmem:[#allocation8 + $0x91c] ss:$40 sps:$4 sm:$0xff]  }
 0x364   :  { %9472 = vmatprep.subr.bf16.mxu1 %v14189_v1  ;;  %v14142_v1 = vld [vmem:[#allocation8 + $0x918] ss:$40 sps:$4 sm:$0xff]  }
 0x365   :  { %9557 = vmatpush1.bf16.msra.mxu0 %v14106_v2  ;;  %v14253_v2 = vld [vmem:[#allocation8 + $0x1810] ss:$40 sps:$4 sm:$0xff]  }
 0x366   :  { %9558 = vmatprep.subr.bf16.mxu0 %v14111_v3  ;;  %v14261_v3 = vld [vmem:[#allocation8 + $0x1864] ss:$40 sps:$4 sm:$0xff]  }
 0x367   :  { %9473 = vmatpush1.bf16.msra.mxu1 %v14187_v4  ;;  %v14147_v4 = vld [vmem:[#allocation8 + $0x96c] ss:$40 sps:$4 sm:$0xff]  }
 0x368   :  { %9474 = vmatprep.subr.bf16.mxu1 %v14195_v5  ;;  %v14145_v5 = vld [vmem:[#allocation8 + $0x968] ss:$40 sps:$4 sm:$0xff]  }
 0x369   :  { %9559 = vmatpush1.bf16.msra.mxu0 %v14109_v6  ;;  %v14259_v6 = vld [vmem:[#allocation8 + $0x1860] ss:$40 sps:$4 sm:$0xff]  }
 0x36a   :  { %9560 = vmatprep.subr.bf16.mxu0 %v14114_v7  ;;  %v14267_v7 = vld [vmem:[#allocation8 + $0x18b4] ss:$40 sps:$4 sm:$0xff]  }
 0x36b   :  { %9475 = vmatpush1.bf16.msra.mxu1 %v14193_v50  ;;  %v14150_v50 = vld [vmem:[#allocation8 + $0x9bc] ss:$40 sps:$4 sm:$0xff]  }
 0x36c   :  { %9476 = vmatprep.subr.bf16.mxu1 %v14201_v8  ;;  %v14148_v8 = vld [vmem:[#allocation8 + $0x9b8] ss:$40 sps:$4 sm:$0xff]  }
 0x36d   :  { %9561 = vmatpush1.bf16.msra.mxu0 %v14112_v10  ;;  %v14265_v10 = vld [vmem:[#allocation8 + $0x18b0] ss:$40 sps:$4 sm:$0xff]  }
 0x36e   :  { %9562 = vmatprep.subr.bf16.mxu0 %v14117_v11  ;;  %v14273_v11 = vld [vmem:[#allocation8 + $0x14] ss:$40 sps:$4 sm:$0xff]  }
 0x36f   :  { %9477 = vmatpush1.bf16.msra.mxu1 %v14199_v12  ;;  %v14153_v12 = vld [vmem:[#allocation8 + $0xa0c] ss:$40 sps:$4 sm:$0xff]  }
 0x370   :  { %9478 = vmatprep.subr.bf16.mxu1 %v14207_v13  ;;  %v14151_v13 = vld [vmem:[#allocation8 + $0xa08] ss:$40 sps:$4 sm:$0xff]  }
 0x371   :  { %9563 = vmatpush1.bf16.msra.mxu0 %v14115_v14  ;;  %v14156_v14 = vld [vmem:[#allocation8 + $0xa5c] ss:$40 sps:$4 sm:$0xff]  }
 0x372   :  { %9564 = vmatprep.subr.bf16.mxu0 %v14120_v15  ;;  %v14154_v15 = vld [vmem:[#allocation8 + $0xa58] ss:$40 sps:$4 sm:$0xff]  }
 0x373   :  { %9479 = vmatpush1.bf16.msra.mxu1 %v14205_v16  ;;  %v14159_v16 = vld [vmem:[#allocation8 + $0xaac] ss:$40 sps:$4 sm:$0xff]  }
 0x374   :  { %9480 = vmatprep.subr.bf16.mxu1 %v14213_v9  ;;  %v14157_v9 = vld [vmem:[#allocation8 + $0xaa8] ss:$40 sps:$4 sm:$0xff]  }
 0x375   :  { %9565 = vmatpush1.bf16.msra.mxu0 %v14118_v18  ;;  %v14162_v18 = vld [vmem:[#allocation8 + $0xafc] ss:$40 sps:$4 sm:$0xff]  }
 0x376   :  { %9566 = vmatprep.subr.bf16.mxu0 %v14123_v19  ;;  %v14160_v19 = vld [vmem:[#allocation8 + $0xaf8] ss:$40 sps:$4 sm:$0xff]  }
 0x377   :  { %9481 = vmatpush1.bf16.msra.mxu1 %v14211_v20  ;;  %v14165_v20 = vld [vmem:[#allocation8 + $0xb4c] ss:$40 sps:$4 sm:$0xff]  }
 0x378   :  { %9482 = vmatprep.subr.bf16.mxu1 %v14219_v36  ;;  %v14168_v36 = vld [vmem:[#allocation8 + $0xb9c] ss:$40 sps:$4 sm:$0xff]  }
 0x379   :  { %9567 = vmatpush1.bf16.msra.mxu0 %v14121_v21  ;;  %v14163_v21 = vld [vmem:[#allocation8 + $0xb48] ss:$40 sps:$4 sm:$0xff]  }
 0x37a   :  { %9568 = vmatprep.subr.bf16.mxu0 %v14126_v22  ;;  %v14166_v22 = vld [vmem:[#allocation8 + $0xb98] ss:$40 sps:$4 sm:$0xff]  }
 0x37b   :  { %9483 = vmatpush1.bf16.msra.mxu1 %v14217_v23  ;;  %v14171_v23 = vld [vmem:[#allocation8 + $0xbec] ss:$40 sps:$4 sm:$0xff]  }
 0x37c   :  { %9484 = vmatprep.subr.bf16.mxu1 %v14225_v27  ;;  %v14174_v27 = vld [vmem:[#allocation8 + $0xc3c] ss:$40 sps:$4 sm:$0xff]  }
 0x37d   :  { %9569 = vmatpush1.bf16.msra.mxu0 %v14124_v25  ;;  %v14169_v25 = vld [vmem:[#allocation8 + $0xbe8] ss:$40 sps:$4 sm:$0xff]  }
 0x37e   :  { %9570 = vmatprep.subr.bf16.mxu0 %v14129_v30  ;;  %v14172_v30 = vld [vmem:[#allocation8 + $0xc38] ss:$40 sps:$4 sm:$0xff]  }
 0x37f   :  { %9485 = vmatpush1.bf16.msra.mxu1 %v14223_v34  ;;  %v14178_v34 = vld [vmem:[#allocation8 + $0xc88] ss:$40 sps:$4 sm:$0xff]  }
 0x380   :  { %9486 = vmatprep.subr.bf16.mxu1 %v14231_v17  ;;  %v14186_v17 = vld [vmem:[#allocation8 + $0xcdc] ss:$40 sps:$4 sm:$0xff]  }
 0x381   :  { %9571 = vmatpush1.bf16.msra.mxu0 %v14127_v33  ;;  %v14180_v33 = vld [vmem:[#allocation8 + $0xc8c] ss:$40 sps:$4 sm:$0xff]  }
 0x382   :  { %9572 = vmatprep.subr.bf16.mxu0 %v14132_v37  ;;  %v14184_v37 = vld [vmem:[#allocation8 + $0xcd8] ss:$40 sps:$4 sm:$0xff]  }
 0x383   :  { %9487 = vmatpush1.bf16.msra.mxu1 %v14229_v39  ;;  %v14190_v39 = vld [vmem:[#allocation8 + $0xd28] ss:$40 sps:$4 sm:$0xff]  }
 0x384   :  { %9488 = vmatprep.subr.bf16.mxu1 %v14237_v42  ;;  %v14198_v42 = vld [vmem:[#allocation8 + $0xd7c] ss:$40 sps:$4 sm:$0xff]  }
 0x385   :  { %9573 = vmatpush1.bf16.msra.mxu0 %v14130_v38  ;;  %v14192_v38 = vld [vmem:[#allocation8 + $0xd2c] ss:$40 sps:$4 sm:$0xff]  }
 0x386   :  { %9574 = vmatprep.subr.bf16.mxu0 %v14135_v24  ;;  %v14196_v24 = vld [vmem:[#allocation8 + $0xd78] ss:$40 sps:$4 sm:$0xff]  }
 0x387   :  { %9489 = vmatpush1.bf16.msra.mxu1 %v14235_v49  ;;  %v14202_v49 = vld [vmem:[#allocation8 + $0xdc8] ss:$40 sps:$4 sm:$0xff]  }
 0x388   :  { %9490 = vmatprep.subr.bf16.mxu1 %v14243_v53  ;;  %v14210_v53 = vld [vmem:[#allocation8 + $0xe1c] ss:$40 sps:$4 sm:$0xff]  }
 0x389   :  { %9575 = vmatpush1.bf16.msra.mxu0 %v14133_v35  ;;  %v14204_v35 = vld [vmem:[#allocation8 + $0xdcc] ss:$40 sps:$4 sm:$0xff]  }
 0x38a   :  { %9576 = vmatprep.subr.bf16.mxu0 %v14138_v54  ;;  %v14208_v54 = vld [vmem:[#allocation8 + $0xe18] ss:$40 sps:$4 sm:$0xff]  }
 0x38b   :  { %9491 = vmatpush1.bf16.msra.mxu1 %v14241_v0  ;;  %v14214_v0 = vld [vmem:[#allocation8 + $0xe68] ss:$40 sps:$4 sm:$0xff]  }
 0x38c   :  { %9492 = vmatprep.subr.bf16.mxu1 %v14249_v58  ;;  %v14222_v58 = vld [vmem:[#allocation8 + $0xebc] ss:$40 sps:$4 sm:$0xff]  }
 0x38d   :  { %9577 = vmatpush1.bf16.msra.mxu0 %v14136_v57  ;;  %v14216_v57 = vld [vmem:[#allocation8 + $0xe6c] ss:$40 sps:$4 sm:$0xff]  }
 0x38e   :  { %9578 = vmatprep.subr.bf16.mxu0 %v14141_v59  ;;  %v14220_v59 = vld [vmem:[#allocation8 + $0xeb8] ss:$40 sps:$4 sm:$0xff]  }
 0x38f   :  { %9493 = vmatpush1.bf16.msra.mxu1 %v14247_v61  ;;  %v14226_v61 = vld [vmem:[#allocation8 + $0xf08] ss:$40 sps:$4 sm:$0xff]  }
 0x390   :  { %9494 = vmatprep.subr.bf16.mxu1 %v14255_v62  ;;  %v14234_v62 = vld [vmem:[#allocation8 + $0xf5c] ss:$40 sps:$4 sm:$0xff]  }
 0x391   :  { %9579 = vmatpush1.bf16.msra.mxu0 %v14139_v60  ;;  %v14228_v60 = vld [vmem:[#allocation8 + $0xf0c] ss:$40 sps:$4 sm:$0xff]  }
 0x392   :  { %9580 = vmatprep.subr.bf16.mxu0 %v14144_v63  ;;  %v14232_v63 = vld [vmem:[#allocation8 + $0xf58] ss:$40 sps:$4 sm:$0xff]  }
 0x393   :  { %9495 = vmatpush1.bf16.msra.mxu1 %v14253_v2  ;;  %v14238_v2 = vld [vmem:[#allocation8 + $0xfa8] ss:$40 sps:$4 sm:$0xff]  }
 0x394   :  { %9496 = vmatprep.subr.bf16.mxu1 %v14261_v3  ;;  %v14246_v3 = vld [vmem:[#allocation8 + $0xffc] ss:$40 sps:$4 sm:$0xff]  }
 0x395   :  { %9581 = vmatpush1.bf16.msra.mxu0 %v14142_v1  ;;  %v14240_v1 = vld [vmem:[#allocation8 + $0xfac] ss:$40 sps:$4 sm:$0xff]  }
 0x396   :  { %9582 = vmatprep.subr.bf16.mxu0 %v14147_v4  ;;  %v14244_v4 = vld [vmem:[#allocation8 + $0xff8] ss:$40 sps:$4 sm:$0xff]  }
 0x397   :  { %9497 = vmatpush1.bf16.msra.mxu1 %v14259_v6  ;;  %v14250_v6 = vld [vmem:[#allocation8 + $0x1048] ss:$40 sps:$4 sm:$0xff]  }
 0x398   :  { %9498 = vmatprep.subr.bf16.mxu1 %v14267_v7  ;;  %v699_v7 = vld [vmem:[#allocation7 + $0x8] sm:$0x3] }
 0x399   :  { %9583 = vmatpush1.bf16.msra.mxu0 %v14145_v5  ;;  %v14252_v5 = vld [vmem:[#allocation8 + $0x104c] ss:$40 sps:$4 sm:$0xff]  }
 0x39a   :  { %9584 = vmatprep.subr.bf16.mxu0 %v14150_v50  ;;  %v14258_v50 = vld [vmem:[#allocation8 + $0x109c] ss:$40 sps:$4 sm:$0xff]  }
 0x39b   :  { %9499 = vmatpush1.bf16.msra.mxu1 %v14265_v10  ;;  %v741_v10 = vrot.slane %v699_v7, %v15523_v55 }
 0x39c   :  { %9726 = vmatprep.subr.bf16.mxu1 %v14273_v11  ;;  %v14256_v11 = vld [vmem:[#allocation8 + $0x1098] ss:$40 sps:$4 sm:$0xff]  }
 0x39d   :  { %9585 = vmatpush1.bf16.msra.mxu0 %v14148_v8  ;;  %v737_v8 = vrot.slane %v699_v7, %v15519_v51  ;;  %v14312_v7 = vld [vmem:[#allocation8 + $0x136c] ss:$40 sps:$4 sm:$0xff]  }
 0x39e   :  { %9597 = vmatprep.subr.bf16.mxu0 %v14153_v12  ;;  %v14264_v12 = vld [vmem:[#allocation8 + $0x10ec] ss:$40 sps:$4 sm:$0xff]  }
 0x3a0   :  { %9587 = vmatmul.mubr.bf16.vlgmr.msra.gmra.mrb[12].mxu0 %v15534_v41 }
 0x3a1   :  { %9598 = vmatpush1.bf16.msra.mxu0 %v14151_v13  ;;  %9629 = vmatprep.mubr.bf16.mxu0 %v15569_v31 }
 0x3a2   :  { %9599 = vmatprep.subr.bf16.mxu0 %v14156_v14 }
 0x3a5   :  { %9600 = vmatpush1.bf16.msra.mxu0 %v14154_v15 }
 0x3a6   :  { %9601 = vmatprep.subr.bf16.mxu0 %v14159_v16 }
 0x3a9   :  { %9602 = vmatpush1.bf16.msra.mxu0 %v14157_v9 }
 0x3aa   :  { %9603 = vmatprep.subr.bf16.mxu0 %v14162_v18  ;;  %v14262_v18 = vld [vmem:[#allocation8 + $0x10e8] ss:$40 sps:$4 sm:$0xff]  }
 0x3ad   :  { %9604 = vmatpush1.bf16.msra.mxu0 %v14160_v19 }
 0x3ae   :  { %9605 = vmatprep.subr.bf16.mxu0 %v14165_v20 }
 0x3b1   :  { %9606 = vmatpush1.bf16.msra.mxu0 %v14163_v21  ;;  %v14270_v21 = vld [vmem:[#allocation8 + $0x113c] ss:$40 sps:$4 sm:$0xff]  }
 0x3b2   :  { %9607 = vmatprep.subr.bf16.mxu0 %v14168_v36 }
 0x3b5   :  { %9608 = vmatpush1.bf16.msra.mxu0 %v14166_v22 }
 0x3b6   :  { %9609 = vmatprep.subr.bf16.mxu0 %v14171_v23 }
 0x3b9   :  { %9610 = vmatpush1.bf16.msra.mxu0 %v14169_v25 }
 0x3ba   :  { %9611 = vmatprep.subr.bf16.mxu0 %v14174_v27 }
 0x3bd   :  { %9612 = vmatpush1.bf16.msra.mxu0 %v14172_v30  ;;  %v14268_v30 = vld [vmem:[#allocation8 + $0x1138] ss:$40 sps:$4 sm:$0xff]  }
 0x3be   :  { %9613 = vmatprep.subr.bf16.mxu0 %v14180_v33 }
 0x3c1   :  { %9614 = vmatpush1.bf16.msra.mxu0 %v14178_v34  ;;  %v14276_v34 = vld [vmem:[#allocation8 + $0x118c] ss:$40 sps:$4 sm:$0xff]  }
 0x3c2   :  { %9615 = vmatprep.subr.bf16.mxu0 %v14186_v17 }
 0x3c5   :  { %9616 = vmatpush1.bf16.msra.mxu0 %v14184_v37  ;;  %v14271_v37 = vld [vmem:[#allocation8 + $0x10] ss:$40 sps:$4 sm:$0xff]  }
 0x3c6   :  { %9617 = vmatprep.subr.bf16.mxu0 %v14192_v38  ;;  %v14279_v38 = vld [vmem:[#allocation8 + $0x64] ss:$40 sps:$4 sm:$0xff]  }
 0x3c9   :  { %9618 = vmatpush1.bf16.msra.mxu0 %v14190_v39  ;;  %v14274_v39 = vld [vmem:[#allocation8 + $0x1188] ss:$40 sps:$4 sm:$0xff]  }
 0x3ca   :  { %9619 = vmatprep.subr.bf16.mxu0 %v14198_v42  ;;  %v14282_v42 = vld [vmem:[#allocation8 + $0x11dc] ss:$40 sps:$4 sm:$0xff]  }
 0x3cd   :  { %9620 = vmatpush1.bf16.msra.mxu0 %v14196_v24  ;;  %v14277_v24 = vld [vmem:[#allocation8 + $0x60] ss:$40 sps:$4 sm:$0xff]  }
 0x3ce   :  { %9621 = vmatprep.subr.bf16.mxu0 %v14204_v35  ;;  %v14285_v35 = vld [vmem:[#allocation8 + $0xb4] ss:$40 sps:$4 sm:$0xff]  }
 0x3d1   :  { %9622 = vmatpush1.bf16.msra.mxu0 %v14202_v49  ;;  %v14280_v49 = vld [vmem:[#allocation8 + $0x11d8] ss:$40 sps:$4 sm:$0xff]  }
 0x3d2   :  { %9623 = vmatprep.subr.bf16.mxu0 %v14210_v53  ;;  %v14288_v53 = vld [vmem:[#allocation8 + $0x122c] ss:$40 sps:$4 sm:$0xff]  }
 0x3d5   :  { %9624 = vmatpush1.bf16.msra.mxu0 %v14208_v54  ;;  %v14283_v54 = vld [vmem:[#allocation8 + $0xb0] ss:$40 sps:$4 sm:$0xff]  }
 0x3d6   :  { %9625 = vmatprep.subr.bf16.mxu0 %v14216_v57  ;;  %v14291_v57 = vld [vmem:[#allocation8 + $0x104] ss:$40 sps:$4 sm:$0xff]  }
 0x3d9   :  { %9626 = vmatpush1.bf16.msra.mxu0 %v14214_v0  ;;  %v14286_v0 = vld [vmem:[#allocation8 + $0x1228] ss:$40 sps:$4 sm:$0xff]  }
 0x3da   :  { %9627 = vmatprep.subr.bf16.mxu0 %v14222_v58  ;;  %v14294_v58 = vld [vmem:[#allocation8 + $0x127c] ss:$40 sps:$4 sm:$0xff]  }
 0x3dd   :  { %9628 = vmatpush1.bf16.msra.mxu0 %v14220_v59  ;;  %v14289_v59 = vld [vmem:[#allocation8 + $0x100] ss:$40 sps:$4 sm:$0xff]  }
 0x3de   :  { %9640 = vmatprep.subr.bf16.mxu0 %v14228_v60  ;;  %v14297_v60 = vld [vmem:[#allocation8 + $0x154] ss:$40 sps:$4 sm:$0xff]  }
 0x3e0   :  { %9630 = vmatmul.mubr.bf16.vlgmr.msra.gmra.mrb[12].mxu0 %v15565_v28 }
 0x3e1   :  { %9641 = vmatpush1.bf16.msra.mxu0 %v14226_v61  ;;  %9672 = vmatprep.mubr.bf16.mxu0 %v15571_v32  ;;  %v14292_v61 = vld [vmem:[#allocation8 + $0x1278] ss:$40 sps:$4 sm:$0xff]  }
 0x3e2   :  { %9642 = vmatprep.subr.bf16.mxu0 %v14234_v62  ;;  %v14300_v62 = vld [vmem:[#allocation8 + $0x12cc] ss:$40 sps:$4 sm:$0xff]  }
 0x3e5   :  { %9643 = vmatpush1.bf16.msra.mxu0 %v14232_v63  ;;  %v14295_v63 = vld [vmem:[#allocation8 + $0x150] ss:$40 sps:$4 sm:$0xff]  }
 0x3e6   :  { %9644 = vmatprep.subr.bf16.mxu0 %v14240_v1  ;;  %v14303_v1 = vld [vmem:[#allocation8 + $0x1a4] ss:$40 sps:$4 sm:$0xff]  }
 0x3e9   :  { %9645 = vmatpush1.bf16.msra.mxu0 %v14238_v2  ;;  %v14298_v2 = vld [vmem:[#allocation8 + $0x12c8] ss:$40 sps:$4 sm:$0xff]  }
 0x3ea   :  { %9646 = vmatprep.subr.bf16.mxu0 %v14246_v3  ;;  %v14306_v3 = vld [vmem:[#allocation8 + $0x131c] ss:$40 sps:$4 sm:$0xff]  }
 0x3ed   :  { %9647 = vmatpush1.bf16.msra.mxu0 %v14244_v4  ;;  %v14301_v4 = vld [vmem:[#allocation8 + $0x1a0] ss:$40 sps:$4 sm:$0xff]  }
 0x3ee   :  { %9648 = vmatprep.subr.bf16.mxu0 %v14252_v5  ;;  %v14309_v5 = vld [vmem:[#allocation8 + $0x1f4] ss:$40 sps:$4 sm:$0xff]  }
 0x3f1   :  { %9649 = vmatpush1.bf16.msra.mxu0 %v14250_v6  ;;  %v14304_v6 = vld [vmem:[#allocation8 + $0x1318] ss:$40 sps:$4 sm:$0xff]  }
 0x3f2   :  { %9650 = vmatprep.subr.bf16.mxu0 %v14258_v50  ;;  %v14307_v50 = vld [vmem:[#allocation8 + $0x1f0] ss:$40 sps:$4 sm:$0xff]  }
 0x3f3   :  { %v4403_v13 = vpop.f32.mrb[8].mxu0 }
 0x3f4   :  { %v12842_v14 = vadd.f32 %v4403_v13, %v737_v8  ;;  %v4405_v15 = vpop.f32.mrb[9].mxu0  ;;  %v14321_v13 = vld [vmem:[#allocation8 + $0x294] ss:$40 sps:$4 sm:$0xff]  }
 0x3f5   :  { %v12843_v16 = vadd.f32 %v4405_v15, %v741_v10  ;;  %v4407_v9 = vpop.f32.mrb[10].mxu0  ;;  %9651 = vmatpush1.bf16.msra.mxu0 %v14256_v11  ;;  %v14318_v11 = vld [vmem:[#allocation8 + $0x13bc] ss:$40 sps:$4 sm:$0xff]   ;;  %v14324_v15 = vld [vmem:[#allocation8 + $0x140c] ss:$40 sps:$4 sm:$0xff]  }
 0x3f6   :  { %v12844_v19 = vadd.f32 %v4407_v9, %v737_v8  ;;  %v4409_v20 = vpop.f32.mrb[11].mxu0  ;;  %9652 = vmatprep.subr.bf16.mxu0 %v14264_v12  ;;  %v4420_v22 = vmax.f32 %v12842_v14, 0.0  ;;  %v14315_v8 = vld [vmem:[#allocation8 + $0x244] ss:$40 sps:$4 sm:$0xff]   ;;  %v14313_v12 = vld [vmem:[#allocation8 + $0x240] ss:$40 sps:$4 sm:$0xff]  }
 0x3f7   :  { %v12845_v36 = vadd.f32 %v4409_v20, %v741_v10  ;;  %v4421_v25 = vmax.f32 %v12843_v16, 0.0  ;;  %v14310_v10 = vld [vmem:[#allocation8 + $0x1368] ss:$40 sps:$4 sm:$0xff]   ;;  %v14316_v14 = vld [vmem:[#allocation8 + $0x13b8] ss:$40 sps:$4 sm:$0xff]  }
 0x3f8   :  { %v4430_v23 = vmax.f32 %v12844_v19, 0.0  ;;  %v14319_v16 = vld [vmem:[#allocation8 + $0x290] ss:$40 sps:$4 sm:$0xff]   ;;  %v14327_v9 = vld [vmem:[#allocation8 + $0x2e4] ss:$40 sps:$4 sm:$0xff]  }
 0x3f9   :  { %v4431_v27 = vmax.f32 %v12845_v36, 0.0  ;;  %9653 = vmatpush1.bf16.msra.mxu0 %v14262_v18  ;;  %v14322_v18 = vld [vmem:[#allocation8 + $0x1408] ss:$40 sps:$4 sm:$0xff]   ;;  %v14330_v19 = vld [vmem:[#allocation8 + $0x145c] ss:$40 sps:$4 sm:$0xff]  }
 0x3fa   :  { %v15587_v33 = vpack.c.bf16 %v4430_v23, %v4420_v22  ;;  %9654 = vmatprep.subr.bf16.mxu0 %v14270_v21  ;;  %v14325_v20 = vld [vmem:[#allocation8 + $0x2e0] ss:$40 sps:$4 sm:$0xff]   ;;  %v14333_v21 = vld [vmem:[#allocation8 + $0x334] ss:$40 sps:$4 sm:$0xff]   ;;  %v14331_v23 = vld [vmem:[#allocation8 + $0x330] ss:$40 sps:$4 sm:$0xff]  }
 0x3fb   :  { %v15589_v17 = vpack.c.bf16 %v4431_v27, %v4421_v25  ;;  %v14328_v36 = vld [vmem:[#allocation8 + $0x1458] ss:$40 sps:$4 sm:$0xff]   ;;  %v14336_v22 = vld [vmem:[#allocation8 + $0x14ac] ss:$40 sps:$4 sm:$0xff]   ;;  %v14334_v27 = vld [vmem:[#allocation8 + $0x14a8] ss:$40 sps:$4 sm:$0xff]  }
 0x3fc   :  { %v14339_v25 = vld [vmem:[#allocation8 + $0x384] ss:$40 sps:$4 sm:$0xff]  }
 0x3fd   :  { %9500 = vmatprep.mubr.bf16.mxu1 %v15589_v17  ;;  %9655 = vmatpush1.bf16.msra.mxu0 %v14268_v30  ;;  %v14342_v30 = vld [vmem:[#allocation8 + $0x14fc] ss:$40 sps:$4 sm:$0xff]  }
 0x3fe   :  { %9501 = vmatmul.mubr.bf16.vlgmr.msra.gmra.mrb[8].mxu1 %v15587_v33  ;;  %9656 = vmatprep.subr.bf16.mxu0 %v14276_v34  ;;  %v14337_v34 = vld [vmem:[#allocation8 + $0x380] ss:$40 sps:$4 sm:$0xff]  }
 0x3ff   :  { %9727 = vmatpush1.bf16.msra.mxu1 %v14271_v37  ;;  %9758 = vmatprep.mubr.bf16.mxu1 %v15536_v45  ;;  %v14345_v37 = vld [vmem:[#allocation8 + $0x3d4] ss:$40 sps:$4 sm:$0xff]  }
 0x400   :  { %9728 = vmatprep.subr.bf16.mxu1 %v14279_v38  ;;  %v14340_v38 = vld [vmem:[#allocation8 + $0x14f8] ss:$40 sps:$4 sm:$0xff]  }
 0x401   :  { %9657 = vmatpush1.bf16.msra.mxu0 %v14274_v39  ;;  %v14348_v39 = vld [vmem:[#allocation8 + $0x154c] ss:$40 sps:$4 sm:$0xff]  }
 0x402   :  { %9658 = vmatprep.subr.bf16.mxu0 %v14282_v42  ;;  %v14343_v42 = vld [vmem:[#allocation8 + $0x3d0] ss:$40 sps:$4 sm:$0xff]  }
 0x403   :  { %9729 = vmatpush1.bf16.msra.mxu1 %v14277_v24  ;;  %v14351_v24 = vld [vmem:[#allocation8 + $0x424] ss:$40 sps:$4 sm:$0xff]  }
 0x404   :  { %9730 = vmatprep.subr.bf16.mxu1 %v14285_v35  ;;  %v14346_v35 = vld [vmem:[#allocation8 + $0x1548] ss:$40 sps:$4 sm:$0xff]  }
 0x405   :  { %9659 = vmatpush1.bf16.msra.mxu0 %v14280_v49  ;;  %v14354_v49 = vld [vmem:[#allocation8 + $0x159c] ss:$40 sps:$4 sm:$0xff]  }
 0x406   :  { %9660 = vmatprep.subr.bf16.mxu0 %v14288_v53  ;;  %v14349_v53 = vld [vmem:[#allocation8 + $0x420] ss:$40 sps:$4 sm:$0xff]  }
 0x407   :  { %9731 = vmatpush1.bf16.msra.mxu1 %v14283_v54  ;;  %v14357_v54 = vld [vmem:[#allocation8 + $0x474] ss:$40 sps:$4 sm:$0xff]  }
 0x408   :  { %9732 = vmatprep.subr.bf16.mxu1 %v14291_v57  ;;  %v14352_v57 = vld [vmem:[#allocation8 + $0x1598] ss:$40 sps:$4 sm:$0xff]  }
 0x409   :  { %9661 = vmatpush1.bf16.msra.mxu0 %v14286_v0  ;;  %v14360_v0 = vld [vmem:[#allocation8 + $0x15ec] ss:$40 sps:$4 sm:$0xff]  }
 0x40a   :  { %9662 = vmatprep.subr.bf16.mxu0 %v14294_v58  ;;  %v14355_v58 = vld [vmem:[#allocation8 + $0x470] ss:$40 sps:$4 sm:$0xff]  }
 0x40b   :  { %9733 = vmatpush1.bf16.msra.mxu1 %v14289_v59  ;;  %v14363_v59 = vld [vmem:[#allocation8 + $0x4c4] ss:$40 sps:$4 sm:$0xff]  }
 0x40c   :  { %9734 = vmatprep.subr.bf16.mxu1 %v14297_v60  ;;  %v14358_v60 = vld [vmem:[#allocation8 + $0x15e8] ss:$40 sps:$4 sm:$0xff]  }
 0x40d   :  { %9663 = vmatpush1.bf16.msra.mxu0 %v14292_v61  ;;  %v14366_v61 = vld [vmem:[#allocation8 + $0x163c] ss:$40 sps:$4 sm:$0xff]  }
 0x40e   :  { %9664 = vmatprep.subr.bf16.mxu0 %v14300_v62  ;;  %v14361_v62 = vld [vmem:[#allocation8 + $0x4c0] ss:$40 sps:$4 sm:$0xff]  }
 0x40f   :  { %9735 = vmatpush1.bf16.msra.mxu1 %v14295_v63  ;;  %v14369_v63 = vld [vmem:[#allocation8 + $0x514] ss:$40 sps:$4 sm:$0xff]  }
 0x410   :  { %9736 = vmatprep.subr.bf16.mxu1 %v14303_v1  ;;  %v14364_v1 = vld [vmem:[#allocation8 + $0x1638] ss:$40 sps:$4 sm:$0xff]  }
 0x411   :  { %9665 = vmatpush1.bf16.msra.mxu0 %v14298_v2  ;;  %v14372_v2 = vld [vmem:[#allocation8 + $0x168c] ss:$40 sps:$4 sm:$0xff]  }
 0x412   :  { %9666 = vmatprep.subr.bf16.mxu0 %v14306_v3  ;;  %v14367_v3 = vld [vmem:[#allocation8 + $0x510] ss:$40 sps:$4 sm:$0xff]  }
 0x413   :  { %9737 = vmatpush1.bf16.msra.mxu1 %v14301_v4  ;;  %v14375_v4 = vld [vmem:[#allocation8 + $0x564] ss:$40 sps:$4 sm:$0xff]  }
 0x414   :  { %9738 = vmatprep.subr.bf16.mxu1 %v14309_v5  ;;  %v14370_v5 = vld [vmem:[#allocation8 + $0x1688] ss:$40 sps:$4 sm:$0xff]  }
 0x415   :  { %9667 = vmatpush1.bf16.msra.mxu0 %v14304_v6  ;;  %v14378_v6 = vld [vmem:[#allocation8 + $0x16dc] ss:$40 sps:$4 sm:$0xff]  }
 0x416   :  { %9668 = vmatprep.subr.bf16.mxu0 %v14312_v7  ;;  %v14373_v7 = vld [vmem:[#allocation8 + $0x560] ss:$40 sps:$4 sm:$0xff]  }
 0x417   :  { %9739 = vmatpush1.bf16.msra.mxu1 %v14307_v50  ;;  %v14381_v50 = vld [vmem:[#allocation8 + $0x5b4] ss:$40 sps:$4 sm:$0xff]  }
 0x418   :  { %9740 = vmatprep.subr.bf16.mxu1 %v14315_v8  ;;  %v14376_v8 = vld [vmem:[#allocation8 + $0x16d8] ss:$40 sps:$4 sm:$0xff]  }
 0x419   :  { %9669 = vmatpush1.bf16.msra.mxu0 %v14310_v10  ;;  %v14384_v10 = vld [vmem:[#allocation8 + $0x172c] ss:$40 sps:$4 sm:$0xff]  }
 0x41a   :  { %9670 = vmatprep.subr.bf16.mxu0 %v14318_v11  ;;  %v14379_v11 = vld [vmem:[#allocation8 + $0x5b0] ss:$40 sps:$4 sm:$0xff]  }
 0x41b   :  { %9741 = vmatpush1.bf16.msra.mxu1 %v14313_v12  ;;  %v14387_v12 = vld [vmem:[#allocation8 + $0x604] ss:$40 sps:$4 sm:$0xff]  }
 0x41c   :  { %9742 = vmatprep.subr.bf16.mxu1 %v14321_v13  ;;  %v14382_v13 = vld [vmem:[#allocation8 + $0x1728] ss:$40 sps:$4 sm:$0xff]  }
 0x41d   :  { %9671 = vmatpush1.bf16.msra.mxu0 %v14316_v14  ;;  %v14390_v14 = vld [vmem:[#allocation8 + $0x177c] ss:$40 sps:$4 sm:$0xff]  }
 0x41e   :  { %9683 = vmatprep.subr.bf16.mxu0 %v14324_v15  ;;  %v14385_v15 = vld [vmem:[#allocation8 + $0x600] ss:$40 sps:$4 sm:$0xff]  }
 0x41f   :  { %9743 = vmatpush1.bf16.msra.mxu1 %v14319_v16  ;;  %v14393_v16 = vld [vmem:[#allocation8 + $0x654] ss:$40 sps:$4 sm:$0xff]  }
 0x420   :  { %9673 = vmatmul.mubr.bf16.vlgmr.msra.gmra.mrb[12].mxu0 %v15567_v29  ;;  %9744 = vmatprep.subr.bf16.mxu1 %v14327_v9  ;;  %v14388_v9 = vld [vmem:[#allocation8 + $0x1778] ss:$40 sps:$4 sm:$0xff]  }
 0x421   :  { %9684 = vmatpush1.bf16.msra.mxu0 %v14322_v18  ;;  %9715 = vmatprep.mubr.bf16.mxu0 %v15589_v17  ;;  %v14396_v18 = vld [vmem:[#allocation8 + $0x17cc] ss:$40 sps:$4 sm:$0xff]  }
 0x422   :  { %9685 = vmatprep.subr.bf16.mxu0 %v14330_v19  ;;  %v14391_v19 = vld [vmem:[#allocation8 + $0x650] ss:$40 sps:$4 sm:$0xff]  }
 0x423   :  { %9745 = vmatpush1.bf16.msra.mxu1 %v14325_v20  ;;  %v14399_v20 = vld [vmem:[#allocation8 + $0x6a4] ss:$40 sps:$4 sm:$0xff]  }
 0x424   :  { %9746 = vmatprep.subr.bf16.mxu1 %v14333_v21  ;;  %v14394_v21 = vld [vmem:[#allocation8 + $0x17c8] ss:$40 sps:$4 sm:$0xff]  }
 0x425   :  { %9686 = vmatpush1.bf16.msra.mxu0 %v14328_v36  ;;  %v14402_v36 = vld [vmem:[#allocation8 + $0x181c] ss:$40 sps:$4 sm:$0xff]  }
 0x426   :  { %9687 = vmatprep.subr.bf16.mxu0 %v14336_v22  ;;  %v14397_v22 = vld [vmem:[#allocation8 + $0x6a0] ss:$40 sps:$4 sm:$0xff]  }
 0x427   :  { %9747 = vmatpush1.bf16.msra.mxu1 %v14331_v23  ;;  %v14405_v23 = vld [vmem:[#allocation8 + $0x6f4] ss:$40 sps:$4 sm:$0xff]  }
 0x428   :  { %9748 = vmatprep.subr.bf16.mxu1 %v14339_v25  ;;  %v14400_v25 = vld [vmem:[#allocation8 + $0x1818] ss:$40 sps:$4 sm:$0xff]  }
 0x429   :  { %9688 = vmatpush1.bf16.msra.mxu0 %v14334_v27  ;;  %v14408_v27 = vld [vmem:[#allocation8 + $0x186c] ss:$40 sps:$4 sm:$0xff]  }
 0x42a   :  { %9689 = vmatprep.subr.bf16.mxu0 %v14342_v30  ;;  %v14403_v30 = vld [vmem:[#allocation8 + $0x6f0] ss:$40 sps:$4 sm:$0xff]  }
 0x42b   :  { %9749 = vmatpush1.bf16.msra.mxu1 %v14337_v34  ;;  %v14411_v34 = vld [vmem:[#allocation8 + $0x744] ss:$40 sps:$4 sm:$0xff]  }
 0x42c   :  { %9750 = vmatprep.subr.bf16.mxu1 %v14345_v37  ;;  %v14406_v37 = vld [vmem:[#allocation8 + $0x1868] ss:$40 sps:$4 sm:$0xff]  }
 0x42d   :  { %9690 = vmatpush1.bf16.msra.mxu0 %v14340_v38  ;;  %v14414_v38 = vld [vmem:[#allocation8 + $0x18bc] ss:$40 sps:$4 sm:$0xff]  }
 0x42e   :  { %9691 = vmatprep.subr.bf16.mxu0 %v14348_v39  ;;  %v14409_v39 = vld [vmem:[#allocation8 + $0x740] ss:$40 sps:$4 sm:$0xff]  }
 0x42f   :  { %9751 = vmatpush1.bf16.msra.mxu1 %v14343_v42  ;;  %v14417_v42 = vld [vmem:[#allocation8 + $0x794] ss:$40 sps:$4 sm:$0xff]  }
 0x430   :  { %9752 = vmatprep.subr.bf16.mxu1 %v14351_v24  ;;  %v14412_v24 = vld [vmem:[#allocation8 + $0x18b8] ss:$40 sps:$4 sm:$0xff]  }
 0x431   :  { %9692 = vmatpush1.bf16.msra.mxu0 %v14346_v35  ;;  %v14420_v35 = vld [vmem:[#allocation8 + $0x1c] ss:$40 sps:$4 sm:$0xff]  }
 0x432   :  { %9693 = vmatprep.subr.bf16.mxu0 %v14354_v49  ;;  %v14415_v49 = vld [vmem:[#allocation8 + $0x790] ss:$40 sps:$4 sm:$0xff]  }
 0x433   :  { %9753 = vmatpush1.bf16.msra.mxu1 %v14349_v53  ;;  %v14423_v53 = vld [vmem:[#allocation8 + $0x7e4] ss:$40 sps:$4 sm:$0xff]  }
 0x434   :  { %9754 = vmatprep.subr.bf16.mxu1 %v14357_v54  ;;  %v14418_v54 = vld [vmem:[#allocation8 + $0x18] ss:$40 sps:$4 sm:$0xff]  }
 0x435   :  { %9694 = vmatpush1.bf16.msra.mxu0 %v14352_v57  ;;  %v14426_v57 = vld [vmem:[#allocation8 + $0x6c] ss:$40 sps:$4 sm:$0xff]  }
 0x436   :  { %9695 = vmatprep.subr.bf16.mxu0 %v14360_v0  ;;  %v14421_v0 = vld [vmem:[#allocation8 + $0x7e0] ss:$40 sps:$4 sm:$0xff]  }
 0x437   :  { %9755 = vmatpush1.bf16.msra.mxu1 %v14355_v58  ;;  %v14429_v58 = vld [vmem:[#allocation8 + $0x834] ss:$40 sps:$4 sm:$0xff]  }
 0x438   :  { %9756 = vmatprep.subr.bf16.mxu1 %v14363_v59  ;;  %v14424_v59 = vld [vmem:[#allocation8 + $0x68] ss:$40 sps:$4 sm:$0xff]  }
 0x439   :  { %9696 = vmatpush1.bf16.msra.mxu0 %v14358_v60  ;;  %v14432_v60 = vld [vmem:[#allocation8 + $0xbc] ss:$40 sps:$4 sm:$0xff]  }
 0x43a   :  { %9697 = vmatprep.subr.bf16.mxu0 %v14366_v61  ;;  %v14427_v61 = vld [vmem:[#allocation8 + $0x830] ss:$40 sps:$4 sm:$0xff]  }
 0x43b   :  { %9757 = vmatpush1.bf16.msra.mxu1 %v14361_v62  ;;  %v14435_v62 = vld [vmem:[#allocation8 + $0x884] ss:$40 sps:$4 sm:$0xff]  }
 0x43c   :  { %9769 = vmatprep.subr.bf16.mxu1 %v14369_v63  ;;  %v14430_v63 = vld [vmem:[#allocation8 + $0xb8] ss:$40 sps:$4 sm:$0xff]  }
 0x43d   :  { %9698 = vmatpush1.bf16.msra.mxu0 %v14364_v1  ;;  %v14438_v1 = vld [vmem:[#allocation8 + $0x10c] ss:$40 sps:$4 sm:$0xff]  }
 0x43e   :  { %9759 = vmatmul.mubr.bf16.vlgmr.msra.gmra.mrb[12].mxu1 %v15532_v40  ;;  %9699 = vmatprep.subr.bf16.mxu0 %v14372_v2  ;;  %v14433_v2 = vld [vmem:[#allocation8 + $0x880] ss:$40 sps:$4 sm:$0xff]  }
 0x43f   :  { %9770 = vmatpush1.bf16.msra.mxu1 %v14367_v3  ;;  %9801 = vmatprep.mubr.bf16.mxu1 %v15538_v46  ;;  %v14441_v3 = vld [vmem:[#allocation8 + $0x8d4] ss:$40 sps:$4 sm:$0xff]  }
 0x440   :  { %9771 = vmatprep.subr.bf16.mxu1 %v14375_v4  ;;  %v14436_v4 = vld [vmem:[#allocation8 + $0x108] ss:$40 sps:$4 sm:$0xff]  }
 0x441   :  { %9700 = vmatpush1.bf16.msra.mxu0 %v14370_v5  ;;  %v14444_v5 = vld [vmem:[#allocation8 + $0x15c] ss:$40 sps:$4 sm:$0xff]  }
 0x442   :  { %9701 = vmatprep.subr.bf16.mxu0 %v14378_v6  ;;  %v14439_v6 = vld [vmem:[#allocation8 + $0x8d0] ss:$40 sps:$4 sm:$0xff]  }
 0x443   :  { %9772 = vmatpush1.bf16.msra.mxu1 %v14373_v7  ;;  %v14447_v7 = vld [vmem:[#allocation8 + $0x924] ss:$40 sps:$4 sm:$0xff]  }
 0x444   :  { %9773 = vmatprep.subr.bf16.mxu1 %v14381_v50  ;;  %v14442_v50 = vld [vmem:[#allocation8 + $0x158] ss:$40 sps:$4 sm:$0xff]  }
 0x445   :  { %9702 = vmatpush1.bf16.msra.mxu0 %v14376_v8  ;;  %v14450_v8 = vld [vmem:[#allocation8 + $0x1ac] ss:$40 sps:$4 sm:$0xff]  }
 0x446   :  { %9703 = vmatprep.subr.bf16.mxu0 %v14384_v10  ;;  %v14445_v10 = vld [vmem:[#allocation8 + $0x920] ss:$40 sps:$4 sm:$0xff]  }
 0x447   :  { %9774 = vmatpush1.bf16.msra.mxu1 %v14379_v11  ;;  %v14453_v11 = vld [vmem:[#allocation8 + $0x974] ss:$40 sps:$4 sm:$0xff]  }
 0x448   :  { %9775 = vmatprep.subr.bf16.mxu1 %v14387_v12  ;;  %v14448_v12 = vld [vmem:[#allocation8 + $0x1a8] ss:$40 sps:$4 sm:$0xff]  }
 0x449   :  { %9704 = vmatpush1.bf16.msra.mxu0 %v14382_v13  ;;  %v14456_v13 = vld [vmem:[#allocation8 + $0x1fc] ss:$40 sps:$4 sm:$0xff]  }
 0x44a   :  { %9705 = vmatprep.subr.bf16.mxu0 %v14390_v14  ;;  %v14451_v14 = vld [vmem:[#allocation8 + $0x970] ss:$40 sps:$4 sm:$0xff]  }
 0x44b   :  { %9776 = vmatpush1.bf16.msra.mxu1 %v14385_v15  ;;  %v14459_v15 = vld [vmem:[#allocation8 + $0x9c4] ss:$40 sps:$4 sm:$0xff]  }
 0x44c   :  { %9777 = vmatprep.subr.bf16.mxu1 %v14393_v16  ;;  %v14454_v16 = vld [vmem:[#allocation8 + $0x1f8] ss:$40 sps:$4 sm:$0xff]  }
 0x44d   :  { %9706 = vmatpush1.bf16.msra.mxu0 %v14388_v9  ;;  %v14462_v9 = vld [vmem:[#allocation8 + $0x24c] ss:$40 sps:$4 sm:$0xff]  }
 0x44e   :  { %9707 = vmatprep.subr.bf16.mxu0 %v14396_v18  ;;  %v14457_v18 = vld [vmem:[#allocation8 + $0x9c0] ss:$40 sps:$4 sm:$0xff]  }
 0x44f   :  { %9778 = vmatpush1.bf16.msra.mxu1 %v14391_v19  ;;  %v14465_v19 = vld [vmem:[#allocation8 + $0xa14] ss:$40 sps:$4 sm:$0xff]  }
 0x450   :  { %9779 = vmatprep.subr.bf16.mxu1 %v14399_v20  ;;  %v14460_v20 = vld [vmem:[#allocation8 + $0x248] ss:$40 sps:$4 sm:$0xff]  }
 0x451   :  { %9708 = vmatpush1.bf16.msra.mxu0 %v14394_v21  ;;  %v14468_v21 = vld [vmem:[#allocation8 + $0x29c] ss:$40 sps:$4 sm:$0xff]  }
 0x452   :  { %9709 = vmatprep.subr.bf16.mxu0 %v14402_v36  ;;  %v14463_v36 = vld [vmem:[#allocation8 + $0xa10] ss:$40 sps:$4 sm:$0xff]  }
 0x453   :  { %9780 = vmatpush1.bf16.msra.mxu1 %v14397_v22  ;;  %v14471_v22 = vld [vmem:[#allocation8 + $0xa64] ss:$40 sps:$4 sm:$0xff]  }
 0x454   :  { %9781 = vmatprep.subr.bf16.mxu1 %v14405_v23  ;;  %v14466_v23 = vld [vmem:[#allocation8 + $0x298] ss:$40 sps:$4 sm:$0xff]  }
 0x455   :  { %9710 = vmatpush1.bf16.msra.mxu0 %v14400_v25  ;;  %v14474_v25 = vld [vmem:[#allocation8 + $0x2ec] ss:$40 sps:$4 sm:$0xff]  }
 0x456   :  { %9711 = vmatprep.subr.bf16.mxu0 %v14408_v27  ;;  %v14469_v27 = vld [vmem:[#allocation8 + $0xa60] ss:$40 sps:$4 sm:$0xff]  }
 0x457   :  { %9782 = vmatpush1.bf16.msra.mxu1 %v14403_v30  ;;  %v14477_v30 = vld [vmem:[#allocation8 + $0xab4] ss:$40 sps:$4 sm:$0xff]  }
 0x458   :  { %9783 = vmatprep.subr.bf16.mxu1 %v14411_v34  ;;  %v14472_v34 = vld [vmem:[#allocation8 + $0x2e8] ss:$40 sps:$4 sm:$0xff]  }
 0x459   :  { %9712 = vmatpush1.bf16.msra.mxu0 %v14406_v37  ;;  %v14480_v37 = vld [vmem:[#allocation8 + $0x33c] ss:$40 sps:$4 sm:$0xff]  }
 0x45a   :  { %9713 = vmatprep.subr.bf16.mxu0 %v14414_v38  ;;  %v14475_v38 = vld [vmem:[#allocation8 + $0xab0] ss:$40 sps:$4 sm:$0xff]  }
 0x45b   :  { %9784 = vmatpush1.bf16.msra.mxu1 %v14409_v39  ;;  %v14483_v39 = vld [vmem:[#allocation8 + $0xb04] ss:$40 sps:$4 sm:$0xff]  }
 0x45c   :  { %9785 = vmatprep.subr.bf16.mxu1 %v14417_v42  ;;  %v14478_v42 = vld [vmem:[#allocation8 + $0x338] ss:$40 sps:$4 sm:$0xff]  }
 0x45d   :  { %9714 = vmatpush1.bf16.msra.mxu0 %v14412_v24  ;;  %v14486_v24 = vld [vmem:[#allocation8 + $0x38c] ss:$40 sps:$4 sm:$0xff]  }
 0x45e   :  { %9941 = vmatprep.subr.bf16.mxu0 %v14420_v35  ;;  %v14481_v35 = vld [vmem:[#allocation8 + $0xb00] ss:$40 sps:$4 sm:$0xff]  }
 0x45f   :  { %9786 = vmatpush1.bf16.msra.mxu1 %v14415_v49  ;;  %v14489_v49 = vld [vmem:[#allocation8 + $0xb54] ss:$40 sps:$4 sm:$0xff]  }
 0x460   :  { %9716 = vmatmul.mubr.bf16.vlgmr.msra.gmra.mrb[12].mxu0 %v15587_v33  ;;  %9787 = vmatprep.subr.bf16.mxu1 %v14423_v53  ;;  %v14484_v53 = vld [vmem:[#allocation8 + $0x388] ss:$40 sps:$4 sm:$0xff]  }
 0x461   :  { %9942 = vmatpush1.bf16.msra.mxu0 %v14418_v54  ;;  %9973 = vmatprep.mubr.bf16.mxu0 %v15536_v45  ;;  %v14492_v54 = vld [vmem:[#allocation8 + $0x3dc] ss:$40 sps:$4 sm:$0xff]  }
 0x462   :  { %9943 = vmatprep.subr.bf16.mxu0 %v14426_v57  ;;  %v14487_v57 = vld [vmem:[#allocation8 + $0xb50] ss:$40 sps:$4 sm:$0xff]  }
 0x463   :  { %9788 = vmatpush1.bf16.msra.mxu1 %v14421_v0  ;;  %v14495_v0 = vld [vmem:[#allocation8 + $0xba4] ss:$40 sps:$4 sm:$0xff]  }
 0x464   :  { %9789 = vmatprep.subr.bf16.mxu1 %v14429_v58  ;;  %v14490_v58 = vld [vmem:[#allocation8 + $0x3d8] ss:$40 sps:$4 sm:$0xff]  }
 0x465   :  { %9944 = vmatpush1.bf16.msra.mxu0 %v14424_v59  ;;  %v14498_v59 = vld [vmem:[#allocation8 + $0x42c] ss:$40 sps:$4 sm:$0xff]  }
 0x466   :  { %9945 = vmatprep.subr.bf16.mxu0 %v14432_v60  ;;  %v14493_v60 = vld [vmem:[#allocation8 + $0xba0] ss:$40 sps:$4 sm:$0xff]  }
 0x467   :  { %9790 = vmatpush1.bf16.msra.mxu1 %v14427_v61  ;;  %v14501_v61 = vld [vmem:[#allocation8 + $0xbf4] ss:$40 sps:$4 sm:$0xff]  }
 0x468   :  { %9791 = vmatprep.subr.bf16.mxu1 %v14435_v62  ;;  %v14496_v62 = vld [vmem:[#allocation8 + $0x428] ss:$40 sps:$4 sm:$0xff]  }
 0x469   :  { %9946 = vmatpush1.bf16.msra.mxu0 %v14430_v63  ;;  %v14504_v63 = vld [vmem:[#allocation8 + $0x47c] ss:$40 sps:$4 sm:$0xff]  }
 0x46a   :  { %9947 = vmatprep.subr.bf16.mxu0 %v14438_v1  ;;  %v14499_v1 = vld [vmem:[#allocation8 + $0xbf0] ss:$40 sps:$4 sm:$0xff]  }
 0x46b   :  { %9792 = vmatpush1.bf16.msra.mxu1 %v14433_v2  ;;  %v14507_v2 = vld [vmem:[#allocation8 + $0xc44] ss:$40 sps:$4 sm:$0xff]  }
 0x46c   :  { %9793 = vmatprep.subr.bf16.mxu1 %v14441_v3  ;;  %v14502_v3 = vld [vmem:[#allocation8 + $0x478] ss:$40 sps:$4 sm:$0xff]  }
 0x46d   :  { %9948 = vmatpush1.bf16.msra.mxu0 %v14436_v4  ;;  %v14510_v4 = vld [vmem:[#allocation8 + $0x4cc] ss:$40 sps:$4 sm:$0xff]  }
 0x46e   :  { %9949 = vmatprep.subr.bf16.mxu0 %v14444_v5  ;;  %v14505_v5 = vld [vmem:[#allocation8 + $0xc40] ss:$40 sps:$4 sm:$0xff]  }
 0x46f   :  { %9794 = vmatpush1.bf16.msra.mxu1 %v14439_v6  ;;  %v14513_v6 = vld [vmem:[#allocation8 + $0xc94] ss:$40 sps:$4 sm:$0xff]  }
 0x470   :  { %9795 = vmatprep.subr.bf16.mxu1 %v14447_v7  ;;  %v14508_v7 = vld [vmem:[#allocation8 + $0x4c8] ss:$40 sps:$4 sm:$0xff]  }
 0x471   :  { %9950 = vmatpush1.bf16.msra.mxu0 %v14442_v50  ;;  %v14516_v50 = vld [vmem:[#allocation8 + $0x51c] ss:$40 sps:$4 sm:$0xff]  }
 0x472   :  { %9951 = vmatprep.subr.bf16.mxu0 %v14450_v8  ;;  %v14511_v8 = vld [vmem:[#allocation8 + $0xc90] ss:$40 sps:$4 sm:$0xff]  }
 0x473   :  { %9796 = vmatpush1.bf16.msra.mxu1 %v14445_v10  ;;  %v14519_v10 = vld [vmem:[#allocation8 + $0xce4] ss:$40 sps:$4 sm:$0xff]  }
 0x474   :  { %9797 = vmatprep.subr.bf16.mxu1 %v14453_v11  ;;  %v14514_v11 = vld [vmem:[#allocation8 + $0x518] ss:$40 sps:$4 sm:$0xff]  }
 0x475   :  { %9952 = vmatpush1.bf16.msra.mxu0 %v14448_v12  ;;  %v14522_v12 = vld [vmem:[#allocation8 + $0x56c] ss:$40 sps:$4 sm:$0xff]  }
 0x476   :  { %9953 = vmatprep.subr.bf16.mxu0 %v14456_v13  ;;  %v14517_v13 = vld [vmem:[#allocation8 + $0xce0] ss:$40 sps:$4 sm:$0xff]  }
 0x477   :  { %9798 = vmatpush1.bf16.msra.mxu1 %v14451_v14  ;;  %v14525_v14 = vld [vmem:[#allocation8 + $0xd34] ss:$40 sps:$4 sm:$0xff]  }
 0x478   :  { %9799 = vmatprep.subr.bf16.mxu1 %v14459_v15  ;;  %v14520_v15 = vld [vmem:[#allocation8 + $0x568] ss:$40 sps:$4 sm:$0xff]  }
 0x479   :  { %9954 = vmatpush1.bf16.msra.mxu0 %v14454_v16  ;;  %v14528_v16 = vld [vmem:[#allocation8 + $0x5bc] ss:$40 sps:$4 sm:$0xff]  }
 0x47a   :  { %9955 = vmatprep.subr.bf16.mxu0 %v14462_v9  ;;  %v14523_v9 = vld [vmem:[#allocation8 + $0xd30] ss:$40 sps:$4 sm:$0xff]  }
 0x47b   :  { %9800 = vmatpush1.bf16.msra.mxu1 %v14457_v18  ;;  %v14531_v18 = vld [vmem:[#allocation8 + $0xd84] ss:$40 sps:$4 sm:$0xff]  }
 0x47c   :  { %9812 = vmatprep.subr.bf16.mxu1 %v14465_v19  ;;  %v14526_v19 = vld [vmem:[#allocation8 + $0x5b8] ss:$40 sps:$4 sm:$0xff]  }
 0x47d   :  { %9956 = vmatpush1.bf16.msra.mxu0 %v14460_v20  ;;  %v14534_v20 = vld [vmem:[#allocation8 + $0x60c] ss:$40 sps:$4 sm:$0xff]  }
 0x47e   :  { %9802 = vmatmul.mubr.bf16.vlgmr.msra.gmra.mrb[12].mxu1 %v15534_v41  ;;  %9957 = vmatprep.subr.bf16.mxu0 %v14468_v21  ;;  %v14529_v21 = vld [vmem:[#allocation8 + $0xd80] ss:$40 sps:$4 sm:$0xff]  }
 0x47f   :  { %9813 = vmatpush1.bf16.msra.mxu1 %v14463_v36  ;;  %9844 = vmatprep.mubr.bf16.mxu1 %v15569_v31  ;;  %v14537_v36 = vld [vmem:[#allocation8 + $0xdd4] ss:$40 sps:$4 sm:$0xff]  }
 0x480   :  { %9814 = vmatprep.subr.bf16.mxu1 %v14471_v22  ;;  %v14532_v22 = vld [vmem:[#allocation8 + $0x608] ss:$40 sps:$4 sm:$0xff]  }
 0x481   :  { %9958 = vmatpush1.bf16.msra.mxu0 %v14466_v23  ;;  %v14540_v23 = vld [vmem:[#allocation8 + $0x65c] ss:$40 sps:$4 sm:$0xff]  }
 0x482   :  { %9959 = vmatprep.subr.bf16.mxu0 %v14474_v25  ;;  %v14535_v25 = vld [vmem:[#allocation8 + $0xdd0] ss:$40 sps:$4 sm:$0xff]  }
 0x483   :  { %9815 = vmatpush1.bf16.msra.mxu1 %v14469_v27  ;;  %v14543_v27 = vld [vmem:[#allocation8 + $0xe24] ss:$40 sps:$4 sm:$0xff]  }
 0x484   :  { %9816 = vmatprep.subr.bf16.mxu1 %v14477_v30  ;;  %v14538_v30 = vld [vmem:[#allocation8 + $0x658] ss:$40 sps:$4 sm:$0xff]  }
 0x485   :  { %9960 = vmatpush1.bf16.msra.mxu0 %v14472_v34  ;;  %v14546_v34 = vld [vmem:[#allocation8 + $0x6ac] ss:$40 sps:$4 sm:$0xff]  }
 0x486   :  { %9961 = vmatprep.subr.bf16.mxu0 %v14480_v37  ;;  %v14541_v37 = vld [vmem:[#allocation8 + $0xe20] ss:$40 sps:$4 sm:$0xff]  }
 0x487   :  { %9817 = vmatpush1.bf16.msra.mxu1 %v14475_v38  ;;  %v14549_v38 = vld [vmem:[#allocation8 + $0xe74] ss:$40 sps:$4 sm:$0xff]  }
 0x488   :  { %9818 = vmatprep.subr.bf16.mxu1 %v14483_v39  ;;  %v14544_v39 = vld [vmem:[#allocation8 + $0x6a8] ss:$40 sps:$4 sm:$0xff]  }
 0x489   :  { %9962 = vmatpush1.bf16.msra.mxu0 %v14478_v42  ;;  %v14552_v42 = vld [vmem:[#allocation8 + $0x6fc] ss:$40 sps:$4 sm:$0xff]  }
 0x48a   :  { %9963 = vmatprep.subr.bf16.mxu0 %v14486_v24  ;;  %v14547_v24 = vld [vmem:[#allocation8 + $0xe70] ss:$40 sps:$4 sm:$0xff]  }
 0x48b   :  { %9819 = vmatpush1.bf16.msra.mxu1 %v14481_v35  ;;  %v14555_v35 = vld [vmem:[#allocation8 + $0xec4] ss:$40 sps:$4 sm:$0xff]  }
 0x48c   :  { %9820 = vmatprep.subr.bf16.mxu1 %v14489_v49  ;;  %v14550_v49 = vld [vmem:[#allocation8 + $0x6f8] ss:$40 sps:$4 sm:$0xff]  }
 0x48d   :  { %9964 = vmatpush1.bf16.msra.mxu0 %v14484_v53  ;;  %v14558_v53 = vld [vmem:[#allocation8 + $0x74c] ss:$40 sps:$4 sm:$0xff]  }
 0x48e   :  { %9965 = vmatprep.subr.bf16.mxu0 %v14492_v54  ;;  %v14553_v54 = vld [vmem:[#allocation8 + $0xec0] ss:$40 sps:$4 sm:$0xff]  }
 0x48f   :  { %9821 = vmatpush1.bf16.msra.mxu1 %v14487_v57  ;;  %v14561_v57 = vld [vmem:[#allocation8 + $0xf14] ss:$40 sps:$4 sm:$0xff]  }
 0x490   :  { %9822 = vmatprep.subr.bf16.mxu1 %v14495_v0  ;;  %v14556_v0 = vld [vmem:[#allocation8 + $0x748] ss:$40 sps:$4 sm:$0xff]  }
 0x491   :  { %9966 = vmatpush1.bf16.msra.mxu0 %v14490_v58  ;;  %v14564_v58 = vld [vmem:[#allocation8 + $0x79c] ss:$40 sps:$4 sm:$0xff]  }
 0x492   :  { %9967 = vmatprep.subr.bf16.mxu0 %v14498_v59  ;;  %v14559_v59 = vld [vmem:[#allocation8 + $0xf10] ss:$40 sps:$4 sm:$0xff]  }
 0x493   :  { %9823 = vmatpush1.bf16.msra.mxu1 %v14493_v60  ;;  %v14567_v60 = vld [vmem:[#allocation8 + $0xf64] ss:$40 sps:$4 sm:$0xff]  }
 0x494   :  { %9824 = vmatprep.subr.bf16.mxu1 %v14501_v61  ;;  %v14562_v61 = vld [vmem:[#allocation8 + $0x798] ss:$40 sps:$4 sm:$0xff]  }
 0x495   :  { %9968 = vmatpush1.bf16.msra.mxu0 %v14496_v62  ;;  %v14570_v62 = vld [vmem:[#allocation8 + $0x7ec] ss:$40 sps:$4 sm:$0xff]  }
 0x496   :  { %9969 = vmatprep.subr.bf16.mxu0 %v14504_v63  ;;  %v14565_v63 = vld [vmem:[#allocation8 + $0xf60] ss:$40 sps:$4 sm:$0xff]  }
 0x497   :  { %9825 = vmatpush1.bf16.msra.mxu1 %v14499_v1  ;;  %v14573_v1 = vld [vmem:[#allocation8 + $0xfb4] ss:$40 sps:$4 sm:$0xff]  }
 0x498   :  { %9826 = vmatprep.subr.bf16.mxu1 %v14507_v2  ;;  %v14568_v2 = vld [vmem:[#allocation8 + $0x7e8] ss:$40 sps:$4 sm:$0xff]  }
 0x499   :  { %9970 = vmatpush1.bf16.msra.mxu0 %v14502_v3  ;;  %v14576_v3 = vld [vmem:[#allocation8 + $0x83c] ss:$40 sps:$4 sm:$0xff]  }
 0x49a   :  { %9971 = vmatprep.subr.bf16.mxu0 %v14510_v4  ;;  %v14571_v4 = vld [vmem:[#allocation8 + $0xfb0] ss:$40 sps:$4 sm:$0xff]  }
 0x49b   :  { %9827 = vmatpush1.bf16.msra.mxu1 %v14505_v5  ;;  %v14579_v5 = vld [vmem:[#allocation8 + $0x1004] ss:$40 sps:$4 sm:$0xff]  }
 0x49c   :  { %9828 = vmatprep.subr.bf16.mxu1 %v14513_v6  ;;  %v14574_v6 = vld [vmem:[#allocation8 + $0x838] ss:$40 sps:$4 sm:$0xff]  }
 0x49d   :  { %9972 = vmatpush1.bf16.msra.mxu0 %v14508_v7  ;;  %v14582_v7 = vld [vmem:[#allocation8 + $0x88c] ss:$40 sps:$4 sm:$0xff]  }
 0x49e   :  { %9984 = vmatprep.subr.bf16.mxu0 %v14516_v50  ;;  %v14577_v50 = vld [vmem:[#allocation8 + $0x1000] ss:$40 sps:$4 sm:$0xff]  }
 0x49f   :  { %9829 = vmatpush1.bf16.msra.mxu1 %v14511_v8  ;;  %v14585_v8 = vld [vmem:[#allocation8 + $0x1054] ss:$40 sps:$4 sm:$0xff]  }
 0x4a0   :  { %9974 = vmatmul.mubr.bf16.vlgmr.msra.gmra.mrb[16].mxu0 %v15532_v40  ;;  %9830 = vmatprep.subr.bf16.mxu1 %v14519_v10  ;;  %v14580_v10 = vld [vmem:[#allocation8 + $0x888] ss:$40 sps:$4 sm:$0xff]  }
 0x4a1   :  { %9985 = vmatpush1.bf16.msra.mxu0 %v14514_v11  ;;  %10016 = vmatprep.mubr.bf16.mxu0 %v15538_v46  ;;  %v14588_v11 = vld [vmem:[#allocation8 + $0x8dc] ss:$40 sps:$4 sm:$0xff]  }
 0x4a2   :  { %9986 = vmatprep.subr.bf16.mxu0 %v14522_v12  ;;  %v14583_v12 = vld [vmem:[#allocation8 + $0x1050] ss:$40 sps:$4 sm:$0xff]  }
 0x4a3   :  { %9831 = vmatpush1.bf16.msra.mxu1 %v14517_v13  ;;  %v15606_v13 = vld [vmem:[#allocation10] sm:$0xff] }
 0x4a4   :  { %9832 = vmatprep.subr.bf16.mxu1 %v14525_v14  ;;  %v14591_v14 = vld [vmem:[#allocation8 + $0x10a4] ss:$40 sps:$4 sm:$0xff]  }
 0x4a5   :  { %9987 = vmatpush1.bf16.msra.mxu0 %v14520_v15  ;;  %v14586_v15 = vld [vmem:[#allocation8 + $0x8d8] ss:$40 sps:$4 sm:$0xff]  }
 0x4a6   :  { %9988 = vmatprep.subr.bf16.mxu0 %v14528_v16  ;;  %v5249_v16 = vrot.slane %v15606_v13, %v15519_v51 }
 0x4a7   :  { %9833 = vmatpush1.bf16.msra.mxu1 %v14523_v9  ;;  %v14594_v9 = vld [vmem:[#allocation8 + $0x92c] ss:$40 sps:$4 sm:$0xff]  }
 0x4a8   :  { %9834 = vmatprep.subr.bf16.mxu1 %v14531_v18  ;;  %v14589_v18 = vld [vmem:[#allocation8 + $0x10a0] ss:$40 sps:$4 sm:$0xff]  }
 0x4a9   :  { %9989 = vmatpush1.bf16.msra.mxu0 %v14526_v19  ;;  %v5253_v19 = vrot.slane %v15606_v13, %v15523_v55 }
 0x4aa   :  { %9990 = vmatprep.subr.bf16.mxu0 %v14534_v20  ;;  %v14597_v20 = vld [vmem:[#allocation8 + $0x10f4] ss:$40 sps:$4 sm:$0xff]  }
 0x4ab   :  { %9835 = vmatpush1.bf16.msra.mxu1 %v14529_v21 }
 0x4ac   :  { %9836 = vmatprep.subr.bf16.mxu1 %v14537_v36  ;;  %v14592_v36 = vld [vmem:[#allocation8 + $0x928] ss:$40 sps:$4 sm:$0xff]  }
 0x4ad   :  { %9991 = vmatpush1.bf16.msra.mxu0 %v14532_v22 }
 0x4ae   :  { %9992 = vmatprep.subr.bf16.mxu0 %v14540_v23 }
 0x4af   :  { %9837 = vmatpush1.bf16.msra.mxu1 %v14535_v25  ;;  %v14600_v25 = vld [vmem:[#allocation8 + $0x97c] ss:$40 sps:$4 sm:$0xff]  }
 0x4b0   :  { %9838 = vmatprep.subr.bf16.mxu1 %v14543_v27 }
 0x4b1   :  { %9993 = vmatpush1.bf16.msra.mxu0 %v14538_v30 }
 0x4b2   :  { %9994 = vmatprep.subr.bf16.mxu0 %v14546_v34  ;;  %v14595_v34 = vld [vmem:[#allocation8 + $0x10f0] ss:$40 sps:$4 sm:$0xff]  }
 0x4b3   :  { %9839 = vmatpush1.bf16.msra.mxu1 %v14541_v37 }
 0x4b4   :  { %9840 = vmatprep.subr.bf16.mxu1 %v14549_v38 }
 0x4b5   :  { %9995 = vmatpush1.bf16.msra.mxu0 %v14544_v39  ;;  %v14603_v39 = vld [vmem:[#allocation8 + $0x1144] ss:$40 sps:$4 sm:$0xff]  }
 0x4b6   :  { %9996 = vmatprep.subr.bf16.mxu0 %v14552_v42 }
 0x4b7   :  { %9841 = vmatpush1.bf16.msra.mxu1 %v14547_v24  ;;  %v14598_v24 = vld [vmem:[#allocation8 + $0x978] ss:$40 sps:$4 sm:$0xff]  }
 0x4b8   :  { %9842 = vmatprep.subr.bf16.mxu1 %v14555_v35 }
 0x4b9   :  { %9997 = vmatpush1.bf16.msra.mxu0 %v14550_v49 }
 0x4ba   :  { %9998 = vmatprep.subr.bf16.mxu0 %v14558_v53  ;;  %v14606_v53 = vld [vmem:[#allocation8 + $0x9cc] ss:$40 sps:$4 sm:$0xff]  }
 0x4bb   :  { %9843 = vmatpush1.bf16.msra.mxu1 %v14553_v54 }
 0x4bc   :  { %9855 = vmatprep.subr.bf16.mxu1 %v14561_v57 }
 0x4bd   :  { %9999 = vmatpush1.bf16.msra.mxu0 %v14556_v0  ;;  %v14601_v0 = vld [vmem:[#allocation8 + $0x1140] ss:$40 sps:$4 sm:$0xff]  }
 0x4be   :  { %9845 = vmatmul.mubr.bf16.vlgmr.msra.gmra.mrb[12].mxu1 %v15565_v28  ;;  %10000 = vmatprep.subr.bf16.mxu0 %v14564_v58 }
 0x4bf   :  { %9856 = vmatpush1.bf16.msra.mxu1 %v14559_v59  ;;  %9887 = vmatprep.mubr.bf16.mxu1 %v15571_v32  ;;  %v14609_v59 = vld [vmem:[#allocation8 + $0x1194] ss:$40 sps:$4 sm:$0xff]  }
 0x4c0   :  { %9857 = vmatprep.subr.bf16.mxu1 %v14567_v60 }
 0x4c1   :  { %10001 = vmatpush1.bf16.msra.mxu0 %v14562_v61  ;;  %v14604_v61 = vld [vmem:[#allocation8 + $0x9c8] ss:$40 sps:$4 sm:$0xff]  }
 0x4c2   :  { %10002 = vmatprep.subr.bf16.mxu0 %v14570_v62  ;;  %v14612_v62 = vld [vmem:[#allocation8 + $0xa1c] ss:$40 sps:$4 sm:$0xff]  }
 0x4c3   :  { %9858 = vmatpush1.bf16.msra.mxu1 %v14565_v63  ;;  %v14607_v63 = vld [vmem:[#allocation8 + $0x1190] ss:$40 sps:$4 sm:$0xff]  }
 0x4c4   :  { %9859 = vmatprep.subr.bf16.mxu1 %v14573_v1  ;;  %v14615_v1 = vld [vmem:[#allocation8 + $0x11e4] ss:$40 sps:$4 sm:$0xff]  }
 0x4c5   :  { %10003 = vmatpush1.bf16.msra.mxu0 %v14568_v2  ;;  %v14610_v2 = vld [vmem:[#allocation8 + $0xa18] ss:$40 sps:$4 sm:$0xff]  }
 0x4c6   :  { %10004 = vmatprep.subr.bf16.mxu0 %v14576_v3  ;;  %v14618_v3 = vld [vmem:[#allocation8 + $0xa6c] ss:$40 sps:$4 sm:$0xff]  }
 0x4c7   :  { %9860 = vmatpush1.bf16.msra.mxu1 %v14571_v4  ;;  %v14613_v4 = vld [vmem:[#allocation8 + $0x11e0] ss:$40 sps:$4 sm:$0xff]  }
 0x4c8   :  { %9861 = vmatprep.subr.bf16.mxu1 %v14579_v5  ;;  %v14621_v5 = vld [vmem:[#allocation8 + $0x1234] ss:$40 sps:$4 sm:$0xff]  }
 0x4c9   :  { %10005 = vmatpush1.bf16.msra.mxu0 %v14574_v6  ;;  %v14616_v6 = vld [vmem:[#allocation8 + $0xa68] ss:$40 sps:$4 sm:$0xff]  }
 0x4ca   :  { %10006 = vmatprep.subr.bf16.mxu0 %v14582_v7  ;;  %v14624_v7 = vld [vmem:[#allocation8 + $0xabc] ss:$40 sps:$4 sm:$0xff]  }
 0x4cb   :  { %9862 = vmatpush1.bf16.msra.mxu1 %v14577_v50  ;;  %v14619_v50 = vld [vmem:[#allocation8 + $0x1230] ss:$40 sps:$4 sm:$0xff]  }
 0x4cc   :  { %9863 = vmatprep.subr.bf16.mxu1 %v14585_v8  ;;  %v14627_v8 = vld [vmem:[#allocation8 + $0x1284] ss:$40 sps:$4 sm:$0xff]  }
 0x4cd   :  { %10007 = vmatpush1.bf16.msra.mxu0 %v14580_v10  ;;  %v14622_v10 = vld [vmem:[#allocation8 + $0xab8] ss:$40 sps:$4 sm:$0xff]  }
 0x4ce   :  { %10008 = vmatprep.subr.bf16.mxu0 %v14588_v11  ;;  %v14630_v11 = vld [vmem:[#allocation8 + $0xb0c] ss:$40 sps:$4 sm:$0xff]  }
 0x4cf   :  { %9864 = vmatpush1.bf16.msra.mxu1 %v14583_v12  ;;  %v14625_v12 = vld [vmem:[#allocation8 + $0x1280] ss:$40 sps:$4 sm:$0xff]  }
 0x4d0   :  { %9865 = vmatprep.subr.bf16.mxu1 %v14591_v14  ;;  %v14633_v14 = vld [vmem:[#allocation8 + $0x12d4] ss:$40 sps:$4 sm:$0xff]  }
 0x4d1   :  { %v9502_v21 = vpop.f32.mrb[8].mxu1  ;;  %10009 = vmatpush1.bf16.msra.mxu0 %v14586_v15  ;;  %v14628_v15 = vld [vmem:[#allocation8 + $0xb08] ss:$40 sps:$4 sm:$0xff]  }
 0x4d2   :  { %v12846_v22 = vadd.f32 %v9502_v21, %v5249_v16  ;;  %v9504_v23 = vpop.f32.mrb[9].mxu1  ;;  %10010 = vmatprep.subr.bf16.mxu0 %v14594_v9  ;;  %v14631_v9 = vld [vmem:[#allocation8 + $0x12d0] ss:$40 sps:$4 sm:$0xff]   ;;  %v14637_v21 = vld [vmem:[#allocation8 + $0x1320] ss:$40 sps:$4 sm:$0xff]  }
 0x4d3   :  { %v12847_v27 = vadd.f32 %v9504_v23, %v5253_v19  ;;  %9866 = vmatpush1.bf16.msra.mxu1 %v14589_v18  ;;  %v9506_v30 = vpop.f32.mrb[10].mxu1  ;;  %v14639_v18 = vld [vmem:[#allocation8 + $0x1324] ss:$40 sps:$4 sm:$0xff]  }
 0x4d4   :  { %v12848_v37 = vadd.f32 %v9506_v30, %v5249_v16  ;;  %v9508_v38 = vpop.f32.mrb[11].mxu1  ;;  %9867 = vmatprep.subr.bf16.mxu1 %v14597_v20  ;;  %v10371_v35 = vmax.f32 %v12846_v22, 0.0  ;;  %v14636_v16 = vld [vmem:[#allocation8 + $0xb5c] ss:$40 sps:$4 sm:$0xff]   ;;  %v14642_v20 = vld [vmem:[#allocation8 + $0xbac] ss:$40 sps:$4 sm:$0xff]  }
 0x4d5   :  { %v12849_v42 = vadd.f32 %v9508_v38, %v5253_v19  ;;  %10011 = vmatpush1.bf16.msra.mxu0 %v14592_v36  ;;  %v10372_v54 = vmax.f32 %v12847_v27, 0.0  ;;  %v14634_v19 = vld [vmem:[#allocation8 + $0xb58] ss:$40 sps:$4 sm:$0xff]   ;;  %v14645_v36 = vld [vmem:[#allocation8 + $0x1374] ss:$40 sps:$4 sm:$0xff]  }
 0x4d6   :  { %v10381_v49 = vmax.f32 %v12848_v37, 0.0  ;;  %10012 = vmatprep.subr.bf16.mxu0 %v14600_v25  ;;  %v14640_v22 = vld [vmem:[#allocation8 + $0xba8] ss:$40 sps:$4 sm:$0xff]   ;;  %v14648_v23 = vld [vmem:[#allocation8 + $0xbfc] ss:$40 sps:$4 sm:$0xff]  }
 0x4d7   :  { %v10382_v57 = vmax.f32 %v12849_v42, 0.0  ;;  %9868 = vmatpush1.bf16.msra.mxu1 %v14595_v34  ;;  %v14643_v25 = vld [vmem:[#allocation8 + $0x1370] ss:$40 sps:$4 sm:$0xff]   ;;  %v14651_v27 = vld [vmem:[#allocation8 + $0x13c4] ss:$40 sps:$4 sm:$0xff]  }
 0x4d8   :  { %v15612_v58 = vpack.c.bf16 %v10381_v49, %v10371_v35  ;;  %9869 = vmatprep.subr.bf16.mxu1 %v14603_v39  ;;  %v14646_v30 = vld [vmem:[#allocation8 + $0xbf8] ss:$40 sps:$4 sm:$0xff]   ;;  %v14654_v34 = vld [vmem:[#allocation8 + $0xc4c] ss:$40 sps:$4 sm:$0xff]   ;;  %v14652_v39 = vld [vmem:[#allocation8 + $0xc48] ss:$40 sps:$4 sm:$0xff]  }
 0x4d9   :  { %v15614_v60 = vpack.c.bf16 %v10382_v57, %v10372_v54  ;;  %10013 = vmatpush1.bf16.msra.mxu0 %v14598_v24  ;;  %v14649_v37 = vld [vmem:[#allocation8 + $0x13c0] ss:$40 sps:$4 sm:$0xff]   ;;  %v14657_v38 = vld [vmem:[#allocation8 + $0x1414] ss:$40 sps:$4 sm:$0xff]   ;;  %v14655_v24 = vld [vmem:[#allocation8 + $0x1410] ss:$40 sps:$4 sm:$0xff]  }
 0x4da   :  { %10014 = vmatprep.subr.bf16.mxu0 %v14606_v53  ;;  %v14660_v42 = vld [vmem:[#allocation8 + $0xc9c] ss:$40 sps:$4 sm:$0xff]   ;;  %v14658_v49 = vld [vmem:[#allocation8 + $0xc98] ss:$40 sps:$4 sm:$0xff]   ;;  %v14666_v53 = vld [vmem:[#allocation8 + $0xcec] ss:$40 sps:$4 sm:$0xff]  }
 0x4db   :  { %9870 = vmatpush1.bf16.msra.mxu1 %v14601_v0  ;;  %v14663_v35 = vld [vmem:[#allocation8 + $0x1464] ss:$40 sps:$4 sm:$0xff]   ;;  %v14661_v54 = vld [vmem:[#allocation8 + $0x1460] ss:$40 sps:$4 sm:$0xff]   ;;  %v14669_v57 = vld [vmem:[#allocation8 + $0x14b4] ss:$40 sps:$4 sm:$0xff]  }
 0x4dc   :  { %9871 = vmatprep.subr.bf16.mxu1 %v14609_v59  ;;  %v14664_v0 = vld [vmem:[#allocation8 + $0xce8] ss:$40 sps:$4 sm:$0xff]   ;;  %v14672_v59 = vld [vmem:[#allocation8 + $0xd3c] ss:$40 sps:$4 sm:$0xff]  }
 0x4dd   :  { %10015 = vmatpush1.bf16.msra.mxu0 %v14604_v61  ;;  %v14667_v61 = vld [vmem:[#allocation8 + $0x14b0] ss:$40 sps:$4 sm:$0xff]  }
 0x4de   :  { %10027 = vmatprep.subr.bf16.mxu0 %v14612_v62  ;;  %v14675_v62 = vld [vmem:[#allocation8 + $0x1504] ss:$40 sps:$4 sm:$0xff]  }
 0x4df   :  { %9872 = vmatpush1.bf16.msra.mxu1 %v14607_v63  ;;  %v14670_v63 = vld [vmem:[#allocation8 + $0xd38] ss:$40 sps:$4 sm:$0xff]  }
 0x4e0   :  { %10017 = vmatmul.mubr.bf16.vlgmr.msra.gmra.mrb[16].mxu0 %v15534_v41  ;;  %9873 = vmatprep.subr.bf16.mxu1 %v14615_v1  ;;  %v14678_v1 = vld [vmem:[#allocation8 + $0xd8c] ss:$40 sps:$4 sm:$0xff]  }
 0x4e1   :  { %10028 = vmatpush1.bf16.msra.mxu0 %v14610_v2  ;;  %10059 = vmatprep.mubr.bf16.mxu0 %v15569_v31  ;;  %v14673_v2 = vld [vmem:[#allocation8 + $0x1500] ss:$40 sps:$4 sm:$0xff]  }
 0x4e2   :  { %10029 = vmatprep.subr.bf16.mxu0 %v14618_v3  ;;  %v14681_v3 = vld [vmem:[#allocation8 + $0x1554] ss:$40 sps:$4 sm:$0xff]  }
 0x4e3   :  { %9874 = vmatpush1.bf16.msra.mxu1 %v14613_v4  ;;  %v14676_v4 = vld [vmem:[#allocation8 + $0xd88] ss:$40 sps:$4 sm:$0xff]  }
 0x4e4   :  { %9875 = vmatprep.subr.bf16.mxu1 %v14621_v5  ;;  %v14684_v5 = vld [vmem:[#allocation8 + $0xddc] ss:$40 sps:$4 sm:$0xff]  }
 0x4e5   :  { %10030 = vmatpush1.bf16.msra.mxu0 %v14616_v6  ;;  %v14679_v6 = vld [vmem:[#allocation8 + $0x1550] ss:$40 sps:$4 sm:$0xff]  }
 0x4e6   :  { %10031 = vmatprep.subr.bf16.mxu0 %v14624_v7  ;;  %v14687_v7 = vld [vmem:[#allocation8 + $0x15a4] ss:$40 sps:$4 sm:$0xff]  }
 0x4e7   :  { %9876 = vmatpush1.bf16.msra.mxu1 %v14619_v50  ;;  %v14682_v50 = vld [vmem:[#allocation8 + $0xdd8] ss:$40 sps:$4 sm:$0xff]  }
 0x4e8   :  { %9877 = vmatprep.subr.bf16.mxu1 %v14627_v8  ;;  %v14690_v8 = vld [vmem:[#allocation8 + $0xe2c] ss:$40 sps:$4 sm:$0xff]  }
 0x4e9   :  { %10032 = vmatpush1.bf16.msra.mxu0 %v14622_v10  ;;  %v14685_v10 = vld [vmem:[#allocation8 + $0x15a0] ss:$40 sps:$4 sm:$0xff]  }
 0x4ea   :  { %10033 = vmatprep.subr.bf16.mxu0 %v14630_v11  ;;  %v14693_v11 = vld [vmem:[#allocation8 + $0x15f4] ss:$40 sps:$4 sm:$0xff]  }
 0x4eb   :  { %9878 = vmatpush1.bf16.msra.mxu1 %v14625_v12  ;;  %v14688_v12 = vld [vmem:[#allocation8 + $0xe28] ss:$40 sps:$4 sm:$0xff]  }
 0x4ec   :  { %9879 = vmatprep.subr.bf16.mxu1 %v14633_v14  ;;  %v14696_v14 = vld [vmem:[#allocation8 + $0xe7c] ss:$40 sps:$4 sm:$0xff]  }
 0x4ed   :  { %10034 = vmatpush1.bf16.msra.mxu0 %v14628_v15  ;;  %v14691_v15 = vld [vmem:[#allocation8 + $0x15f0] ss:$40 sps:$4 sm:$0xff]  }
 0x4ee   :  { %10035 = vmatprep.subr.bf16.mxu0 %v14636_v16  ;;  %v14699_v16 = vld [vmem:[#allocation8 + $0x1644] ss:$40 sps:$4 sm:$0xff]  }
 0x4ef   :  { %9880 = vmatpush1.bf16.msra.mxu1 %v14631_v9  ;;  %v14694_v9 = vld [vmem:[#allocation8 + $0xe78] ss:$40 sps:$4 sm:$0xff]  }
 0x4f0   :  { %9881 = vmatprep.subr.bf16.mxu1 %v14639_v18  ;;  %v14702_v18 = vld [vmem:[#allocation8 + $0xecc] ss:$40 sps:$4 sm:$0xff]  }
 0x4f1   :  { %10036 = vmatpush1.bf16.msra.mxu0 %v14634_v19  ;;  %v14697_v19 = vld [vmem:[#allocation8 + $0x1640] ss:$40 sps:$4 sm:$0xff]  }
 0x4f2   :  { %10037 = vmatprep.subr.bf16.mxu0 %v14642_v20  ;;  %v14705_v20 = vld [vmem:[#allocation8 + $0x1694] ss:$40 sps:$4 sm:$0xff]  }
 0x4f3   :  { %9882 = vmatpush1.bf16.msra.mxu1 %v14637_v21  ;;  %v14700_v21 = vld [vmem:[#allocation8 + $0xec8] ss:$40 sps:$4 sm:$0xff]  }
 0x4f4   :  { %9883 = vmatprep.subr.bf16.mxu1 %v14645_v36  ;;  %v14708_v36 = vld [vmem:[#allocation8 + $0xf1c] ss:$40 sps:$4 sm:$0xff]  }
 0x4f5   :  { %10038 = vmatpush1.bf16.msra.mxu0 %v14640_v22  ;;  %v14703_v22 = vld [vmem:[#allocation8 + $0x1690] ss:$40 sps:$4 sm:$0xff]  }
 0x4f6   :  { %10039 = vmatprep.subr.bf16.mxu0 %v14648_v23  ;;  %v14711_v23 = vld [vmem:[#allocation8 + $0x16e4] ss:$40 sps:$4 sm:$0xff]  }
 0x4f7   :  { %9884 = vmatpush1.bf16.msra.mxu1 %v14643_v25  ;;  %v14706_v25 = vld [vmem:[#allocation8 + $0xf18] ss:$40 sps:$4 sm:$0xff]  }
 0x4f8   :  { %9885 = vmatprep.subr.bf16.mxu1 %v14651_v27  ;;  %v14714_v27 = vld [vmem:[#allocation8 + $0xf6c] ss:$40 sps:$4 sm:$0xff]  }
 0x4f9   :  { %10040 = vmatpush1.bf16.msra.mxu0 %v14646_v30  ;;  %v14709_v30 = vld [vmem:[#allocation8 + $0x16e0] ss:$40 sps:$4 sm:$0xff]  }
 0x4fa   :  { %10041 = vmatprep.subr.bf16.mxu0 %v14654_v34  ;;  %v14717_v34 = vld [vmem:[#allocation8 + $0x1734] ss:$40 sps:$4 sm:$0xff]  }
 0x4fb   :  { %9886 = vmatpush1.bf16.msra.mxu1 %v14649_v37  ;;  %v14712_v37 = vld [vmem:[#allocation8 + $0xf68] ss:$40 sps:$4 sm:$0xff]  }
 0x4fc   :  { %9898 = vmatprep.subr.bf16.mxu1 %v14657_v38  ;;  %v14720_v38 = vld [vmem:[#allocation8 + $0xfbc] ss:$40 sps:$4 sm:$0xff]  }
 0x4fd   :  { %10042 = vmatpush1.bf16.msra.mxu0 %v14652_v39  ;;  %v14715_v39 = vld [vmem:[#allocation8 + $0x1730] ss:$40 sps:$4 sm:$0xff]  }
 0x4fe   :  { %9888 = vmatmul.mubr.bf16.vlgmr.msra.gmra.mrb[12].mxu1 %v15567_v29  ;;  %10043 = vmatprep.subr.bf16.mxu0 %v14660_v42  ;;  %v14723_v42 = vld [vmem:[#allocation8 + $0x1784] ss:$40 sps:$4 sm:$0xff]  }
 0x4ff   :  { %9899 = vmatpush1.bf16.msra.mxu1 %v14655_v24  ;;  %9930 = vmatprep.mubr.bf16.mxu1 %v15589_v17  ;;  %v14718_v24 = vld [vmem:[#allocation8 + $0xfb8] ss:$40 sps:$4 sm:$0xff]  }
 0x500   :  { %9900 = vmatprep.subr.bf16.mxu1 %v14663_v35  ;;  %v14726_v35 = vld [vmem:[#allocation8 + $0x100c] ss:$40 sps:$4 sm:$0xff]  }
 0x501   :  { %10044 = vmatpush1.bf16.msra.mxu0 %v14658_v49  ;;  %v14721_v49 = vld [vmem:[#allocation8 + $0x1780] ss:$40 sps:$4 sm:$0xff]  }
 0x502   :  { %10045 = vmatprep.subr.bf16.mxu0 %v14666_v53  ;;  %v14729_v53 = vld [vmem:[#allocation8 + $0x17d4] ss:$40 sps:$4 sm:$0xff]  }
 0x503   :  { %9901 = vmatpush1.bf16.msra.mxu1 %v14661_v54  ;;  %v14724_v54 = vld [vmem:[#allocation8 + $0x1008] ss:$40 sps:$4 sm:$0xff]  }
 0x504   :  { %9902 = vmatprep.subr.bf16.mxu1 %v14669_v57  ;;  %v14732_v57 = vld [vmem:[#allocation8 + $0x105c] ss:$40 sps:$4 sm:$0xff]  }
 0x505   :  { %10046 = vmatpush1.bf16.msra.mxu0 %v14664_v0  ;;  %v14727_v0 = vld [vmem:[#allocation8 + $0x17d0] ss:$40 sps:$4 sm:$0xff]  }
 0x506   :  { %10047 = vmatprep.subr.bf16.mxu0 %v14672_v59  ;;  %v14735_v59 = vld [vmem:[#allocation8 + $0x1824] ss:$40 sps:$4 sm:$0xff]  }
 0x507   :  { %9903 = vmatpush1.bf16.msra.mxu1 %v14667_v61  ;;  %v14730_v61 = vld [vmem:[#allocation8 + $0x1058] ss:$40 sps:$4 sm:$0xff]  }
 0x508   :  { %9904 = vmatprep.subr.bf16.mxu1 %v14675_v62  ;;  %v14738_v62 = vld [vmem:[#allocation8 + $0x10ac] ss:$40 sps:$4 sm:$0xff]  }
 0x509   :  { %10048 = vmatpush1.bf16.msra.mxu0 %v14670_v63  ;;  %v14733_v63 = vld [vmem:[#allocation8 + $0x1820] ss:$40 sps:$4 sm:$0xff]  }
 0x50a   :  { %10049 = vmatprep.subr.bf16.mxu0 %v14678_v1  ;;  %v5257_v1 = vrot.slane %v15606_v13, %v712_v52  ;;  %v14742_v52 = vld [vmem:[#allocation8 + $0x10f8] ss:$40 sps:$4 sm:$0xff]  }
 0x50b   :  { %9905 = vmatpush1.bf16.msra.mxu1 %v14673_v2  ;;  %v14741_v2 = vld [vmem:[#allocation8 + $0x1874] ss:$40 sps:$4 sm:$0xff]  }
 0x50c   :  { %9906 = vmatprep.subr.bf16.mxu1 %v14681_v3  ;;  %v5261_v3 = vrot.slane %v15606_v13, %v716_v56  ;;  %v14745_v56 = vld [vmem:[#allocation8 + $0x18c0] ss:$40 sps:$4 sm:$0xff]  }
 0x50d   :  { %10050 = vmatpush1.bf16.msra.mxu0 %v14676_v4  ;;  %v14736_v4 = vld [vmem:[#allocation8 + $0x10a8] ss:$40 sps:$4 sm:$0xff]  }
 0x50e   :  { %10051 = vmatprep.subr.bf16.mxu0 %v14684_v5  ;;  %v14744_v5 = vld [vmem:[#allocation8 + $0x10fc] ss:$40 sps:$4 sm:$0xff]  }
 0x50f   :  { %9907 = vmatpush1.bf16.msra.mxu1 %v14679_v6 }
 0x510   :  { %9908 = vmatprep.subr.bf16.mxu1 %v14687_v7  ;;  %v14739_v7 = vld [vmem:[#allocation8 + $0x1870] ss:$40 sps:$4 sm:$0xff]  }
 0x511   :  { %10052 = vmatpush1.bf16.msra.mxu0 %v14682_v50 }
 0x512   :  { %10053 = vmatprep.subr.bf16.mxu0 %v14690_v8 }
 0x513   :  { %9909 = vmatpush1.bf16.msra.mxu1 %v14685_v10  ;;  %v14747_v10 = vld [vmem:[#allocation8 + $0x18c4] ss:$40 sps:$4 sm:$0xff]  }
 0x514   :  { %9910 = vmatprep.subr.bf16.mxu1 %v14693_v11 }
 0x515   :  { %10054 = vmatpush1.bf16.msra.mxu0 %v14688_v12 }
 0x516   :  { %10055 = vmatprep.subr.bf16.mxu0 %v14696_v14 }
 0x517   :  { %9911 = vmatpush1.bf16.msra.mxu1 %v14691_v15 }
 0x518   :  { %9912 = vmatprep.subr.bf16.mxu1 %v14699_v16  ;;  %v14750_v16 = vld [vmem:[#allocation8 + $0x114c] ss:$40 sps:$4 sm:$0xff]  }
 0x519   :  { %10056 = vmatpush1.bf16.msra.mxu0 %v14694_v9 }
 0x51a   :  { %10057 = vmatprep.subr.bf16.mxu0 %v14702_v18 }
 0x51b   :  { %9913 = vmatpush1.bf16.msra.mxu1 %v14697_v19  ;;  %v14753_v19 = vld [vmem:[#allocation8 + $0x24] ss:$40 sps:$4 sm:$0xff]  }
 0x51c   :  { %9914 = vmatprep.subr.bf16.mxu1 %v14705_v20 }
 0x51d   :  { %10058 = vmatpush1.bf16.msra.mxu0 %v14700_v21 }
 0x51e   :  { %10070 = vmatprep.subr.bf16.mxu0 %v14708_v36  ;;  %v14748_v36 = vld [vmem:[#allocation8 + $0x1148] ss:$40 sps:$4 sm:$0xff]  }
 0x51f   :  { %9915 = vmatpush1.bf16.msra.mxu1 %v14703_v22 }
 0x520   :  { %10060 = vmatmul.mubr.bf16.vlgmr.msra.gmra.mrb[16].mxu0 %v15565_v28  ;;  %9916 = vmatprep.subr.bf16.mxu1 %v14711_v23  ;;  %v14756_v23 = vld [vmem:[#allocation8 + $0x119c] ss:$40 sps:$4 sm:$0xff]  }
 0x521   :  { %10071 = vmatpush1.bf16.msra.mxu0 %v14706_v25  ;;  %10102 = vmatprep.mubr.bf16.mxu0 %v15571_v32 }
 0x522   :  { %10072 = vmatprep.subr.bf16.mxu0 %v14714_v27  ;;  %v14751_v27 = vld [vmem:[#allocation8 + $0x20] ss:$40 sps:$4 sm:$0xff]  }
 0x523   :  { %9917 = vmatpush1.bf16.msra.mxu1 %v14709_v30  ;;  %v14759_v30 = vld [vmem:[#allocation8 + $0x74] ss:$40 sps:$4 sm:$0xff]  }
 0x524   :  { %9918 = vmatprep.subr.bf16.mxu1 %v14717_v34  ;;  %v14754_v34 = vld [vmem:[#allocation8 + $0x1198] ss:$40 sps:$4 sm:$0xff]  }
 0x525   :  { %10073 = vmatpush1.bf16.msra.mxu0 %v14712_v37  ;;  %v14762_v37 = vld [vmem:[#allocation8 + $0x11ec] ss:$40 sps:$4 sm:$0xff]  }
 0x526   :  { %10074 = vmatprep.subr.bf16.mxu0 %v14720_v38  ;;  %v14757_v38 = vld [vmem:[#allocation8 + $0x70] ss:$40 sps:$4 sm:$0xff]  }
 0x527   :  { %9919 = vmatpush1.bf16.msra.mxu1 %v14715_v39  ;;  %v14765_v39 = vld [vmem:[#allocation8 + $0xc4] ss:$40 sps:$4 sm:$0xff]  }
 0x528   :  { %9920 = vmatprep.subr.bf16.mxu1 %v14723_v42  ;;  %v14760_v42 = vld [vmem:[#allocation8 + $0x11e8] ss:$40 sps:$4 sm:$0xff]  }
 0x529   :  { %10075 = vmatpush1.bf16.msra.mxu0 %v14718_v24  ;;  %v14768_v24 = vld [vmem:[#allocation8 + $0x123c] ss:$40 sps:$4 sm:$0xff]  }
 0x52a   :  { %10076 = vmatprep.subr.bf16.mxu0 %v14726_v35  ;;  %v14763_v35 = vld [vmem:[#allocation8 + $0xc0] ss:$40 sps:$4 sm:$0xff]  }
 0x52b   :  { %9921 = vmatpush1.bf16.msra.mxu1 %v14721_v49  ;;  %v14771_v49 = vld [vmem:[#allocation8 + $0x114] ss:$40 sps:$4 sm:$0xff]  }
 0x52c   :  { %9922 = vmatprep.subr.bf16.mxu1 %v14729_v53  ;;  %v14766_v53 = vld [vmem:[#allocation8 + $0x1238] ss:$40 sps:$4 sm:$0xff]  }
 0x52d   :  { %10077 = vmatpush1.bf16.msra.mxu0 %v14724_v54  ;;  %v14774_v54 = vld [vmem:[#allocation8 + $0x128c] ss:$40 sps:$4 sm:$0xff]  }
 0x52e   :  { %10078 = vmatprep.subr.bf16.mxu0 %v14732_v57  ;;  %v14769_v57 = vld [vmem:[#allocation8 + $0x110] ss:$40 sps:$4 sm:$0xff]  }
 0x52f   :  { %9923 = vmatpush1.bf16.msra.mxu1 %v14727_v0  ;;  %v14777_v0 = vld [vmem:[#allocation8 + $0x164] ss:$40 sps:$4 sm:$0xff]  }
 0x530   :  { %9924 = vmatprep.subr.bf16.mxu1 %v14735_v59  ;;  %v14780_v59 = vld [vmem:[#allocation8 + $0x12dc] ss:$40 sps:$4 sm:$0xff]  }
 0x531   :  { %10079 = vmatpush1.bf16.msra.mxu0 %v14730_v61  ;;  %v14775_v61 = vld [vmem:[#allocation8 + $0x160] ss:$40 sps:$4 sm:$0xff]  }
 0x532   :  { %10080 = vmatprep.subr.bf16.mxu0 %v14738_v62  ;;  %v14783_v62 = vld [vmem:[#allocation8 + $0x1b4] ss:$40 sps:$4 sm:$0xff]  }
 0x533   :  { %9925 = vmatpush1.bf16.msra.mxu1 %v14733_v63  ;;  %v9717_v6 = vpop.f32.mrb[12].mxu0  ;;  %v14778_v63 = vld [vmem:[#allocation8 + $0x12d8] ss:$40 sps:$4 sm:$0xff]  }
 0x534   :  { %v12850_v50 = vadd.f32 %v9717_v6, %v5257_v1  ;;  %v9719_v8 = vpop.f32.mrb[13].mxu0  ;;  %9926 = vmatprep.subr.bf16.mxu1 %v14741_v2  ;;  %v14781_v2 = vld [vmem:[#allocation8 + $0x1b0] ss:$40 sps:$4 sm:$0xff]   ;;  %v14787_v6 = vld [vmem:[#allocation8 + $0x200] ss:$40 sps:$4 sm:$0xff]  }
 0x535   :  { %v12851_v11 = vadd.f32 %v9719_v8, %v5261_v3  ;;  %v9721_v12 = vpop.f32.mrb[14].mxu0  ;;  %10081 = vmatpush1.bf16.msra.mxu0 %v14736_v4  ;;  %v14784_v4 = vld [vmem:[#allocation8 + $0x1328] ss:$40 sps:$4 sm:$0xff]   ;;  %v14798_v8 = vld [vmem:[#allocation8 + $0x13cc] ss:$40 sps:$4 sm:$0xff]  }
 0x536   :  { %v12852_v14 = vadd.f32 %v9721_v12, %v5257_v1  ;;  %v9723_v15 = vpop.f32.mrb[15].mxu0  ;;  %10082 = vmatprep.subr.bf16.mxu0 %v14744_v5  ;;  %v10373_v13 = vmax.f32 %v12850_v50, 0.0  ;;  %v14786_v1 = vld [vmem:[#allocation8 + $0x132c] ss:$40 sps:$4 sm:$0xff]   ;;  %v14792_v5 = vld [vmem:[#allocation8 + $0x137c] ss:$40 sps:$4 sm:$0xff]  }
 0x537   :  { %v12853_v9 = vadd.f32 %v9723_v15, %v5261_v3  ;;  %9927 = vmatpush1.bf16.msra.mxu1 %v14739_v7  ;;  %v10374_v20 = vmax.f32 %v12851_v11, 0.0  ;;  %v14789_v3 = vld [vmem:[#allocation8 + $0x204] ss:$40 sps:$4 sm:$0xff]   ;;  %v14795_v7 = vld [vmem:[#allocation8 + $0x254] ss:$40 sps:$4 sm:$0xff]  }
 0x538   :  { %v10383_v18 = vmax.f32 %v12852_v14, 0.0  ;;  %9928 = vmatprep.subr.bf16.mxu1 %v14747_v10  ;;  %v14790_v50 = vld [vmem:[#allocation8 + $0x1378] ss:$40 sps:$4 sm:$0xff]   ;;  %v14801_v11 = vld [vmem:[#allocation8 + $0x2a4] ss:$40 sps:$4 sm:$0xff]  }
 0x539   :  { %v10384_v21 = vmax.f32 %v12853_v9, 0.0  ;;  %10083 = vmatpush1.bf16.msra.mxu0 %v14742_v52  ;;  %v14793_v10 = vld [vmem:[#allocation8 + $0x250] ss:$40 sps:$4 sm:$0xff]   ;;  %v14804_v52 = vld [vmem:[#allocation8 + $0x141c] ss:$40 sps:$4 sm:$0xff]  }
 0x53a   :  { %v15628_v22 = vpack.c.bf16 %v10383_v18, %v10373_v13  ;;  %10084 = vmatprep.subr.bf16.mxu0 %v14750_v16  ;;  %v14796_v12 = vld [vmem:[#allocation8 + $0x13c8] ss:$40 sps:$4 sm:$0xff]   ;;  %v14807_v15 = vld [vmem:[#allocation8 + $0x2f4] ss:$40 sps:$4 sm:$0xff]   ;;  %v14802_v16 = vld [vmem:[#allocation8 + $0x1418] ss:$40 sps:$4 sm:$0xff]  }
 0x53b   :  { %v15630_v25 = vpack.c.bf16 %v10384_v21, %v10374_v20  ;;  %9929 = vmatpush1.bf16.msra.mxu1 %v14745_v56  ;;  %v14799_v14 = vld [vmem:[#allocation8 + $0x2a0] ss:$40 sps:$4 sm:$0xff]   ;;  %v14810_v9 = vld [vmem:[#allocation8 + $0x146c] ss:$40 sps:$4 sm:$0xff]   ;;  %v14805_v56 = vld [vmem:[#allocation8 + $0x2f0] ss:$40 sps:$4 sm:$0xff]  }
 0x53c   :  { %10156 = vmatprep.subr.bf16.mxu1 %v14753_v19  ;;  %v14813_v13 = vld [vmem:[#allocation8 + $0x344] ss:$40 sps:$4 sm:$0xff]   ;;  %v14808_v18 = vld [vmem:[#allocation8 + $0x1468] ss:$40 sps:$4 sm:$0xff]   ;;  %v14819_v21 = vld [vmem:[#allocation8 + $0x394] ss:$40 sps:$4 sm:$0xff]  }
 0x53d   :  { %10085 = vmatpush1.bf16.msra.mxu0 %v14748_v36  ;;  %v14816_v19 = vld [vmem:[#allocation8 + $0x14bc] ss:$40 sps:$4 sm:$0xff]   ;;  %v14811_v20 = vld [vmem:[#allocation8 + $0x340] ss:$40 sps:$4 sm:$0xff]  }
 0x53e   :  { %9931 = vmatmul.mubr.bf16.vlgmr.msra.gmra.mrb[12].mxu1 %v15587_v33  ;;  %10086 = vmatprep.subr.bf16.mxu0 %v14756_v23  ;;  %v14814_v36 = vld [vmem:[#allocation8 + $0x14b8] ss:$40 sps:$4 sm:$0xff]   ;;  %v14822_v23 = vld [vmem:[#allocation8 + $0x150c] ss:$40 sps:$4 sm:$0xff]  }
 0x53f   :  { %10157 = vmatpush1.bf16.msra.mxu1 %v14751_v27  ;;  %10188 = vmatprep.mubr.bf16.mxu1 %v15536_v45  ;;  %v14772_v45 = vld [vmem:[#allocation8 + $0x1288] ss:$40 sps:$4 sm:$0xff]  }
 0x540   :  { %10158 = vmatprep.subr.bf16.mxu1 %v14759_v30  ;;  %v14817_v27 = vld [vmem:[#allocation8 + $0x390] ss:$40 sps:$4 sm:$0xff]   ;;  %v14825_v30 = vld [vmem:[#allocation8 + $0x3e4] ss:$40 sps:$4 sm:$0xff]  }
 0x541   :  { %10087 = vmatpush1.bf16.msra.mxu0 %v14754_v34  ;;  %v14820_v34 = vld [vmem:[#allocation8 + $0x1508] ss:$40 sps:$4 sm:$0xff]  }
 0x542   :  { %10088 = vmatprep.subr.bf16.mxu0 %v14762_v37  ;;  %v14828_v37 = vld [vmem:[#allocation8 + $0x155c] ss:$40 sps:$4 sm:$0xff]  }
 0x543   :  { %10159 = vmatpush1.bf16.msra.mxu1 %v14757_v38  ;;  %v14823_v38 = vld [vmem:[#allocation8 + $0x3e0] ss:$40 sps:$4 sm:$0xff]  }
 0x544   :  { %10160 = vmatprep.subr.bf16.mxu1 %v14765_v39  ;;  %v14831_v39 = vld [vmem:[#allocation8 + $0x434] ss:$40 sps:$4 sm:$0xff]  }
 0x545   :  { %10089 = vmatpush1.bf16.msra.mxu0 %v14760_v42  ;;  %v14826_v42 = vld [vmem:[#allocation8 + $0x1558] ss:$40 sps:$4 sm:$0xff]  }
 0x546   :  { %10090 = vmatprep.subr.bf16.mxu0 %v14768_v24  ;;  %v14834_v24 = vld [vmem:[#allocation8 + $0x15ac] ss:$40 sps:$4 sm:$0xff]  }
 0x547   :  { %10161 = vmatpush1.bf16.msra.mxu1 %v14763_v35  ;;  %v14829_v35 = vld [vmem:[#allocation8 + $0x430] ss:$40 sps:$4 sm:$0xff]  }
 0x548   :  { %10162 = vmatprep.subr.bf16.mxu1 %v14771_v49  ;;  %v14837_v49 = vld [vmem:[#allocation8 + $0x484] ss:$40 sps:$4 sm:$0xff]  }
 0x549   :  { %10091 = vmatpush1.bf16.msra.mxu0 %v14766_v53  ;;  %v14832_v53 = vld [vmem:[#allocation8 + $0x15a8] ss:$40 sps:$4 sm:$0xff]  }
 0x54a   :  { %10092 = vmatprep.subr.bf16.mxu0 %v14774_v54  ;;  %v14840_v54 = vld [vmem:[#allocation8 + $0x15fc] ss:$40 sps:$4 sm:$0xff]  }
 0x54b   :  { %10163 = vmatpush1.bf16.msra.mxu1 %v14769_v57  ;;  %v14835_v57 = vld [vmem:[#allocation8 + $0x480] ss:$40 sps:$4 sm:$0xff]  }
 0x54c   :  { %10164 = vmatprep.subr.bf16.mxu1 %v14777_v0  ;;  %v14843_v0 = vld [vmem:[#allocation8 + $0x4d4] ss:$40 sps:$4 sm:$0xff]  }
 0x54d   :  { %10093 = vmatpush1.bf16.msra.mxu0 %v14772_v45  ;;  %v14838_v45 = vld [vmem:[#allocation8 + $0x15f8] ss:$40 sps:$4 sm:$0xff]  }
 0x54e   :  { %10094 = vmatprep.subr.bf16.mxu0 %v14780_v59  ;;  %v14846_v59 = vld [vmem:[#allocation8 + $0x164c] ss:$40 sps:$4 sm:$0xff]  }
 0x54f   :  { %10165 = vmatpush1.bf16.msra.mxu1 %v14775_v61  ;;  %v14841_v61 = vld [vmem:[#allocation8 + $0x4d0] ss:$40 sps:$4 sm:$0xff]  }
 0x550   :  { %10166 = vmatprep.subr.bf16.mxu1 %v14783_v62  ;;  %v14849_v62 = vld [vmem:[#allocation8 + $0x524] ss:$40 sps:$4 sm:$0xff]  }
 0x551   :  { %10095 = vmatpush1.bf16.msra.mxu0 %v14778_v63  ;;  %v14844_v63 = vld [vmem:[#allocation8 + $0x1648] ss:$40 sps:$4 sm:$0xff]  }
 0x552   :  { %10096 = vmatprep.subr.bf16.mxu0 %v14786_v1  ;;  %v14852_v1 = vld [vmem:[#allocation8 + $0x169c] ss:$40 sps:$4 sm:$0xff]  }
 0x553   :  { %10167 = vmatpush1.bf16.msra.mxu1 %v14781_v2  ;;  %v14847_v2 = vld [vmem:[#allocation8 + $0x520] ss:$40 sps:$4 sm:$0xff]  }
 0x554   :  { %10168 = vmatprep.subr.bf16.mxu1 %v14789_v3  ;;  %v14855_v3 = vld [vmem:[#allocation8 + $0x574] ss:$40 sps:$4 sm:$0xff]  }
 0x555   :  { %10097 = vmatpush1.bf16.msra.mxu0 %v14784_v4  ;;  %v14850_v4 = vld [vmem:[#allocation8 + $0x1698] ss:$40 sps:$4 sm:$0xff]  }
 0x556   :  { %10098 = vmatprep.subr.bf16.mxu0 %v14792_v5  ;;  %v14858_v5 = vld [vmem:[#allocation8 + $0x16ec] ss:$40 sps:$4 sm:$0xff]  }
 0x557   :  { %10169 = vmatpush1.bf16.msra.mxu1 %v14787_v6  ;;  %v14853_v6 = vld [vmem:[#allocation8 + $0x570] ss:$40 sps:$4 sm:$0xff]  }
 0x558   :  { %10170 = vmatprep.subr.bf16.mxu1 %v14795_v7  ;;  %v14861_v7 = vld [vmem:[#allocation8 + $0x5c4] ss:$40 sps:$4 sm:$0xff]  }
 0x559   :  { %10099 = vmatpush1.bf16.msra.mxu0 %v14790_v50  ;;  %v14856_v50 = vld [vmem:[#allocation8 + $0x16e8] ss:$40 sps:$4 sm:$0xff]  }
 0x55a   :  { %10100 = vmatprep.subr.bf16.mxu0 %v14798_v8  ;;  %v14864_v8 = vld [vmem:[#allocation8 + $0x173c] ss:$40 sps:$4 sm:$0xff]  }
 0x55b   :  { %10171 = vmatpush1.bf16.msra.mxu1 %v14793_v10  ;;  %v14859_v10 = vld [vmem:[#allocation8 + $0x5c0] ss:$40 sps:$4 sm:$0xff]  }
 0x55c   :  { %10172 = vmatprep.subr.bf16.mxu1 %v14801_v11  ;;  %v14867_v11 = vld [vmem:[#allocation8 + $0x614] ss:$40 sps:$4 sm:$0xff]  }
 0x55d   :  { %10101 = vmatpush1.bf16.msra.mxu0 %v14796_v12  ;;  %v14862_v12 = vld [vmem:[#allocation8 + $0x1738] ss:$40 sps:$4 sm:$0xff]  }
 0x55e   :  { %10113 = vmatprep.subr.bf16.mxu0 %v14804_v52  ;;  %v14865_v52 = vld [vmem:[#allocation8 + $0x610] ss:$40 sps:$4 sm:$0xff]  }
 0x55f   :  { %10173 = vmatpush1.bf16.msra.mxu1 %v14799_v14  ;;  %v14873_v14 = vld [vmem:[#allocation8 + $0x664] ss:$40 sps:$4 sm:$0xff]  }
 0x560   :  { %10103 = vmatmul.mubr.bf16.vlgmr.msra.gmra.mrb[16].mxu0 %v15567_v29  ;;  %10174 = vmatprep.subr.bf16.mxu1 %v14807_v15  ;;  %v14876_v15 = vld [vmem:[#allocation8 + $0x17dc] ss:$40 sps:$4 sm:$0xff]  }
 0x561   :  { %10114 = vmatpush1.bf16.msra.mxu0 %v14802_v16  ;;  %10145 = vmatprep.mubr.bf16.mxu0 %v15589_v17  ;;  %v14871_v16 = vld [vmem:[#allocation8 + $0x660] ss:$40 sps:$4 sm:$0xff]  }
 0x562   :  { %10115 = vmatprep.subr.bf16.mxu0 %v14810_v9  ;;  %v14879_v9 = vld [vmem:[#allocation8 + $0x6b4] ss:$40 sps:$4 sm:$0xff]  }
 0x563   :  { %10175 = vmatpush1.bf16.msra.mxu1 %v14805_v56  ;;  %v14874_v56 = vld [vmem:[#allocation8 + $0x17d8] ss:$40 sps:$4 sm:$0xff]  }
 0x564   :  { %10176 = vmatprep.subr.bf16.mxu1 %v14813_v13  ;;  %v14882_v13 = vld [vmem:[#allocation8 + $0x182c] ss:$40 sps:$4 sm:$0xff]  }
 0x565   :  { %10116 = vmatpush1.bf16.msra.mxu0 %v14808_v18  ;;  %v14877_v18 = vld [vmem:[#allocation8 + $0x6b0] ss:$40 sps:$4 sm:$0xff]  }
 0x566   :  { %10117 = vmatprep.subr.bf16.mxu0 %v14816_v19  ;;  %v14885_v19 = vld [vmem:[#allocation8 + $0x704] ss:$40 sps:$4 sm:$0xff]  }
 0x567   :  { %10177 = vmatpush1.bf16.msra.mxu1 %v14811_v20  ;;  %v14880_v20 = vld [vmem:[#allocation8 + $0x1828] ss:$40 sps:$4 sm:$0xff]  }
 0x568   :  { %10178 = vmatprep.subr.bf16.mxu1 %v14819_v21  ;;  %v14888_v21 = vld [vmem:[#allocation8 + $0x187c] ss:$40 sps:$4 sm:$0xff]  }
 0x569   :  { %10118 = vmatpush1.bf16.msra.mxu0 %v14814_v36  ;;  %v14883_v36 = vld [vmem:[#allocation8 + $0x700] ss:$40 sps:$4 sm:$0xff]  }
 0x56a   :  { %10119 = vmatprep.subr.bf16.mxu0 %v14822_v23  ;;  %v14891_v23 = vld [vmem:[#allocation8 + $0x754] ss:$40 sps:$4 sm:$0xff]  }
 0x56b   :  { %10179 = vmatpush1.bf16.msra.mxu1 %v14817_v27  ;;  %v14886_v27 = vld [vmem:[#allocation8 + $0x1878] ss:$40 sps:$4 sm:$0xff]  }
 0x56c   :  { %10180 = vmatprep.subr.bf16.mxu1 %v14825_v30  ;;  %v14894_v30 = vld [vmem:[#allocation8 + $0x18cc] ss:$40 sps:$4 sm:$0xff]  }
 0x56d   :  { %10120 = vmatpush1.bf16.msra.mxu0 %v14820_v34  ;;  %v14889_v34 = vld [vmem:[#allocation8 + $0x750] ss:$40 sps:$4 sm:$0xff]  }
 0x56e   :  { %10121 = vmatprep.subr.bf16.mxu0 %v14828_v37  ;;  %v14897_v37 = vld [vmem:[#allocation8 + $0x7a4] ss:$40 sps:$4 sm:$0xff]  }
 0x56f   :  { %10181 = vmatpush1.bf16.msra.mxu1 %v14823_v38  ;;  %v14892_v38 = vld [vmem:[#allocation8 + $0x18c8] ss:$40 sps:$4 sm:$0xff]  }
 0x570   :  { %10182 = vmatprep.subr.bf16.mxu1 %v14831_v39  ;;  %v14898_v39 = vld [vmem:[#allocation11 + $0x40] sm:$0xff]  }
 0x571   :  { %10122 = vmatpush1.bf16.msra.mxu0 %v14826_v42  ;;  %v14895_v42 = vld [vmem:[#allocation8 + $0x7a0] ss:$40 sps:$4 sm:$0xff]  }
 0x572   :  { %10123 = vmatprep.subr.bf16.mxu0 %v14834_v24  ;;  %v14901_v24 = vld [vmem:[#allocation8 + $0x7f4] ss:$40 sps:$4 sm:$0xff]  }
 0x573   :  { %10183 = vmatpush1.bf16.msra.mxu1 %v14829_v35  ;;  %v14902_v35 = vld [vmem:[#allocation11] sm:$0xff]  }
 0x574   :  { %10184 = vmatprep.subr.bf16.mxu1 %v14837_v49  ;;  %v14903_v49 = vld [vmem:[#allocation11 + $0x48] sm:$0xff]  }
 0x575   :  { %10124 = vmatpush1.bf16.msra.mxu0 %v14832_v53  ;;  %v14899_v53 = vld [vmem:[#allocation8 + $0x7f0] ss:$40 sps:$4 sm:$0xff]  }
 0x576   :  { %10125 = vmatprep.subr.bf16.mxu0 %v14840_v54  ;;  %v14906_v54 = vld [vmem:[#allocation8 + $0x844] ss:$40 sps:$4 sm:$0xff]  }
 0x577   :  { %10185 = vmatpush1.bf16.msra.mxu1 %v14835_v57  ;;  %v14907_v57 = vld [vmem:[#allocation11 + $0x8] sm:$0xff]  }
 0x578   :  { %10186 = vmatprep.subr.bf16.mxu1 %v14843_v0  ;;  %v14908_v0 = vld [vmem:[#allocation11 + $0x50] sm:$0xff]  }
 0x579   :  { %10126 = vmatpush1.bf16.msra.mxu0 %v14838_v45  ;;  %v14904_v45 = vld [vmem:[#allocation8 + $0x840] ss:$40 sps:$4 sm:$0xff]  }
 0x57a   :  { %10127 = vmatprep.subr.bf16.mxu0 %v14846_v59  ;;  %v14911_v59 = vld [vmem:[#allocation8 + $0x894] ss:$40 sps:$4 sm:$0xff]  }
 0x57b   :  { %10187 = vmatpush1.bf16.msra.mxu1 %v14841_v61  ;;  %v14912_v61 = vld [vmem:[#allocation11 + $0x10] sm:$0xff]  }
 0x57c   :  { %10199 = vmatprep.subr.bf16.mxu1 %v14849_v62  ;;  %v14913_v62 = vld [vmem:[#allocation11 + $0x58] sm:$0xff]  }
 0x57d   :  { %10128 = vmatpush1.bf16.msra.mxu0 %v14844_v63  ;;  %v14909_v63 = vld [vmem:[#allocation8 + $0x890] ss:$40 sps:$4 sm:$0xff]  }
 0x57e   :  { %10189 = vmatmul.mubr.bf16.vlgmr.msra.gmra.mrb[16].mxu1 %v15532_v40  ;;  %10129 = vmatprep.subr.bf16.mxu0 %v14852_v1  ;;  %v14870_v40 = vld [vmem:[#allocation8 + $0x178c] ss:$40 sps:$4 sm:$0xff]  }
 0x57f   :  { %10200 = vmatpush1.bf16.msra.mxu1 %v14847_v2  ;;  %10231 = vmatprep.mubr.bf16.mxu1 %v15538_v46  ;;  %v14868_v46 = vld [vmem:[#allocation8 + $0x1788] ss:$40 sps:$4 sm:$0xff]   ;;  %v14916_v1 = vld [vmem:[#allocation8 + $0x8e4] ss:$40 sps:$4 sm:$0xff]  }
 0x580   :  { %10201 = vmatprep.subr.bf16.mxu1 %v14855_v3  ;;  %v14917_v2 = vld [vmem:[#allocation11 + $0x18] sm:$0xff]   ;;  %v14918_v3 = vld [vmem:[#allocation11 + $0x60] sm:$0xff]  }
 0x581   :  { %10130 = vmatpush1.bf16.msra.mxu0 %v14850_v4  ;;  %v14921_v4 = vld [vmem:[#allocation8 + $0x934] ss:$40 sps:$4 sm:$0xff]  }
 0x582   :  { %10131 = vmatprep.subr.bf16.mxu0 %v14858_v5  ;;  %v14922_v5 = vld [vmem:[#allocation11 + $0x20] sm:$0xff]  }
 0x583   :  { %10202 = vmatpush1.bf16.msra.mxu1 %v14853_v6  ;;  %v14923_v6 = vld [vmem:[#allocation11 + $0x68] sm:$0xff]  }
 0x584   :  { %10203 = vmatprep.subr.bf16.mxu1 %v14861_v7  ;;  %v14919_v7 = vld [vmem:[#allocation8 + $0x930] ss:$40 sps:$4 sm:$0xff]  }
 0x585   :  { %10132 = vmatpush1.bf16.msra.mxu0 %v14856_v50  ;;  %v14926_v50 = vld [vmem:[#allocation8 + $0x984] ss:$40 sps:$4 sm:$0xff]  }
 0x586   :  { %10133 = vmatprep.subr.bf16.mxu0 %v14864_v8  ;;  %v14927_v8 = vld [vmem:[#allocation11 + $0x28] sm:$0xff]  }
 0x587   :  { %10204 = vmatpush1.bf16.msra.mxu1 %v14859_v10  ;;  %v14928_v10 = vld [vmem:[#allocation11 + $0x70] sm:$0xff]  }
 0x588   :  { %10205 = vmatprep.subr.bf16.mxu1 %v14867_v11  ;;  %v14924_v11 = vld [vmem:[#allocation8 + $0x980] ss:$40 sps:$4 sm:$0xff]  }
 0x589   :  { %10134 = vmatpush1.bf16.msra.mxu0 %v14862_v12  ;;  %v14931_v12 = vld [vmem:[#allocation8 + $0x9d4] ss:$40 sps:$4 sm:$0xff]  }
 0x58a   :  { %10135 = vmatprep.subr.bf16.mxu0 %v14870_v40  ;;  %v14932_v40 = vld [vmem:[#allocation11 + $0x30] sm:$0xff]  }
 0x58b   :  { %10206 = vmatpush1.bf16.msra.mxu1 %v14865_v52  ;;  %v14933_v52 = vld [vmem:[#allocation11 + $0x78] sm:$0xff]  }
 0x58c   :  { %10207 = vmatprep.subr.bf16.mxu1 %v14873_v14  ;;  %v14929_v14 = vld [vmem:[#allocation8 + $0x9d0] ss:$40 sps:$4 sm:$0xff]  }
 0x58d   :  { %10136 = vmatpush1.bf16.msra.mxu0 %v14868_v46  ;;  %v14936_v46 = vld [vmem:[#allocation8 + $0xa24] ss:$40 sps:$4 sm:$0xff]  }
 0x58e   :  { %10137 = vmatprep.subr.bf16.mxu0 %v14876_v15  ;;  %v14937_v15 = vld [vmem:[#allocation11 + $0x38] sm:$0xff]  }
 0x58f   :  { %10208 = vmatpush1.bf16.msra.mxu1 %v14871_v16  ;;  %v14938_v16 = vld [vmem:[#allocation11 + $0xc0] sm:$0xff]  }
 0x590   :  { %10209 = vmatprep.subr.bf16.mxu1 %v14879_v9  ;;  %v14934_v9 = vld [vmem:[#allocation8 + $0xa20] ss:$40 sps:$4 sm:$0xff]  }
 0x591   :  { %10138 = vmatpush1.bf16.msra.mxu0 %v14874_v56  ;;  %v14941_v56 = vld [vmem:[#allocation8 + $0xa74] ss:$40 sps:$4 sm:$0xff]  }
 0x592   :  { %10139 = vmatprep.subr.bf16.mxu0 %v14882_v13  ;;  %v14942_v13 = vld [vmem:[#allocation11 + $0x80] sm:$0xff]  }
 0x593   :  { %10210 = vmatpush1.bf16.msra.mxu1 %v14877_v18  ;;  %v14943_v18 = vld [vmem:[#allocation11 + $0xc8] sm:$0xff]  }
 0x594   :  { %10211 = vmatprep.subr.bf16.mxu1 %v14885_v19  ;;  %v14939_v19 = vld [vmem:[#allocation8 + $0xa70] ss:$40 sps:$4 sm:$0xff]  }
 0x595   :  { %10140 = vmatpush1.bf16.msra.mxu0 %v14880_v20  ;;  %v14946_v20 = vld [vmem:[#allocation8 + $0xac4] ss:$40 sps:$4 sm:$0xff]  }
 0x596   :  { %10141 = vmatprep.subr.bf16.mxu0 %v14888_v21  ;;  %v14947_v21 = vld [vmem:[#allocation11 + $0x88] sm:$0xff]  }
 0x597   :  { %10212 = vmatpush1.bf16.msra.mxu1 %v14883_v36  ;;  %v14948_v36 = vld [vmem:[#allocation11 + $0xd0] sm:$0xff]  }
 0x598   :  { %10213 = vmatprep.subr.bf16.mxu1 %v14891_v23  ;;  %v14944_v23 = vld [vmem:[#allocation8 + $0xac0] ss:$40 sps:$4 sm:$0xff]  }
 0x599   :  { %10142 = vmatpush1.bf16.msra.mxu0 %v14886_v27  ;;  %v14952_v27 = vld [vmem:[#allocation11 + $0x90] sm:$0xff]  }
 0x59a   :  { %10143 = vmatprep.subr.bf16.mxu0 %v14894_v30  ;;  %v14953_v30 = vld [vmem:[#allocation11 + $0xd8] sm:$0xff]  }
 0x59b   :  { %10214 = vmatpush1.bf16.msra.mxu1 %v14889_v34  ;;  %v14957_v34 = vld [vmem:[#allocation11 + $0x98] sm:$0xff]  }
 0x59c   :  { %10215 = vmatprep.subr.bf16.mxu1 %v14897_v37  ;;  %v14958_v37 = vld [vmem:[#allocation11 + $0xe0] sm:$0xff]  }
 0x59d   :  { %10144 = vmatpush1.bf16.msra.mxu0 %v14892_v38  ;;  %v14961_v38 = vld [vmem:[#allocation8 + $0xbb4] ss:$40 sps:$4 sm:$0xff]  }
 0x59e   :  { %12716 = vmatprep.subr.bf16.mxu0 %v14898_v39  ;;  %v14962_v39 = vld [vmem:[#allocation11 + $0xa0] sm:$0xff]  }
 0x59f   :  { %10216 = vmatpush1.bf16.msra.mxu1 %v14895_v42  ;;  %v14963_v42 = vld [vmem:[#allocation11 + $0xe8] sm:$0xff]  }
 0x5a0   :  { %10146 = vmatmul.mubr.bf16.vlgmr.msra.gmra.mrb[16].mxu0 %v15587_v33  ;;  %10217 = vmatprep.subr.bf16.mxu1 %v14901_v24  ;;  %v14959_v24 = vld [vmem:[#allocation8 + $0xbb0] ss:$40 sps:$4 sm:$0xff]  }
 0x5a1   :  { %12717 = vmatpush3.bf16.msra.mxu0 %v14902_v35  ;;  %11080 = vmatprep.mubr.bf16.mxu0 %v15614_v60  ;;  %v14914_v60 = vld [vmem:[#allocation8 + $0x8e0] ss:$40 sps:$4 sm:$0xff]   ;;  %v14966_v35 = vld [vmem:[#allocation8 + $0xc04] ss:$40 sps:$4 sm:$0xff]  }
 0x5a2   :  { %12718 = vmatprep.subr.bf16.mxu0 %v14903_v49  ;;  %v14967_v49 = vld [vmem:[#allocation11 + $0xa8] sm:$0xff]  }
 0x5a3   :  { %10218 = vmatpush1.bf16.msra.mxu1 %v14899_v53  ;;  %v14968_v53 = vld [vmem:[#allocation11 + $0xf0] sm:$0xff]  }
 0x5a4   :  { %10219 = vmatprep.subr.bf16.mxu1 %v14906_v54  ;;  %v14964_v54 = vld [vmem:[#allocation8 + $0xc00] ss:$40 sps:$4 sm:$0xff]  }
 0x5a5   :  { %12719 = vmatpush3.bf16.msra.mxu0 %v14907_v57  ;;  %v14971_v57 = vld [vmem:[#allocation8 + $0xc54] ss:$40 sps:$4 sm:$0xff]  }
 0x5a6   :  { %12720 = vmatprep.subr.bf16.mxu0 %v14908_v0  ;;  %v14972_v0 = vld [vmem:[#allocation11 + $0xb0] sm:$0xff]  }
 0x5a7   :  { %10220 = vmatpush1.bf16.msra.mxu1 %v14904_v45  ;;  %v14973_v45 = vld [vmem:[#allocation11 + $0xf8] sm:$0xff]  }
 0x5a8   :  { %10221 = vmatprep.subr.bf16.mxu1 %v14911_v59  ;;  %v14969_v59 = vld [vmem:[#allocation8 + $0xc50] ss:$40 sps:$4 sm:$0xff]  }
 0x5a9   :  { %12721 = vmatpush3.bf16.msra.mxu0 %v14912_v61  ;;  %v14976_v61 = vld [vmem:[#allocation8 + $0xca4] ss:$40 sps:$4 sm:$0xff]  }
 0x5aa   :  { %12722 = vmatprep.subr.bf16.mxu0 %v14913_v62  ;;  %v14977_v62 = vld [vmem:[#allocation11 + $0xb8] sm:$0xff]  }
 0x5ab   :  { %10222 = vmatpush1.bf16.msra.mxu1 %v14909_v63  ;;  %v14999_v63 = vld [vmem:[#allocation11 + $0x140] sm:$0xff]  }
 0x5ac   :  { %10223 = vmatprep.subr.bf16.mxu1 %v14916_v1  ;;  %v14974_v1 = vld [vmem:[#allocation8 + $0xca0] ss:$40 sps:$4 sm:$0xff]  }
 0x5ad   :  { %12723 = vmatpush3.bf16.msra.mxu0 %v14917_v2  ;;  %v14980_v2 = vld [vmem:[#allocation8 + $0xcf4] ss:$40 sps:$4 sm:$0xff]  }
 0x5ae   :  { %12724 = vmatprep.subr.bf16.mxu0 %v14918_v3  ;;  %v15000_v3 = vld [vmem:[#allocation11 + $0x100] sm:$0xff]  }
 0x5af   :  { %10224 = vmatpush1.bf16.msra.mxu1 %v14914_v60  ;;  %v15004_v60 = vld [vmem:[#allocation11 + $0x148] sm:$0xff]  }
 0x5b0   :  { %10225 = vmatprep.subr.bf16.mxu1 %v14921_v4  ;;  %v14978_v4 = vld [vmem:[#allocation8 + $0xcf0] ss:$40 sps:$4 sm:$0xff]  }
 0x5b1   :  { %12725 = vmatpush3.bf16.msra.mxu0 %v14922_v5  ;;  %v14983_v5 = vld [vmem:[#allocation8 + $0xd44] ss:$40 sps:$4 sm:$0xff]  }
 0x5b2   :  { %12726 = vmatprep.subr.bf16.mxu0 %v14923_v6  ;;  %v15005_v6 = vld [vmem:[#allocation11 + $0x108] sm:$0xff]  }
 0x5b3   :  { %10226 = vmatpush1.bf16.msra.mxu1 %v14919_v7  ;;  %v15009_v7 = vld [vmem:[#allocation11 + $0x150] sm:$0xff]  }
 0x5b4   :  { %10227 = vmatprep.subr.bf16.mxu1 %v14926_v50  ;;  %v14981_v50 = vld [vmem:[#allocation8 + $0xd40] ss:$40 sps:$4 sm:$0xff]  }
 0x5b5   :  { %12727 = vmatpush3.bf16.msra.mxu0 %v14927_v8  ;;  %v14986_v8 = vld [vmem:[#allocation8 + $0xd94] ss:$40 sps:$4 sm:$0xff]  }
 0x5b6   :  { %12728 = vmatprep.subr.bf16.mxu0 %v14928_v10  ;;  %v15010_v10 = vld [vmem:[#allocation11 + $0x110] sm:$0xff]  }
 0x5b7   :  { %10228 = vmatpush1.bf16.msra.mxu1 %v14924_v11  ;;  %v15014_v11 = vld [vmem:[#allocation11 + $0x158] sm:$0xff]  }
 0x5b8   :  { %10229 = vmatprep.subr.bf16.mxu1 %v14931_v12  ;;  %v14984_v12 = vld [vmem:[#allocation8 + $0xd90] ss:$40 sps:$4 sm:$0xff]  }
 0x5b9   :  { %12729 = vmatpush3.bf16.msra.mxu0 %v14932_v40  ;;  %v14989_v40 = vld [vmem:[#allocation8 + $0xde4] ss:$40 sps:$4 sm:$0xff]  }
 0x5ba   :  { %12730 = vmatprep.subr.bf16.mxu0 %v14933_v52  ;;  %v15019_v52 = vld [vmem:[#allocation11 + $0x160] sm:$0xff]  }
 0x5bb   :  { %10230 = vmatpush1.bf16.msra.mxu1 %v14929_v14  ;;  %v14987_v14 = vld [vmem:[#allocation8 + $0xde0] ss:$40 sps:$4 sm:$0xff]  }
 0x5bc   :  { %10242 = vmatprep.subr.bf16.mxu1 %v14936_v46  ;;  %v14992_v46 = vld [vmem:[#allocation8 + $0xe34] ss:$40 sps:$4 sm:$0xff]  }
 0x5bd   :  { %12731 = vmatpush3.bf16.msra.mxu0 %v14937_v15  ;;  %v15020_v15 = vld [vmem:[#allocation11 + $0x120] sm:$0xff]  }
 0x5be   :  { %10232 = vmatmul.mubr.bf16.vlgmr.msra.gmra.mrb[16].mxu1 %v15534_v41  ;;  %12738 = vmatprep.subr.bf16.mxu0 %v14938_v16  ;;  %v14951_v41 = vld [vmem:[#allocation8 + $0xb14] ss:$40 sps:$4 sm:$0xff]  }
 0x5bf   :  { %10243 = vmatpush1.bf16.msra.mxu1 %v14934_v9  ;;  %10274 = vmatprep.mubr.bf16.mxu1 %v15569_v31  ;;  %v14949_v31 = vld [vmem:[#allocation8 + $0xb10] ss:$40 sps:$4 sm:$0xff]  }
 0x5c0   :  { %11081 = vmatmul.mubr.bf16.vlgmr.msra.gmra.mrb[20].mxu0 %v15612_v58  ;;  %10244 = vmatprep.subr.bf16.mxu1 %v14941_v56  ;;  %v14956_v58 = vld [vmem:[#allocation8 + $0xb64] ss:$40 sps:$4 sm:$0xff]   ;;  %v15024_v16 = vld [vmem:[#allocation11 + $0x168] sm:$0xff]  }
 0x5c1   :  { %12739 = vmatpush3.bf16.msra.mxu0 %v14942_v13  ;;  %11121 = vmatprep.mubr.bf16.mxu0 %v15630_v25  ;;  %v14954_v25 = vld [vmem:[#allocation8 + $0xb60] ss:$40 sps:$4 sm:$0xff]   ;;  %v14990_v9 = vld [vmem:[#allocation8 + $0xe30] ss:$40 sps:$4 sm:$0xff]   ;;  %v14995_v56 = vld [vmem:[#allocation8 + $0xe84] ss:$40 sps:$4 sm:$0xff]  }
 0x5c2   :  { %12740 = vmatprep.subr.bf16.mxu0 %v14943_v18  ;;  %v15025_v13 = vld [vmem:[#allocation11 + $0x128] sm:$0xff]   ;;  %v15029_v18 = vld [vmem:[#allocation11 + $0x170] sm:$0xff]  }
 0x5c3   :  { %10245 = vmatpush1.bf16.msra.mxu1 %v14939_v19  ;;  %v14993_v19 = vld [vmem:[#allocation8 + $0xe80] ss:$40 sps:$4 sm:$0xff]  }
 0x5c4   :  { %10246 = vmatprep.subr.bf16.mxu1 %v14946_v20  ;;  %v14998_v20 = vld [vmem:[#allocation8 + $0xed4] ss:$40 sps:$4 sm:$0xff]  }
 0x5c5   :  { %12741 = vmatpush3.bf16.msra.mxu0 %v14947_v21  ;;  %v15030_v21 = vld [vmem:[#allocation11 + $0x130] sm:$0xff]  }
 0x5c6   :  { %12742 = vmatprep.subr.bf16.mxu0 %v14948_v36  ;;  %v15034_v36 = vld [vmem:[#allocation11 + $0x178] sm:$0xff]  }
 0x5c7   :  { %10247 = vmatpush1.bf16.msra.mxu1 %v14944_v23  ;;  %v14996_v23 = vld [vmem:[#allocation8 + $0xed0] ss:$40 sps:$4 sm:$0xff]  }
 0x5c8   :  { %10248 = vmatprep.subr.bf16.mxu1 %v14951_v41  ;;  %v15003_v41 = vld [vmem:[#allocation8 + $0xf24] ss:$40 sps:$4 sm:$0xff]  }
 0x5c9   :  { %12743 = vmatpush3.bf16.msra.mxu0 %v14952_v27  ;;  %v15035_v27 = vld [vmem:[#allocation11 + $0x138] sm:$0xff]  }
 0x5ca   :  { %12744 = vmatprep.subr.bf16.mxu0 %v14953_v30  ;;  %v15090_v30 = vld [vmem:[#allocation11 + $0x1c0] sm:$0xff]  }
 0x5cb   :  { %10249 = vmatpush1.bf16.msra.mxu1 %v14949_v31  ;;  %v15001_v31 = vld [vmem:[#allocation8 + $0xf20] ss:$40 sps:$4 sm:$0xff]  }
 0x5cc   :  { %10250 = vmatprep.subr.bf16.mxu1 %v14956_v58  ;;  %v15008_v58 = vld [vmem:[#allocation8 + $0xf74] ss:$40 sps:$4 sm:$0xff]  }
 0x5cd   :  { %12745 = vmatpush3.bf16.msra.mxu0 %v14957_v34  ;;  %v15006_v34 = vld [vmem:[#allocation8 + $0xf70] ss:$40 sps:$4 sm:$0xff]  }
 0x5ce   :  { %12746 = vmatprep.subr.bf16.mxu0 %v14958_v37  ;;  %v15013_v37 = vld [vmem:[#allocation8 + $0xfc4] ss:$40 sps:$4 sm:$0xff]  }
 0x5cf   :  { %10251 = vmatpush1.bf16.msra.mxu1 %v14954_v25  ;;  %v15011_v25 = vld [vmem:[#allocation8 + $0xfc0] ss:$40 sps:$4 sm:$0xff]  }
 0x5d0   :  { %10252 = vmatprep.subr.bf16.mxu1 %v14961_v38  ;;  %v15018_v38 = vld [vmem:[#allocation8 + $0x1014] ss:$40 sps:$4 sm:$0xff]  }
 0x5d1   :  { %12747 = vmatpush3.bf16.msra.mxu0 %v14962_v39  ;;  %v15016_v39 = vld [vmem:[#allocation8 + $0x1010] ss:$40 sps:$4 sm:$0xff]  }
 0x5d2   :  { %12748 = vmatprep.subr.bf16.mxu0 %v14963_v42  ;;  %v15023_v42 = vld [vmem:[#allocation8 + $0x1064] ss:$40 sps:$4 sm:$0xff]  }
 0x5d3   :  { %10253 = vmatpush1.bf16.msra.mxu1 %v14959_v24  ;;  %v15021_v24 = vld [vmem:[#allocation8 + $0x1060] ss:$40 sps:$4 sm:$0xff]  }
 0x5d4   :  { %10254 = vmatprep.subr.bf16.mxu1 %v14966_v35  ;;  %v15028_v35 = vld [vmem:[#allocation8 + $0x10b4] ss:$40 sps:$4 sm:$0xff]  }
 0x5d5   :  { %12749 = vmatpush3.bf16.msra.mxu0 %v14967_v49 }
 0x5d6   :  { %12750 = vmatprep.subr.bf16.mxu0 %v14968_v53  ;;  %v15026_v53 = vld [vmem:[#allocation8 + $0x10b0] ss:$40 sps:$4 sm:$0xff]  }
 0x5d7   :  { %10255 = vmatpush1.bf16.msra.mxu1 %v14964_v54  ;;  %v15033_v54 = vld [vmem:[#allocation8 + $0x1104] ss:$40 sps:$4 sm:$0xff]  }
 0x5d8   :  { %10256 = vmatprep.subr.bf16.mxu1 %v14971_v57 }
 0x5d9   :  { %12751 = vmatpush3.bf16.msra.mxu0 %v14972_v0 }
 0x5da   :  { %12752 = vmatprep.subr.bf16.mxu0 %v14973_v45 }
 0x5db   :  { %10257 = vmatpush1.bf16.msra.mxu1 %v14969_v59 }
 0x5dc   :  { %10258 = vmatprep.subr.bf16.mxu1 %v14976_v61 }
 0x5dd   :  { %12753 = vmatpush3.bf16.msra.mxu0 %v14977_v62  ;;  %v15031_v62 = vld [vmem:[#allocation8 + $0x1100] ss:$40 sps:$4 sm:$0xff]  }
 0x5de   :  { %12760 = vmatprep.subr.bf16.mxu0 %v14999_v63 }
 0x5df   :  { %10259 = vmatpush1.bf16.msra.mxu1 %v14974_v1 }
 0x5e0   :  { %11122 = vmatmul.mubr.bf16.vlgmr.msra.gmra.mrb[24].mxu0 %v15628_v22  ;;  %10260 = vmatprep.subr.bf16.mxu1 %v14980_v2  ;;  %v15015_v22 = vld [vmem:[#allocation11 + $0x118] sm:$0xff]   ;;  %v15038_v2 = vld [vmem:[#allocation8 + $0x1154] ss:$40 sps:$4 sm:$0xff]  }
 0x5e1   :  { %12761 = vmatpush3.bf16.msra.mxu0 %v15000_v3 }
 0x5e2   :  { %12762 = vmatprep.subr.bf16.mxu0 %v15004_v60 }
 0x5e3   :  { %10261 = vmatpush1.bf16.msra.mxu1 %v14978_v4 }
 0x5e4   :  { %10262 = vmatprep.subr.bf16.mxu1 %v14983_v5 }
 0x5e5   :  { %12763 = vmatpush3.bf16.msra.mxu0 %v15005_v6 }
 0x5e6   :  { %12764 = vmatprep.subr.bf16.mxu0 %v15009_v7  ;;  %v15041_v7 = vld [vmem:[#allocation8 + $0x11a4] ss:$40 sps:$4 sm:$0xff]  }
 0x5e7   :  { %10263 = vmatpush1.bf16.msra.mxu1 %v14981_v50 }
 0x5e8   :  { %10264 = vmatprep.subr.bf16.mxu1 %v14986_v8  ;;  %v15091_v8 = vld [vmem:[#allocation11 + $0x180] sm:$0xff]  }
 0x5e9   :  { %12765 = vmatpush3.bf16.msra.mxu0 %v15010_v10  ;;  %v15095_v10 = vld [vmem:[#allocation11 + $0x1c8] sm:$0xff]  }
 0x5ea   :  { %12766 = vmatprep.subr.bf16.mxu0 %v15014_v11  ;;  %v15039_v11 = vld [vmem:[#allocation8 + $0x11a0] ss:$40 sps:$4 sm:$0xff]  }
 0x5eb   :  { %10265 = vmatpush1.bf16.msra.mxu1 %v14984_v12  ;;  %v15044_v12 = vld [vmem:[#allocation8 + $0x11f4] ss:$40 sps:$4 sm:$0xff]  }
 0x5ec   :  { %10266 = vmatprep.subr.bf16.mxu1 %v14989_v40  ;;  %v15096_v40 = vld [vmem:[#allocation11 + $0x188] sm:$0xff]  }
 0x5ed   :  { %12767 = vmatpush3.bf16.msra.mxu0 %v15015_v22  ;;  %v15100_v22 = vld [vmem:[#allocation11 + $0x1d0] sm:$0xff]  }
 0x5ee   :  { %12768 = vmatprep.subr.bf16.mxu0 %v15019_v52  ;;  %v15042_v52 = vld [vmem:[#allocation8 + $0x11f0] ss:$40 sps:$4 sm:$0xff]  }
 0x5ef   :  { %10267 = vmatpush1.bf16.msra.mxu1 %v14987_v14  ;;  %v15047_v14 = vld [vmem:[#allocation8 + $0x1244] ss:$40 sps:$4 sm:$0xff]  }
 0x5f0   :  { %10268 = vmatprep.subr.bf16.mxu1 %v14992_v46  ;;  %v15101_v46 = vld [vmem:[#allocation11 + $0x190] sm:$0xff]  }
 0x5f1   :  { %12769 = vmatpush3.bf16.msra.mxu0 %v15020_v15  ;;  %v15105_v15 = vld [vmem:[#allocation11 + $0x1d8] sm:$0xff]  }
 0x5f2   :  { %12770 = vmatprep.subr.bf16.mxu0 %v15024_v16  ;;  %v15045_v16 = vld [vmem:[#allocation8 + $0x1240] ss:$40 sps:$4 sm:$0xff]  }
 0x5f3   :  { %10269 = vmatpush1.bf16.msra.mxu1 %v14990_v9  ;;  %v15050_v9 = vld [vmem:[#allocation8 + $0x1294] ss:$40 sps:$4 sm:$0xff]  }
 0x5f4   :  { %10270 = vmatprep.subr.bf16.mxu1 %v14995_v56  ;;  %v15106_v56 = vld [vmem:[#allocation11 + $0x198] sm:$0xff]  }
 0x5f5   :  { %12771 = vmatpush3.bf16.msra.mxu0 %v15025_v13  ;;  %v15110_v13 = vld [vmem:[#allocation11 + $0x1e0] sm:$0xff]  }
 0x5f6   :  { %12772 = vmatprep.subr.bf16.mxu0 %v15029_v18  ;;  %v15048_v18 = vld [vmem:[#allocation8 + $0x1290] ss:$40 sps:$4 sm:$0xff]  }
 0x5f7   :  { %10271 = vmatpush1.bf16.msra.mxu1 %v14993_v19  ;;  %v15053_v19 = vld [vmem:[#allocation8 + $0x12e4] ss:$40 sps:$4 sm:$0xff]  }
 0x5f8   :  { %10272 = vmatprep.subr.bf16.mxu1 %v14998_v20  ;;  %v15111_v20 = vld [vmem:[#allocation11 + $0x1a0] sm:$0xff]  }
 0x5f9   :  { %12773 = vmatpush3.bf16.msra.mxu0 %v15030_v21  ;;  %v15115_v21 = vld [vmem:[#allocation11 + $0x1e8] sm:$0xff]  }
 0x5fa   :  { %12774 = vmatprep.subr.bf16.mxu0 %v15034_v36  ;;  %v15051_v36 = vld [vmem:[#allocation8 + $0x12e0] ss:$40 sps:$4 sm:$0xff]  }
 0x5fb   :  { %10273 = vmatpush1.bf16.msra.mxu1 %v14996_v23  ;;  %v15056_v23 = vld [vmem:[#allocation8 + $0x1334] ss:$40 sps:$4 sm:$0xff]  }
 0x5fc   :  { %10285 = vmatprep.subr.bf16.mxu1 %v15003_v41  ;;  %v15116_v41 = vld [vmem:[#allocation11 + $0x1a8] sm:$0xff]  }
 0x5fd   :  { %12775 = vmatpush3.bf16.msra.mxu0 %v15035_v27  ;;  %v15120_v27 = vld [vmem:[#allocation11 + $0x1f0] sm:$0xff]  }
 0x5fe   :  { %10275 = vmatmul.mubr.bf16.vlgmr.msra.gmra.mrb[16].mxu1 %v15565_v28  ;;  %12782 = vmatprep.subr.bf16.mxu0 %v15090_v30  ;;  %v15647_v28 = vld [vmem:[#allocation10] sm:$0xff]  ;;  %v15054_v30 = vld [vmem:[#allocation8 + $0x1330] ss:$40 sps:$4 sm:$0xff]  }
 0x5ff   :  { %10286 = vmatpush1.bf16.msra.mxu1 %v15001_v31  ;;  %10317 = vmatprep.mubr.bf16.mxu1 %v15571_v32  ;;  %v5265_v32 = vrot.slane %v15647_v28, %v720_v43  ;;  %v5269_v49 = vrot.slane %v15647_v28, %v724_v26  ;;  %v15036_v26 = vld [vmem:[#allocation8 + $0x1150] ss:$40 sps:$4 sm:$0xff]   ;;  %v15059_v31 = vld [vmem:[#allocation8 + $0x1384] ss:$40 sps:$4 sm:$0xff]  }
 0x600   :  { %10287 = vmatprep.subr.bf16.mxu1 %v15008_v58  ;;  %v15121_v58 = vld [vmem:[#allocation11 + $0x1b0] sm:$0xff]  }
 0x603   :  { %10288 = vmatpush1.bf16.msra.mxu1 %v15006_v34  ;;  %v15125_v34 = vld [vmem:[#allocation11 + $0x1f8] sm:$0xff]  }
 0x604   :  { %10289 = vmatprep.subr.bf16.mxu1 %v15013_v37  ;;  %v15057_v37 = vld [vmem:[#allocation8 + $0x1380] ss:$40 sps:$4 sm:$0xff]  }
 0x607   :  { %10290 = vmatpush1.bf16.msra.mxu1 %v15011_v25  ;;  %v15062_v25 = vld [vmem:[#allocation8 + $0x13d4] ss:$40 sps:$4 sm:$0xff]  }
 0x608   :  { %10291 = vmatprep.subr.bf16.mxu1 %v15018_v38  ;;  %v15126_v38 = vld [vmem:[#allocation11 + $0x1b8] sm:$0xff]  }
 0x60b   :  { %10292 = vmatpush1.bf16.msra.mxu1 %v15016_v39  ;;  %v15060_v39 = vld [vmem:[#allocation8 + $0x13d0] ss:$40 sps:$4 sm:$0xff]  }
 0x60c   :  { %10293 = vmatprep.subr.bf16.mxu1 %v15023_v42  ;;  %v15065_v42 = vld [vmem:[#allocation8 + $0x1424] ss:$40 sps:$4 sm:$0xff]  }
 0x60f   :  { %10294 = vmatpush1.bf16.msra.mxu1 %v15021_v24  ;;  %v15063_v24 = vld [vmem:[#allocation8 + $0x1420] ss:$40 sps:$4 sm:$0xff]  }
 0x610   :  { %10295 = vmatprep.subr.bf16.mxu1 %v15028_v35  ;;  %v15068_v35 = vld [vmem:[#allocation8 + $0x1474] ss:$40 sps:$4 sm:$0xff]  }
 0x611   :  { %v9932_v57 = vpop.f32.mrb[12].mxu1 }
 0x612   :  { %v12854_v0 = vadd.f32 %v9932_v57, %v5265_v32  ;;  %v9934_v45 = vpop.f32.mrb[13].mxu1  ;;  %v15072_v57 = vld [vmem:[#allocation8 + $0x1510] ss:$40 sps:$4 sm:$0xff]  }
 0x613   :  { %v12855_v59 = vadd.f32 %v9934_v45, %v5269_v49  ;;  %v9936_v61 = vpop.f32.mrb[14].mxu1  ;;  %10296 = vmatpush1.bf16.msra.mxu1 %v15026_v53  ;;  %v15069_v53 = vld [vmem:[#allocation8 + $0x14c0] ss:$40 sps:$4 sm:$0xff]  }
 0x614   :  { %v12856_v63 = vadd.f32 %v9936_v61, %v5265_v32  ;;  %v9938_v1 = vpop.f32.mrb[15].mxu1  ;;  %10297 = vmatprep.subr.bf16.mxu1 %v15033_v54  ;;  %v10375_v3 = vmax.f32 %v12854_v0, 0.0  ;;  %v15066_v32 = vld [vmem:[#allocation8 + $0x1470] ss:$40 sps:$4 sm:$0xff]   ;;  %v15074_v54 = vld [vmem:[#allocation8 + $0x1514] ss:$40 sps:$4 sm:$0xff]  }
 0x615   :  { %v12857_v43 = vadd.f32 %v9938_v1, %v5269_v49  ;;  %v10376_v4 = vmax.f32 %v12855_v59, 0.0  ;;  %v15071_v49 = vld [vmem:[#allocation8 + $0x14c4] ss:$40 sps:$4 sm:$0xff]   ;;  %v15075_v45 = vld [vmem:[#allocation8 + $0x1560] ss:$40 sps:$4 sm:$0xff]  }
 0x616   :  { %v10385_v60 = vmax.f32 %v12856_v63, 0.0  ;;  %v15077_v0 = vld [vmem:[#allocation8 + $0x1564] ss:$40 sps:$4 sm:$0xff]   ;;  %v15080_v59 = vld [vmem:[#allocation8 + $0x15b4] ss:$40 sps:$4 sm:$0xff]  }
 0x617   :  { %v10386_v5 = vmax.f32 %v12857_v43, 0.0  ;;  %10298 = vmatpush1.bf16.msra.mxu1 %v15031_v62  ;;  %v15083_v61 = vld [vmem:[#allocation8 + $0x1604] ss:$40 sps:$4 sm:$0xff]   ;;  %v15086_v62 = vld [vmem:[#allocation8 + $0x1654] ss:$40 sps:$4 sm:$0xff]  }
 0x618   :  { %v10395_v6 = vpack.c.bf16 %v10385_v60, %v10375_v3  ;;  %10299 = vmatprep.subr.bf16.mxu1 %v15038_v2  ;;  %v15084_v63 = vld [vmem:[#allocation8 + $0x1650] ss:$40 sps:$4 sm:$0xff]   ;;  %v15089_v1 = vld [vmem:[#allocation8 + $0x16a4] ss:$40 sps:$4 sm:$0xff]   ;;  %v15087_v2 = vld [vmem:[#allocation8 + $0x16a0] ss:$40 sps:$4 sm:$0xff]  }
 0x619   :  { %v10396_v50 = vpack.c.bf16 %v10386_v5, %v10376_v4  ;;  %v15094_v43 = vld [vmem:[#allocation8 + $0x16f4] ss:$40 sps:$4 sm:$0xff]   ;;  %v15092_v3 = vld [vmem:[#allocation8 + $0x16f0] ss:$40 sps:$4 sm:$0xff]   ;;  %v15099_v60 = vld [vmem:[#allocation8 + $0x1744] ss:$40 sps:$4 sm:$0xff]  }
 0x61a   :  { %v15097_v4 = vld [vmem:[#allocation8 + $0x1740] ss:$40 sps:$4 sm:$0xff]   ;;  %v15104_v5 = vld [vmem:[#allocation8 + $0x1794] ss:$40 sps:$4 sm:$0xff]  }
 0x61b   :  { %10300 = vmatpush1.bf16.msra.mxu1 %v15036_v26  ;;  %11162 = vmatprep.mubr.bf16.mxu0 %v10396_v50  ;;  %v15102_v26 = vld [vmem:[#allocation8 + $0x1790] ss:$40 sps:$4 sm:$0xff]   ;;  %v15114_v50 = vld [vmem:[#allocation8 + $0x1834] ss:$40 sps:$4 sm:$0xff]  }
 0x61c   :  { %11163 = vmatmul.mubr.bf16.vlgmr.msra.gmra.mrb[28].mxu0 %v10395_v6  ;;  %10301 = vmatprep.subr.bf16.mxu1 %v15041_v7  ;;  %v15109_v6 = vld [vmem:[#allocation8 + $0x17e4] ss:$40 sps:$4 sm:$0xff]   ;;  %v15107_v7 = vld [vmem:[#allocation8 + $0x17e0] ss:$40 sps:$4 sm:$0xff]  }
 0x61d   :  { %12783 = vmatpush3.bf16.msra.mxu0 %v15091_v8  ;;  %v15112_v8 = vld [vmem:[#allocation8 + $0x1830] ss:$40 sps:$4 sm:$0xff]  }
 0x61e   :  { %12784 = vmatprep.subr.bf16.mxu0 %v15095_v10  ;;  %v5273_v10 = vrot.slane %v15647_v28, %v728_v47 }
 0x61f   :  { %10302 = vmatpush1.bf16.msra.mxu1 %v15039_v11  ;;  %v15119_v11 = vld [vmem:[#allocation8 + $0x1884] ss:$40 sps:$4 sm:$0xff]  }
 0x620   :  { %10303 = vmatprep.subr.bf16.mxu1 %v15044_v12  ;;  %v5277_v12 = vrot.slane %v15647_v28, %v732_v48 }
 0x621   :  { %12785 = vmatpush3.bf16.msra.mxu0 %v15096_v40 }
 0x622   :  { %12786 = vmatprep.subr.bf16.mxu0 %v15100_v22  ;;  %v15117_v22 = vld [vmem:[#allocation8 + $0x1880] ss:$40 sps:$4 sm:$0xff]  }
 0x623   :  { %10304 = vmatpush1.bf16.msra.mxu1 %v15042_v52 }
 0x624   :  { %10305 = vmatprep.subr.bf16.mxu1 %v15047_v14 }
 0x625   :  { %12787 = vmatpush3.bf16.msra.mxu0 %v15101_v46  ;;  %v15124_v46 = vld [vmem:[#allocation8 + $0x18d4] ss:$40 sps:$4 sm:$0xff]  }
 0x626   :  { %12788 = vmatprep.subr.bf16.mxu0 %v15105_v15 }
 0x627   :  { %10306 = vmatpush1.bf16.msra.mxu1 %v15045_v16 }
 0x628   :  { %10307 = vmatprep.subr.bf16.mxu1 %v15050_v9 }
 0x629   :  { %12789 = vmatpush3.bf16.msra.mxu0 %v15106_v56 }
 0x62a   :  { %12790 = vmatprep.subr.bf16.mxu0 %v15110_v13 }
 0x62b   :  { %10308 = vmatpush1.bf16.msra.mxu1 %v15048_v18  ;;  %v15122_v18 = vld [vmem:[#allocation8 + $0x18d0] ss:$40 sps:$4 sm:$0xff]  }
 0x62c   :  { %10309 = vmatprep.subr.bf16.mxu1 %v15053_v19 }
 0x62d   :  { %12791 = vmatpush3.bf16.msra.mxu0 %v15111_v20 }
 0x62e   :  { %12792 = vmatprep.subr.bf16.mxu0 %v15115_v21 }
 0x62f   :  { %10310 = vmatpush1.bf16.msra.mxu1 %v15051_v36  ;;  %v15128_v36 = vld [vmem:[#allocation11 + $0x200] sm:$0xff]  }
 0x630   :  { %10311 = vmatprep.subr.bf16.mxu1 %v15056_v23  ;;  %v15129_v23 = vld [vmem:[#allocation11 + $0x248] sm:$0xff]  }
 0x631   :  { %12793 = vmatpush3.bf16.msra.mxu0 %v15116_v41  ;;  %v15130_v41 = vld [vmem:[#allocation11 + $0x208] sm:$0xff]  }
 0x632   :  { %12794 = vmatprep.subr.bf16.mxu0 %v15120_v27  ;;  %v15131_v27 = vld [vmem:[#allocation11 + $0x250] sm:$0xff]  }
 0x633   :  { %10312 = vmatpush1.bf16.msra.mxu1 %v15054_v30  ;;  %v15132_v30 = vld [vmem:[#allocation11 + $0x210] sm:$0xff]  }
 0x634   :  { %10313 = vmatprep.subr.bf16.mxu1 %v15059_v31  ;;  %v15133_v31 = vld [vmem:[#allocation11 + $0x258] sm:$0xff]  }
 0x635   :  { %12795 = vmatpush3.bf16.msra.mxu0 %v15121_v58  ;;  %v15134_v58 = vld [vmem:[#allocation11 + $0x218] sm:$0xff]  }
 0x636   :  { %12796 = vmatprep.subr.bf16.mxu0 %v15125_v34  ;;  %v15135_v34 = vld [vmem:[#allocation11 + $0x260] sm:$0xff]  }
 0x637   :  { %10314 = vmatpush1.bf16.msra.mxu1 %v15057_v37  ;;  %v15136_v37 = vld [vmem:[#allocation11 + $0x220] sm:$0xff]  }
 0x638   :  { %10315 = vmatprep.subr.bf16.mxu1 %v15062_v25  ;;  %v15137_v25 = vld [vmem:[#allocation11 + $0x268] sm:$0xff]  }
 0x639   :  { %12797 = vmatpush3.bf16.msra.mxu0 %v15126_v38 }
 0x63b   :  { %10316 = vmatpush1.bf16.msra.mxu1 %v15060_v39 }
 0x63c   :  { %10328 = vmatprep.subr.bf16.mxu1 %v15065_v42 }
 0x63e   :  { %10318 = vmatmul.mubr.bf16.vlgmr.msra.gmra.mrb[16].mxu1 %v15567_v29  ;;  %v15078_v29 = vld [vmem:[#allocation8 + $0x15b0] ss:$40 sps:$4 sm:$0xff]  }
 0x63f   :  { %10329 = vmatpush1.bf16.msra.mxu1 %v15063_v24  ;;  %10360 = vmatprep.mubr.bf16.mxu1 %v15589_v17  ;;  %v15081_v17 = vld [vmem:[#allocation8 + $0x1600] ss:$40 sps:$4 sm:$0xff]  }
 0x640   :  { %10330 = vmatprep.subr.bf16.mxu1 %v15068_v35 }
 0x643   :  { %10331 = vmatpush1.bf16.msra.mxu1 %v15066_v32  ;;  %v12635_v32 = vld [vmem:[#allocation13] ss:$0 sm:$0xff] }
 0x644   :  { %10332 = vmatprep.subr.bf16.mxu1 %v15071_v49 }
 0x647   :  { %10333 = vmatpush1.bf16.msra.mxu1 %v15069_v53 }
 0x648   :  { %10334 = vmatprep.subr.bf16.mxu1 %v15074_v54 }
 0x64b   :  { %10335 = vmatpush1.bf16.msra.mxu1 %v15072_v57 }
 0x64c   :  { %10336 = vmatprep.subr.bf16.mxu1 %v15077_v0 }
 0x64f   :  { %10337 = vmatpush1.bf16.msra.mxu1 %v15075_v45 }
 0x650   :  { %10338 = vmatprep.subr.bf16.mxu1 %v15080_v59 }
 0x653   :  { %10339 = vmatpush1.bf16.msra.mxu1 %v15078_v29 }
 0x654   :  { %10340 = vmatprep.subr.bf16.mxu1 %v15083_v61 }
 0x657   :  { %10341 = vmatpush1.bf16.msra.mxu1 %v15081_v17 }
 0x658   :  { %10342 = vmatprep.subr.bf16.mxu1 %v15086_v62  ;;  %v15138_v62 = vld [vmem:[#allocation11 + $0x228] sm:$0xff]  }
 0x65b   :  { %10343 = vmatpush1.bf16.msra.mxu1 %v15084_v63  ;;  %v15139_v63 = vld [vmem:[#allocation11 + $0x270] sm:$0xff]  }
 0x65c   :  { %10344 = vmatprep.subr.bf16.mxu1 %v15089_v1  ;;  %v15140_v1 = vld [vmem:[#allocation11 + $0x230] sm:$0xff]  }
 0x65f   :  { %10345 = vmatpush1.bf16.msra.mxu1 %v15087_v2  ;;  %v15141_v2 = vld [vmem:[#allocation11 + $0x278] sm:$0xff]  }
 0x660   :  { %10346 = vmatprep.subr.bf16.mxu1 %v15094_v43  ;;  %v15142_v43 = vld [vmem:[#allocation11 + $0x238] sm:$0xff]  }
 0x663   :  { %10347 = vmatpush1.bf16.msra.mxu1 %v15092_v3 }
 0x664   :  { %10348 = vmatprep.subr.bf16.mxu1 %v15099_v60 }
 0x667   :  { %10349 = vmatpush1.bf16.msra.mxu1 %v15097_v4 }
 0x668   :  { %10350 = vmatprep.subr.bf16.mxu1 %v15104_v5 }
 0x66b   :  { %10351 = vmatpush1.bf16.msra.mxu1 %v15102_v26 }
 0x66c   :  { %10352 = vmatprep.subr.bf16.mxu1 %v15109_v6 }
 0x66f   :  { %10353 = vmatpush1.bf16.msra.mxu1 %v15107_v7 }
 0x670   :  { %10354 = vmatprep.subr.bf16.mxu1 %v15114_v50 }
 0x673   :  { %10355 = vmatpush1.bf16.msra.mxu1 %v15112_v8  ;;  %v10147_v40 = vpop.f32.mrb[16].mxu0  ;;  %v5243_v8 = vld [vmem:[#allocation10 + $0x8] sm:$0x3] }
 0x674   :  { %v12858_v52 = vadd.f32 %v10147_v40, %v5273_v10  ;;  %v10149_v14 = vpop.f32.mrb[17].mxu0  ;;  %10356 = vmatprep.subr.bf16.mxu1 %v15119_v11  ;;  %v5285_v11 = vrot.slane %v5243_v8, %v15523_v55 }
 0x675   :  { %v12859_v15 = vadd.f32 %v10149_v14, %v5277_v12  ;;  %v10151_v16 = vpop.f32.mrb[18].mxu0 }
 0x676   :  { %v12860_v9 = vadd.f32 %v10151_v16, %v5273_v10  ;;  %v10153_v56 = vpop.f32.mrb[19].mxu0  ;;  %v10377_v47 = vmax.f32 %v12858_v52, 0.0  ;;  %v5281_v10 = vrot.slane %v5243_v8, %v15519_v51 }
 0x677   :  { %v12861_v13 = vadd.f32 %v10153_v56, %v5277_v12  ;;  %10357 = vmatpush1.bf16.msra.mxu1 %v15117_v22  ;;  %v10378_v20 = vmax.f32 %v12859_v15, 0.0 }
 0x678   :  { %v10387_v19 = vmax.f32 %v12860_v9, 0.0  ;;  %10358 = vmatprep.subr.bf16.mxu1 %v15124_v46 }
 0x679   :  { %v10388_v48 = vmax.f32 %v12861_v13, 0.0 }
 0x67a   :  { %v10397_v28 = vpack.c.bf16 %v10387_v19, %v10377_v47 }
 0x67b   :  { %v10398_v21 = vpack.c.bf16 %v10388_v48, %v10378_v20  ;;  %10359 = vmatpush1.bf16.msra.mxu1 %v15122_v18 }
 0x67c   :  { %12804 = vmatprep.subr.bf16.mxu1 %v15127_v44 }
 0x67d   :  { %11203 = vmatprep.mubr.bf16.mxu0 %v10398_v21 }
 0x67e   :  { %10361 = vmatmul.mubr.bf16.vlgmr.msra.gmra.mrb[16].mxu1 %v15587_v33  ;;  %11204 = vmatmul.mubr.bf16.vlgmr.msra.gmra.mrb[32].mxu0 %v10397_v28 }
 0x67f   :  { %12805 = vmatpush3.bf16.msra.mxu1 %v15128_v36 }
 0x680   :  { %12806 = vmatprep.subr.bf16.mxu1 %v15129_v23 }
 0x683   :  { %12807 = vmatpush3.bf16.msra.mxu1 %v15130_v41 }
 0x684   :  { %12808 = vmatprep.subr.bf16.mxu1 %v15131_v27 }
 0x687   :  { %12809 = vmatpush3.bf16.msra.mxu1 %v15132_v30 }
 0x688   :  { %12810 = vmatprep.subr.bf16.mxu1 %v15133_v31 }
 0x68b   :  { %12811 = vmatpush3.bf16.msra.mxu1 %v15134_v58 }
 0x68c   :  { %12812 = vmatprep.subr.bf16.mxu1 %v15135_v34 }
 0x68f   :  { %12813 = vmatpush3.bf16.msra.mxu1 %v15136_v37 }
 0x690   :  { %12814 = vmatprep.subr.bf16.mxu1 %v15137_v25 }
 0x693   :  { %v12732_v33 = vpop.f32.mrb[20].mxu0  ;;  %12815 = vmatpush3.bf16.msra.mxu1 %v15138_v62 }
 0x694   :  { %v12733_v38 = vpop.f32.mrb[21].mxu0  ;;  %12816 = vmatprep.subr.bf16.mxu1 %v15139_v63 }
 0x695   :  { %v12734_v39 = vadd.f32 %v12733_v38, %v12732_v33  ;;  %v12735_v42 = vpop.f32.mrb[22].mxu0 }
 0x696   :  { %v12736_v24 = vpop.f32.mrb[23].mxu0 }
 0x697   :  { %v12737_v35 = vadd.f32 %v12736_v24, %v12735_v42  ;;  %v11083_v54 = vadd.f32 %v12734_v39, %v12635_v32  ;;  %12817 = vmatpush3.bf16.msra.mxu1 %v15140_v1 }
 0x698   :  { %12818 = vmatprep.subr.bf16.mxu1 %v15141_v2 }
 0x699   :  { %v11086_v59 = vadd.f32 %v12737_v35, %v12635_v32 }
 0x69b   :  { %12819 = vmatpush3.bf16.msra.mxu1 %v15142_v43 }
 0x6b3   :  { %v12754_v49 = vpop.f32.mrb[24].mxu0 }
 0x6b4   :  { %v12755_v53 = vpop.f32.mrb[25].mxu0 }
 0x6b5   :  { %v12756_v57 = vadd.f32 %v12755_v53, %v12754_v49  ;;  %v12757_v0 = vpop.f32.mrb[26].mxu0 }
 0x6b6   :  { %v12758_v45 = vpop.f32.mrb[27].mxu0 }
 0x6b7   :  { %v11124_v29 = vadd.f32 %v12756_v57, %v11083_v54  ;;  %v12759_v61 = vadd.f32 %v12758_v45, %v12757_v0 }
 0x6b9   :  { %v11127_v17 = vadd.f32 %v12759_v61, %v11086_v59 }
 0x6ef   :  { %v12776_v3 = vpop.f32.mrb[28].mxu0 }
 0x6f0   :  { %v12777_v60 = vpop.f32.mrb[29].mxu0 }
 0x6f1   :  { %v12778_v4 = vadd.f32 %v12777_v60, %v12776_v3  ;;  %v12779_v5 = vpop.f32.mrb[30].mxu0 }
 0x6f2   :  { %v12780_v26 = vpop.f32.mrb[31].mxu0 }
 0x6f3   :  { %v11165_v6 = vadd.f32 %v12778_v4, %v11124_v29  ;;  %v12781_v7 = vadd.f32 %v12780_v26, %v12779_v5 }
 0x6f5   :  { %v11168_v50 = vadd.f32 %v12781_v7, %v11127_v17 }
 0x751   :  { %v10362_v12 = vpop.f32.mrb[16].mxu1  ;;  %v12798_v40 = vpop.f32.mrb[32].mxu0 }
 0x752   :  { %v12862_v22 = vadd.f32 %v10362_v12, %v5281_v10  ;;  %v10364_v52 = vpop.f32.mrb[17].mxu1  ;;  %v12799_v14 = vpop.f32.mrb[33].mxu0 }
 0x753   :  { %v12863_v46 = vadd.f32 %v10364_v52, %v5285_v11  ;;  %v10366_v15 = vpop.f32.mrb[18].mxu1  ;;  %v12800_v16 = vadd.f32 %v12799_v14, %v12798_v40  ;;  %v12801_v9 = vpop.f32.mrb[34].mxu0 }
 0x754   :  { %v12864_v56 = vadd.f32 %v10366_v15, %v5281_v10  ;;  %v10368_v13 = vpop.f32.mrb[19].mxu1  ;;  %v12802_v18 = vpop.f32.mrb[35].mxu0  ;;  %v10379_v20 = vmax.f32 %v12862_v22, 0.0 }
 0x755   :  { %v11206_v47 = vadd.f32 %v12800_v16, %v11165_v6  ;;  %v12865_v19 = vadd.f32 %v10368_v13, %v5285_v11  ;;  %v12803_v44 = vadd.f32 %v12802_v18, %v12801_v9  ;;  %v10380_v51 = vmax.f32 %v12863_v46, 0.0 }
 0x756   :  { %v10389_v48 = vmax.f32 %v12864_v56, 0.0 }
 0x757   :  { %v10390_v28 = vmax.f32 %v12865_v19, 0.0  ;;  %v11209_v55 = vadd.f32 %v12803_v44, %v11168_v50 }
 0x758   :  { %v10399_v21 = vpack.c.bf16 %v10389_v48, %v10379_v20 }
 0x759   :  { %v10400_v36 = vpack.c.bf16 %v10390_v28, %v10380_v51 }
 0x75b   :  { %11244 = vmatprep.mubr.bf16.mxu1 %v10400_v36 }
 0x75c   :  { %11245 = vmatmul.mubr.bf16.vlgmr.msra.gmra.mrb[20].mxu1 %v10399_v21 }
 0x82f   :  { %v12820_v23 = vpop.f32.mrb[20].mxu1 }
 0x830   :  { %v12821_v41 = vpop.f32.mrb[21].mxu1 }
 0x831   :  { %v12822_v27 = vadd.f32 %v12821_v41, %v12820_v23  ;;  %v12823_v30 = vpop.f32.mrb[22].mxu1 }
 0x832   :  { %v12824_v31 = vpop.f32.mrb[23].mxu1 }
 0x833   :  { %v11247_v58 = vadd.f32 %v12822_v27, %v11206_v47  ;;  %v12825_v34 = vadd.f32 %v12824_v31, %v12823_v30 }
 0x835   :  { %11253 = vst [vmem:[#allocation14] sm:$0xff] %v11247_v58  ;;  %v11250_v37 = vadd.f32 %v12825_v34, %v11209_v55 }
 0x837   :  { %11254 = vst [vmem:[#allocation14 + $0x8] sm:$0xff] %v11250_v37 }
 0x838   :  { %15310 = shalt.err (!%p15307_p4)
}
 0x839   :  { %s15311_s15 = scalar_lea.hbm %s15685_s7, 256 }
 0x83a   :  { %p15312_p5 = scmp.ne.s32.totalorder %s15685_s7, %s15311_s15  ;;  %p15315_p6 = scmp.lt.u32.totalorder %s15311_s15, %s15685_s7 }
 0x83c   :  { %p15317_p7 = pnand %p15315_p6, %p15312_p5 }
 0x83e   :  { %15320 = shalt.err (!%p15317_p7)
}
 0x83f   :  { %s15346_s21 = smov 128   ;;  %s15347_s22 = smov 8  }
 0x840   :  { %11266 = dma.vmem_to_hbm [thread:$0]  %s11261_s3, 256, %s15685_s7, [#allocation4], %s15346_s21, %s15346_s21, %s15347_s22  }
 0x841   :  { %15329 = dma.done.wait [#allocation4], 256  }
 0x842   :  { %15330 = vsyncadd [#allocation4], 4294967040 }
 0x843   :  { %11270 = vsyncpa [#allocation3], 1 }
 0x844   :  { %11271 = vsyncpa [#allocation6], 1 }
 0x845   :  { %11272 = vsyncpa [#allocation9], 1 }
 0x846   :  { %11273 = vsyncpa [#allocation12], 1 }
 0x847   :  { %11274 = vsyncpa [#allocation4], 1 }

</bundles_post_ra>
